<compile_context>
chip_gen: v5e
topology: v5e:2x2
jax: 0.10.0
libtpu: 0.0.40
codegen_flags: <defaults>
</compile_context>

<pallas_src>
import jax
import jax.numpy as jnp
from jax.experimental import pallas as pl
from jax.experimental.pallas import tpu as pltpu

# ----------------------------- configuration -----------------------------
FUTURE_NUM_FRAMES = 5
NUM_TRAJECTORIES = 3
ALPHA = 0.01                                             # cfg['model_params']['alpha']
OUTPUT_FLAT = 2 * FUTURE_NUM_FRAMES * NUM_TRAJECTORIES   # 30
SEQ = OUTPUT_FLAT // 2                                   # 15 LSTM time steps
LSTM_IN = 64
LSTM_HID = 30
HID_PAD = 32                                             # 30 -> 32 so 4 gates = 128 lanes
OUT_LANES = 128                                          # lane-dense fused output slab

# ComplexNet stand-in
IMG_C, IMG_H, IMG_W = 4, 16, 16
CONV_OUT = 8


def _softmax_lastdim(x):
    m = jnp.max(x, axis=-1, keepdims=True)
    e = jnp.exp(x - m)
    return e * pl.reciprocal(jnp.sum(e, axis=-1, keepdims=True), approx=True)


# --------------------------- weight slab packing ---------------------------
def _pack_params(params):
    """Fold/pad/concatenate all weights into one (rows, 128) f32 slab.

    Returns (slab, offsets) with offsets[name] = (row_offset, rows, cols);
    row offsets are 8-sublane aligned.  Done ONCE per model, not per call.
    """
    f32 = jnp.float32
    w_ih, w_hh, b_g = params['w_ih'], params['w_hh'], params['b_g']

    # LSTM gate packing: i|f|g|o, each padded 30 -> 32 lanes; padded lanes/rows stay 0
    # (invariant: padded h/c lanes remain exactly 0 through the recurrence because
    #  the padded weight rows/cols and biases are 0 and h,c start at 0).
    w_ih_p = jnp.zeros((LSTM_IN, 4 * HID_PAD), f32)
    w_hh_p = jnp.zeros((HID_PAD, 4 * HID_PAD), f32)
    b_g_p = jnp.zeros((1, 4 * HID_PAD), f32)
    for g in range(4):
        lo = g * HID_PAD
        w_ih_p = w_ih_p.at[:, lo:lo + LSTM_HID].set(w_ih[g])
        w_hh_p = w_hh_p.at[:LSTM_HID, lo:lo + LSTM_HID].set(w_hh[g])
        b_g_p = b_g_p.at[:, lo:lo + LSTM_HID].set(b_g[g])

    # Fold output_predictions + CSP_Scaling out of the recurrent loop:
    #   csp_scaled = sum_t leaky(h_t) @ (w_pred @ wcsp3[t])
    #                + (b_pred @ sum_t wcsp3[t] + b_csp_s)
    wcsp3 = params['w_csp_s'].reshape(SEQ, 2, OUTPUT_FLAT)
    m = jnp.einsum('hd,tdo->tho', params['w_pred'], wcsp3)          # (SEQ, 30, 30)
    m = jnp.pad(m, ((0, 0), (0, HID_PAD - LSTM_HID), (0, 0)))       # (SEQ, 32, 30)
    m_stack = m.reshape(SEQ * HID_PAD, OUTPUT_FLAT)                 # (480, 30)
    b_csp_total = params['b_csp_s'] + params['b_pred'] @ jnp.sum(wcsp3, axis=0)

    # Fold convScaling / convConfidencesScaling (and b_csp_cs) into the heads:
    #   heads[:, :30]  = conv_pred @ w_conv_s + b_conv_s
    #   heads[:, 30:]  = conv_conf @ w_conv_cs + b_conv_cs + b_csp_cs
    w_heads = jnp.concatenate(
        [params['w_pred_head'] @ params['w_conv_s'],
         params['w_conf_head'] @ params['w_conv_cs']], axis=1)      # (Cout, 33)
    b_heads = jnp.concatenate(
        [params['b_pred_head'] @ params['w_conv_s'] + params['b_conv_s'],
         params['b_conf_head'] @ params['w_conv_cs'] + params['b_conv_cs']
         + params['b_csp_cs']], axis=1)                             # (1, 33)

    entries = [
        ('w_fc', params['w_fc']), ('b_fc', params['b_fc']),
        ('w_ih_p', w_ih_p), ('w_hh_p', w_hh_p), ('b_g_p', b_g_p),
        ('m_stack', m_stack), ('b_csp_total', b_csp_total),
        ('w_conf', params['w_conf']), ('b_conf', params['b_conf']),
        ('w_csp_cs', params['w_csp_cs']),
        ('w_conv', params['w_conv']), ('b_conv', params['b_conv']),
        ('w_heads', w_heads), ('b_heads', b_heads),
    ]
    rows, offsets, cur = [], {}, 0
    for name, a in entries:
        a = jnp.asarray(a, jnp.float32)
        r, c = a.shape
        offsets[name] = (cur, r, c)
        r_pad = (-r) % 8
        rows.append(jnp.pad(a, ((0, r_pad), (0, 128 - c))))
        cur += r + r_pad
    slab = jnp.concatenate(rows, axis=0)
    return slab, offsets


# ------------------------------ fused kernel ------------------------------
def make_fused_kernel(offsets, bt, hw, seq, alpha):
    def kernel(traj_ref, patches_ref, slab_ref, out_ref):
        f32 = jnp.float32

        def G(name):                           # static slice view of the weight slab
            off, r, c = offsets[name]
            return slab_ref[off:off + r, :c]

        # -------- ComplexNet stand-in: conv-as-matmul + mean pool + fused heads --------
        feat = jnp.dot(patches_ref[...], G('w_conv'),
                       preferred_element_type=f32) + G('b_conv')
        feat = jnp.maximum(feat, 0.0)                                 # (BT*HW, Cout)
        # per-sample mean pool via block-diagonal selector matmul; BT is capped by the
        # batch-tiled grid so this is O(BT^2*HW) constant work and stays on the MXU.
        col = jax.lax.broadcasted_iota(jnp.int32, (bt, bt * hw), 1)
        row = jax.lax.broadcasted_iota(jnp.int32, (bt, bt * hw), 0)
        sel = jnp.where((col >= row * hw) & (col < (row + 1) * hw),
                        f32(1.0 / hw), f32(0.0))
        pooled = jnp.dot(sel, feat, preferred_element_type=f32)       # (BT, Cout)
        # convScaling / convConfidencesScaling already folded into w_heads/b_heads.
        heads = jnp.dot(pooled, G('w_heads'),
                        preferred_element_type=f32) + G('b_heads')    # (BT, 33)

        # ------------------------------- decoder -------------------------------
        x = jnp.dot(traj_ref[...], G('w_fc'), preferred_element_type=f32) + G('b_fc')
        # LSTM input is the same x at every step (torch .repeat) -> input-gate
        # contribution of all 4 packed gates is computed once.
        xg = jnp.dot(x, G('w_ih_p'), preferred_element_type=f32) + G('b_g_p')  # (BT,128)
        w_hh_p = G('w_hh_p')                                                   # (32,128)

        lane = jax.lax.broadcasted_iota(jnp.int32, (bt, 4 * HID_PAD), 1)
        is_g = (lane >= 2 * HID_PAD) & (lane < 3 * HID_PAD)           # tanh gate block

        m_off = offsets['m_stack'][0]
        h = jnp.zeros((bt, HID_PAD), f32)
        c = jnp.zeros((bt, HID_PAD), f32)
        acc = jnp.zeros((bt, OUTPUT_FLAT), f32)
        half = f32(0.5)
        for t in range(seq):                   # small static trip count -> unrolled
            gates = xg + jnp.dot(h, w_hh_p, preferred_element_type=f32)  # 1 MXU push/step
            # one transcendental per step: sigmoid(z) = 0.5*tanh(z/2) + 0.5
            y = jnp.tanh(jnp.where(is_g, gates, half * gates))
            act = jnp.where(is_g, y, half * y + half)
            gi = act[:, 0:HID_PAD]
            gf = act[:, HID_PAD:2 * HID_PAD]
            gg = act[:, 2 * HID_PAD:3 * HID_PAD]
            go = act[:, 3 * HID_PAD:4 * HID_PAD]
            c = gf * c + gi * gg
            h = go * jnp.tanh(c)
            # accumulate the folded prediction+CSP-scaling contribution of step t;
            # tiny MXU push off the h->h critical path (no scratch, no masked stores).
            a = jnp.where(h > 0, h, alpha * h)                        # leaky_relu
            m_t = slab_ref[m_off + t * HID_PAD:m_off + (t + 1) * HID_PAD, :OUTPUT_FLAT]
            acc = acc + jnp.dot(a, m_t, preferred_element_type=f32)

        predictions = heads[:, :OUTPUT_FLAT] + acc + G('b_csp_total')  # (BT, 30)

        csp_conf = _softmax_lastdim(
            jnp.dot(predictions, G('w_conf'), preferred_element_type=f32) + G('b_conf'))
        conf = (heads[:, OUTPUT_FLAT:OUTPUT_FLAT + NUM_TRAJECTORIES]
                + jnp.dot(csp_conf, G('w_csp_cs'), preferred_element_type=f32))
        conf = _softmax_lastdim(conf)                                  # (BT, 3)

        # single lane-dense unmasked store: pred in lanes 0..29, conf in 30..32
        pad = jnp.zeros((bt, OUT_LANES - OUTPUT_FLAT - NUM_TRAJECTORIES), f32)
        out_ref[...] = jnp.concatenate([predictions, conf, pad], axis=1)

    return kernel


# ------------------------------ forward wrapper ------------------------------
def _choose_batch_tile(batch):
    # Split into 2 parallel grid blocks when it tiles cleanly (uses both v7x
    # TensorCores, bounds per-step VMEM); otherwise one grid step (neutral on
    # 1-TC v5e/v6e and at small batch).
    if batch >= 16 and batch % 2 == 0 and (batch // 2) % 8 == 0:
        return batch // 2
    return batch


def make_csp_decoder(params):
    """Pack weights once per model and return a jitted forward function."""
    slab, offsets = _pack_params(params)

    def forward(trajectory_concated, ego_curr, ims, slab):
        del ego_curr  # accepted for signature parity; unused by the torch forward
        B, C, H, W = ims.shape
        HW = H * W
        traj = trajectory_concated.reshape(B, -1).astype(jnp.float32)  # torch.flatten(x, 1)

        # im2col of NCHW images (pure layout glue) so the conv is a matmul in-kernel.
        x = jnp.transpose(ims, (0, 2, 3, 1))                           # NCHW -> NHWC
        xp = jnp.pad(x, ((0, 0), (1, 1), (1, 1), (0, 0)))              # SAME pad for 3x3
        cols = [xp[:, dy:dy + H, dx:dx + W, :] for dy in range(3) for dx in range(3)]
        patches = jnp.concatenate(cols, axis=-1).reshape(B * HW, 9 * C).astype(jnp.float32)

        BT = _choose_batch_tile(B)
        grid = (B // BT,)
        srows, scols = slab.shape

        out = pl.pallas_call(
            make_fused_kernel(offsets, BT, HW, SEQ, ALPHA),
            out_shape=jax.ShapeDtypeStruct((B, OUT_LANES), jnp.float32),
            grid=grid,
            in_specs=[
                pl.BlockSpec((BT, LSTM_IN), lambda i: (i, 0)),
                pl.BlockSpec((BT * HW, 9 * C), lambda i: (i, 0)),
                pl.BlockSpec((srows, scols), lambda i: (0, 0)),        # weight slab, shared
            ],
            out_specs=pl.BlockSpec((BT, OUT_LANES), lambda i: (i, 0)),
            compiler_params=pltpu.CompilerParams(
                dimension_semantics=("parallel",)),
        )(traj, patches, slab)

        predictions = out[:, :OUTPUT_FLAT].reshape(-1, NUM_TRAJECTORIES, FUTURE_NUM_FRAMES, 2)
        confidences = out[:, OUTPUT_FLAT:OUTPUT_FLAT + NUM_TRAJECTORIES]
        return predictions, confidences

    fwd = jax.jit(forward)
    return lambda t, e, i: fwd(t, e, i, slab)


# ------------------------------ parameters ------------------------------
def init_params(key):
    ks = jax.random.split(key, 23)

    def rnd(k, shape, scale=0.1):
        return (scale * jax.random.normal(k, shape)).astype(jnp.float32)

    return {
        # ComplexNet stand-in
        'w_conv': rnd(ks[0], (9 * IMG_C, CONV_OUT)),
        'b_conv': rnd(ks[1], (1, CONV_OUT)),
        'w_pred_head': rnd(ks[2], (CONV_OUT, OUTPUT_FLAT)),
        'b_pred_head': rnd(ks[3], (1, OUTPUT_FLAT)),
        'w_conf_head': rnd(ks[4], (CONV_OUT, NUM_TRAJECTORIES)),
        'b_conf_head': rnd(ks[5], (1, NUM_TRAJECTORIES)),
        # traj_concat_fc (stored already transposed: (in, out))
        'w_fc': rnd(ks[6], (LSTM_IN, LSTM_IN)),
        'b_fc': rnd(ks[7], (1, LSTM_IN)),
        # decoderLSTM, gate order i,f,g,o; b_g = b_ih + b_hh merged
        'w_ih': rnd(ks[8], (4, LSTM_IN, LSTM_HID)),
        'w_hh': rnd(ks[9], (4, LSTM_HID, LSTM_HID)),
        'b_g': rnd(ks[10], (4, 1, LSTM_HID)),
        # output_predictions (30 -> 2)
        'w_pred': rnd(ks[11], (LSTM_HID, 2)),
        'b_pred': rnd(ks[12], (1, 2)),
        # CSP_Scaling / convScaling (OF -> OF)
        'w_csp_s': rnd(ks[13], (OUTPUT_FLAT, OUTPUT_FLAT)),
        'b_csp_s': rnd(ks[14], (1, OUTPUT_FLAT)),
        'w_conv_s': rnd(ks[15], (OUTPUT_FLAT, OUTPUT_FLAT)),
        'b_conv_s': rnd(ks[16], (1, OUTPUT_FLAT)),
        # confidences (OF -> T)
        'w_conf': rnd(ks[17], (OUTPUT_FLAT, NUM_TRAJECTORIES)),
        'b_conf': rnd(ks[18], (1, NUM_TRAJECTORIES)),
        # confidence scalings (T -> T)
        'w_conv_cs': rnd(ks[19], (NUM_TRAJECTORIES, NUM_TRAJECTORIES)),
        'b_conv_cs': rnd(ks[20], (1, NUM_TRAJECTORIES)),
        'w_csp_cs': rnd(ks[21], (NUM_TRAJECTORIES, NUM_TRAJECTORIES)),
        'b_csp_cs': rnd(ks[22], (1, NUM_TRAJECTORIES)),
    }


# ---------------------------- pure-JAX reference ----------------------------
def reference_forward(trajectory_concated, ims, params):
    B, C, H, W = ims.shape
    x = jnp.transpose(ims, (0, 2, 3, 1))
    xp = jnp.pad(x, ((0, 0), (1, 1), (1, 1), (0, 0)))
    cols = [xp[:, dy:dy + H, dx:dx + W, :] for dy in range(3) for dx in range(3)]
    patches = jnp.concatenate(cols, axis=-1).reshape(B, H * W, 9 * C)
    feat = jnp.maximum(jnp.einsum('bpk,kc->bpc', patches, params['w_conv']) + params['b_conv'], 0.0)
    pooled = feat.mean(axis=1)
    conv_pred = pooled @ params['w_pred_head'] + params['b_pred_head']
    conv_conf = pooled @ params['w_conf_head'] + params['b_conf_head']

    traj = trajectory_concated.reshape(B, -1)
    x0 = traj @ params['w_fc'] + params['b_fc']
    h = jnp.zeros((B, LSTM_HID), jnp.float32)
    c = jnp.zeros((B, LSTM_HID), jnp.float32)
    hs = []
    for _ in range(SEQ):
        gi = jax.nn.sigmoid(x0 @ params['w_ih'][0] + params['b_g'][0] + h @ params['w_hh'][0])
        gf = jax.nn.sigmoid(x0 @ params['w_ih'][1] + params['b_g'][1] + h @ params['w_hh'][1])
        gg = jnp.tanh(x0 @ params['w_ih'][2] + params['b_g'][2] + h @ params['w_hh'][2])
        go = jax.nn.sigmoid(x0 @ params['w_ih'][3] + params['b_g'][3] + h @ params['w_hh'][3])
        c = gf * c + gi * gg
        h = go * jnp.tanh(c)
        hs.append(h)
    h_all = jnp.stack(hs, axis=1)                                # (B, SEQ, HID)
    act = jnp.where(h_all > 0, h_all, ALPHA * h_all)
    csp_pred = jnp.einsum('bsh,ho->bso', act, params['w_pred']) + params['b_pred']
    csp_flat = csp_pred.reshape(B, OUTPUT_FLAT)
    predictions = (conv_pred @ params['w_conv_s'] + params['b_conv_s']
                   + csp_flat @ params['w_csp_s'] + params['b_csp_s'])
    csp_conf = jax.nn.softmax(predictions @ params['w_conf'] + params['b_conf'], axis=-1)
    conf = (conv_conf @ params['w_conv_cs'] + params['b_conv_cs']
            + csp_conf @ params['w_csp_cs'] + params['b_csp_cs'])
    conf = jax.nn.softmax(conf, axis=-1)
    preds = predictions.reshape(-1, NUM_TRAJECTORIES, FUTURE_NUM_FRAMES, 2)
    return preds, conf


# ---------------------------------- main ----------------------------------
if __name__ == "__main__":
    key = jax.random.PRNGKey(0)
    kp, k1, k2, k3 = jax.random.split(key, 4)
    params = init_params(kp)

    B = 2
    trajectory_concated = jax.random.normal(k1, (B, LSTM_IN), dtype=jnp.float32)
    ego_curr = jax.random.normal(k2, (B, 4), dtype=jnp.float32)   # unused by forward
    ims = jax.random.normal(k3, (B, IMG_C, IMG_H, IMG_W), dtype=jnp.float32)

    forward = make_csp_decoder(params)                            # packs weights once
    preds, confs = forward(trajectory_concated, ego_curr, ims)
    preds = jax.block_until_ready(preds)
    confs = jax.block_until_ready(confs)

    ref_preds, ref_confs = reference_forward(trajectory_concated, ims, params)
    assert preds.shape == (B, NUM_TRAJECTORIES, FUTURE_NUM_FRAMES, 2)
    assert confs.shape == (B, NUM_TRAJECTORIES)
    assert jnp.allclose(preds, ref_preds, atol=2e-3, rtol=2e-3)
    assert jnp.allclose(confs, ref_confs, atol=2e-3, rtol=2e-3)

    print("KERNEL_OK")
</pallas_src>

<mosaic_0001>
module attributes {stable_mosaic.version = 11 : i64} {
  func.func @kernel(%arg0: i32, %arg1: memref<2x64xf32, #tpu.memory_space<vmem>>, %arg2: memref<512x36xf32, #tpu.memory_space<vmem>>, %arg3: memref<776x128xf32, #tpu.memory_space<vmem>>, %arg4: memref<2x128xf32, #tpu.memory_space<vmem>>) attributes {dimension_semantics = [#tpu.dimension_semantics<parallel>], iteration_bounds = array<i64: 1>, scalar_prefetch = 0 : i64, scratch_operands = 0 : i64, tpu.core_type = #tpu.core_type<tc>, window_params = [{transform_indices = @transform_0, window_bounds = array<i64: 2, 64>}, {transform_indices = @transform_1, window_bounds = array<i64: 512, 36>}, {pipeline_mode = #tpu.pipeline_mode<synchronous>, transform_indices = @transform_2, window_bounds = array<i64: 776, 128>}, {transform_indices = @transform_3, window_bounds = array<i64: 2, 128>}]} {
    %c0 = arith.constant 0 : index
    %c0_0 = arith.constant 0 : index
    %0 = vector.load %arg2[%c0, %c0_0] : memref<512x36xf32, #tpu.memory_space<vmem>>, vector<512x36xf32>
    %c712 = arith.constant 712 : index
    %c0_1 = arith.constant 0 : index
    %1 = vector.load %arg3[%c712, %c0_1] : memref<776x128xf32, #tpu.memory_space<vmem>>, vector<36x8xf32>
    %cst = arith.constant dense<0.000000e+00> : vector<512x8xf32>
    %2 = tpu.matmul %0, %1, %cst {dimension_numbers = #tpu.dot_dimension_numbers<[1], [0], [0], [1], [0, 0, 1, 1], [], []>} : vector<512x36xf32>, vector<36x8xf32>, vector<512x8xf32> -> vector<512x8xf32>
    %c752 = arith.constant 752 : index
    %c0_2 = arith.constant 0 : index
    %3 = vector.load %arg3[%c752, %c0_2] : memref<776x128xf32, #tpu.memory_space<vmem>>, vector<1x8xf32>
    %4 = vector.broadcast %3 : vector<1x8xf32> to vector<512x8xf32>
    %5 = arith.addf %2, %4 : vector<512x8xf32>
    %cst_3 = arith.constant 0.000000e+00 : f32
    %6 = vector.broadcast %cst_3 : f32 to vector<512x8xf32>
    %7 = arith.maximumf %5, %6 : vector<512x8xf32>
    %8 = tpu.iota {dimensions = array<i32: 1>} : vector<2x512xi32>
    %9 = tpu.iota {dimensions = array<i32: 0>} : vector<2x512xi32>
    %c256_i32 = arith.constant 256 : i32
    %10 = vector.broadcast %c256_i32 : i32 to vector<2x512xi32>
    %11 = arith.muli %9, %10 : vector<2x512xi32>
    %12 = arith.cmpi sge, %8, %11 : vector<2x512xi32>
    %c1_i32 = arith.constant 1 : i32
    %13 = vector.broadcast %c1_i32 : i32 to vector<2x512xi32>
    %14 = arith.addi %9, %13 : vector<2x512xi32>
    %c256_i32_4 = arith.constant 256 : i32
    %15 = vector.broadcast %c256_i32_4 : i32 to vector<2x512xi32>
    %16 = arith.muli %14, %15 : vector<2x512xi32>
    %17 = arith.cmpi slt, %8, %16 : vector<2x512xi32>
    %18 = arith.andi %12, %17 : vector<2x512xi1>
    %cst_5 = arith.constant 3.906250e-03 : f32
    %cst_6 = arith.constant 0.000000e+00 : f32
    %19 = vector.broadcast %cst_5 : f32 to vector<2x512xf32>
    %20 = vector.broadcast %cst_6 : f32 to vector<2x512xf32>
    %21 = arith.select %18, %19, %20 : vector<2x512xi1>, vector<2x512xf32>
    %cst_7 = arith.constant dense<0.000000e+00> : vector<2x8xf32>
    %22 = tpu.matmul %21, %7, %cst_7 {dimension_numbers = #tpu.dot_dimension_numbers<[1], [0], [0], [1], [0, 0, 1, 1], [], []>} : vector<2x512xf32>, vector<512x8xf32>, vector<2x8xf32> -> vector<2x8xf32>
    %c760 = arith.constant 760 : index
    %c0_8 = arith.constant 0 : index
    %23 = vector.load %arg3[%c760, %c0_8] : memref<776x128xf32, #tpu.memory_space<vmem>>, vector<8x33xf32>
    %cst_9 = arith.constant dense<0.000000e+00> : vector<2x33xf32>
    %24 = tpu.matmul %22, %23, %cst_9 {dimension_numbers = #tpu.dot_dimension_numbers<[1], [0], [0], [1], [0, 0, 1, 1], [], []>} : vector<2x8xf32>, vector<8x33xf32>, vector<2x33xf32> -> vector<2x33xf32>
    %c768 = arith.constant 768 : index
    %c0_10 = arith.constant 0 : index
    %25 = vector.load %arg3[%c768, %c0_10] : memref<776x128xf32, #tpu.memory_space<vmem>>, vector<1x33xf32>
    %26 = vector.broadcast %25 : vector<1x33xf32> to vector<2x33xf32>
    %27 = arith.addf %24, %26 : vector<2x33xf32>
    %c0_11 = arith.constant 0 : index
    %c0_12 = arith.constant 0 : index
    %28 = vector.load %arg1[%c0_11, %c0_12] : memref<2x64xf32, #tpu.memory_space<vmem>>, vector<2x64xf32>
    %c0_13 = arith.constant 0 : index
    %c0_14 = arith.constant 0 : index
    %29 = vector.load %arg3[%c0_13, %c0_14] : memref<776x128xf32, #tpu.memory_space<vmem>>, vector<64x64xf32>
    %cst_15 = arith.constant dense<0.000000e+00> : vector<2x64xf32>
    %30 = tpu.matmul %28, %29, %cst_15 {dimension_numbers = #tpu.dot_dimension_numbers<[1], [0], [0], [1], [0, 0, 1, 1], [], []>} : vector<2x64xf32>, vector<64x64xf32>, vector<2x64xf32> -> vector<2x64xf32>
    %c64 = arith.constant 64 : index
    %c0_16 = arith.constant 0 : index
    %31 = vector.load %arg3[%c64, %c0_16] : memref<776x128xf32, #tpu.memory_space<vmem>>, vector<1x64xf32>
    %32 = vector.broadcast %31 : vector<1x64xf32> to vector<2x64xf32>
    %33 = arith.addf %30, %32 : vector<2x64xf32>
    %c72 = arith.constant 72 : index
    %c0_17 = arith.constant 0 : index
    %34 = vector.load %arg3[%c72, %c0_17] : memref<776x128xf32, #tpu.memory_space<vmem>>, vector<64x128xf32>
    %cst_18 = arith.constant dense<0.000000e+00> : vector<2x128xf32>
    %35 = tpu.matmul %33, %34, %cst_18 {dimension_numbers = #tpu.dot_dimension_numbers<[1], [0], [0], [1], [0, 0, 1, 1], [], []>} : vector<2x64xf32>, vector<64x128xf32>, vector<2x128xf32> -> vector<2x128xf32>
    %c168 = arith.constant 168 : index
    %c0_19 = arith.constant 0 : index
    %36 = vector.load %arg3[%c168, %c0_19] : memref<776x128xf32, #tpu.memory_space<vmem>>, vector<1x128xf32>
    %37 = vector.broadcast %36 : vector<1x128xf32> to vector<2x128xf32>
    %38 = arith.addf %35, %37 : vector<2x128xf32>
    %c136 = arith.constant 136 : index
    %c0_20 = arith.constant 0 : index
    %39 = vector.load %arg3[%c136, %c0_20] : memref<776x128xf32, #tpu.memory_space<vmem>>, vector<32x128xf32>
    %40 = tpu.iota {dimensions = array<i32: 1>} : vector<2x128xi32>
    %c64_i32 = arith.constant 64 : i32
    %41 = vector.broadcast %c64_i32 : i32 to vector<2x128xi32>
    %42 = arith.cmpi sge, %40, %41 : vector<2x128xi32>
    %c96_i32 = arith.constant 96 : i32
    %43 = vector.broadcast %c96_i32 : i32 to vector<2x128xi32>
    %44 = arith.cmpi slt, %40, %43 : vector<2x128xi32>
    %45 = arith.andi %42, %44 : vector<2x128xi1>
    %cst_21 = arith.constant 0.000000e+00 : f32
    %46 = vector.broadcast %cst_21 : f32 to vector<2x32xf32>
    %cst_22 = arith.constant 0.000000e+00 : f32
    %47 = vector.broadcast %cst_22 : f32 to vector<2x32xf32>
    %cst_23 = arith.constant 0.000000e+00 : f32
    %48 = vector.broadcast %cst_23 : f32 to vector<2x30xf32>
    %cst_24 = arith.constant dense<0.000000e+00> : vector<2x128xf32>
    %49 = tpu.matmul %46, %39, %cst_24 {dimension_numbers = #tpu.dot_dimension_numbers<[1], [0], [0], [1], [0, 0, 1, 1], [], []>} : vector<2x32xf32>, vector<32x128xf32>, vector<2x128xf32> -> vector<2x128xf32>
    %50 = arith.addf %38, %49 : vector<2x128xf32>
    %cst_25 = arith.constant 5.000000e-01 : f32
    %51 = vector.broadcast %cst_25 : f32 to vector<2x128xf32>
    %52 = arith.mulf %51, %50 : vector<2x128xf32>
    %53 = arith.select %45, %50, %52 : vector<2x128xi1>, vector<2x128xf32>
    %54 = math.tanh %53 : vector<2x128xf32>
    %cst_26 = arith.constant 5.000000e-01 : f32
    %55 = vector.broadcast %cst_26 : f32 to vector<2x128xf32>
    %56 = arith.mulf %55, %54 : vector<2x128xf32>
    %cst_27 = arith.constant 5.000000e-01 : f32
    %57 = vector.broadcast %cst_27 : f32 to vector<2x128xf32>
    %58 = arith.addf %56, %57 : vector<2x128xf32>
    %59 = arith.select %45, %54, %58 : vector<2x128xi1>, vector<2x128xf32>
    %60 = vector.extract_strided_slice %59 {offsets = [0, 0], sizes = [2, 32], strides = [1, 1]} : vector<2x128xf32> to vector<2x32xf32>
    %61 = vector.extract_strided_slice %59 {offsets = [0, 32], sizes = [2, 32], strides = [1, 1]} : vector<2x128xf32> to vector<2x32xf32>
    %62 = vector.extract_strided_slice %59 {offsets = [0, 64], sizes = [2, 32], strides = [1, 1]} : vector<2x128xf32> to vector<2x32xf32>
    %63 = vector.extract_strided_slice %59 {offsets = [0, 96], sizes = [2, 32], strides = [1, 1]} : vector<2x128xf32> to vector<2x32xf32>
    %64 = arith.mulf %61, %47 : vector<2x32xf32>
    %65 = arith.mulf %60, %62 : vector<2x32xf32>
    %66 = arith.addf %64, %65 : vector<2x32xf32>
    %67 = math.tanh %66 : vector<2x32xf32>
    %68 = arith.mulf %63, %67 : vector<2x32xf32>
    %cst_28 = arith.constant 0.000000e+00 : f32
    %69 = vector.broadcast %cst_28 : f32 to vector<2x32xf32>
    %70 = arith.cmpf ogt, %68, %69 : vector<2x32xf32>
    %cst_29 = arith.constant 0.00999999977 : f32
    %71 = vector.broadcast %cst_29 : f32 to vector<2x32xf32>
    %72 = arith.mulf %71, %68 : vector<2x32xf32>
    %73 = arith.select %70, %68, %72 : vector<2x32xi1>, vector<2x32xf32>
    %c176 = arith.constant 176 : index
    %c0_30 = arith.constant 0 : index
    %74 = vector.load %arg3[%c176, %c0_30] : memref<776x128xf32, #tpu.memory_space<vmem>>, vector<32x30xf32>
    %cst_31 = arith.constant dense<0.000000e+00> : vector<2x30xf32>
    %75 = tpu.matmul %73, %74, %cst_31 {dimension_numbers = #tpu.dot_dimension_numbers<[1], [0], [0], [1], [0, 0, 1, 1], [], []>} : vector<2x32xf32>, vector<32x30xf32>, vector<2x30xf32> -> vector<2x30xf32>
    %76 = arith.addf %48, %75 : vector<2x30xf32>
    %cst_32 = arith.constant dense<0.000000e+00> : vector<2x128xf32>
    %77 = tpu.matmul %68, %39, %cst_32 {dimension_numbers = #tpu.dot_dimension_numbers<[1], [0], [0], [1], [0, 0, 1, 1], [], []>} : vector<2x32xf32>, vector<32x128xf32>, vector<2x128xf32> -> vector<2x128xf32>
    %78 = arith.addf %38, %77 : vector<2x128xf32>
    %cst_33 = arith.constant 5.000000e-01 : f32
    %79 = vector.broadcast %cst_33 : f32 to vector<2x128xf32>
    %80 = arith.mulf %79, %78 : vector<2x128xf32>
    %81 = arith.select %45, %78, %80 : vector<2x128xi1>, vector<2x128xf32>
    %82 = math.tanh %81 : vector<2x128xf32>
    %cst_34 = arith.constant 5.000000e-01 : f32
    %83 = vector.broadcast %cst_34 : f32 to vector<2x128xf32>
    %84 = arith.mulf %83, %82 : vector<2x128xf32>
    %cst_35 = arith.constant 5.000000e-01 : f32
    %85 = vector.broadcast %cst_35 : f32 to vector<2x128xf32>
    %86 = arith.addf %84, %85 : vector<2x128xf32>
    %87 = arith.select %45, %82, %86 : vector<2x128xi1>, vector<2x128xf32>
    %88 = vector.extract_strided_slice %87 {offsets = [0, 0], sizes = [2, 32], strides = [1, 1]} : vector<2x128xf32> to vector<2x32xf32>
    %89 = vector.extract_strided_slice %87 {offsets = [0, 32], sizes = [2, 32], strides = [1, 1]} : vector<2x128xf32> to vector<2x32xf32>
    %90 = vector.extract_strided_slice %87 {offsets = [0, 64], sizes = [2, 32], strides = [1, 1]} : vector<2x128xf32> to vector<2x32xf32>
    %91 = vector.extract_strided_slice %87 {offsets = [0, 96], sizes = [2, 32], strides = [1, 1]} : vector<2x128xf32> to vector<2x32xf32>
    %92 = arith.mulf %89, %66 : vector<2x32xf32>
    %93 = arith.mulf %88, %90 : vector<2x32xf32>
    %94 = arith.addf %92, %93 : vector<2x32xf32>
    %95 = math.tanh %94 : vector<2x32xf32>
    %96 = arith.mulf %91, %95 : vector<2x32xf32>
    %cst_36 = arith.constant 0.000000e+00 : f32
    %97 = vector.broadcast %cst_36 : f32 to vector<2x32xf32>
    %98 = arith.cmpf ogt, %96, %97 : vector<2x32xf32>
    %cst_37 = arith.constant 0.00999999977 : f32
    %99 = vector.broadcast %cst_37 : f32 to vector<2x32xf32>
    %100 = arith.mulf %99, %96 : vector<2x32xf32>
    %101 = arith.select %98, %96, %100 : vector<2x32xi1>, vector<2x32xf32>
    %c208 = arith.constant 208 : index
    %c0_38 = arith.constant 0 : index
    %102 = vector.load %arg3[%c208, %c0_38] : memref<776x128xf32, #tpu.memory_space<vmem>>, vector<32x30xf32>
    %cst_39 = arith.constant dense<0.000000e+00> : vector<2x30xf32>
    %103 = tpu.matmul %101, %102, %cst_39 {dimension_numbers = #tpu.dot_dimension_numbers<[1], [0], [0], [1], [0, 0, 1, 1], [], []>} : vector<2x32xf32>, vector<32x30xf32>, vector<2x30xf32> -> vector<2x30xf32>
    %104 = arith.addf %76, %103 : vector<2x30xf32>
    %cst_40 = arith.constant dense<0.000000e+00> : vector<2x128xf32>
    %105 = tpu.matmul %96, %39, %cst_40 {dimension_numbers = #tpu.dot_dimension_numbers<[1], [0], [0], [1], [0, 0, 1, 1], [], []>} : vector<2x32xf32>, vector<32x128xf32>, vector<2x128xf32> -> vector<2x128xf32>
    %106 = arith.addf %38, %105 : vector<2x128xf32>
    %cst_41 = arith.constant 5.000000e-01 : f32
    %107 = vector.broadcast %cst_41 : f32 to vector<2x128xf32>
    %108 = arith.mulf %107, %106 : vector<2x128xf32>
    %109 = arith.select %45, %106, %108 : vector<2x128xi1>, vector<2x128xf32>
    %110 = math.tanh %109 : vector<2x128xf32>
    %cst_42 = arith.constant 5.000000e-01 : f32
    %111 = vector.broadcast %cst_42 : f32 to vector<2x128xf32>
    %112 = arith.mulf %111, %110 : vector<2x128xf32>
    %cst_43 = arith.constant 5.000000e-01 : f32
    %113 = vector.broadcast %cst_43 : f32 to vector<2x128xf32>
    %114 = arith.addf %112, %113 : vector<2x128xf32>
    %115 = arith.select %45, %110, %114 : vector<2x128xi1>, vector<2x128xf32>
    %116 = vector.extract_strided_slice %115 {offsets = [0, 0], sizes = [2, 32], strides = [1, 1]} : vector<2x128xf32> to vector<2x32xf32>
    %117 = vector.extract_strided_slice %115 {offsets = [0, 32], sizes = [2, 32], strides = [1, 1]} : vector<2x128xf32> to vector<2x32xf32>
    %118 = vector.extract_strided_slice %115 {offsets = [0, 64], sizes = [2, 32], strides = [1, 1]} : vector<2x128xf32> to vector<2x32xf32>
    %119 = vector.extract_strided_slice %115 {offsets = [0, 96], sizes = [2, 32], strides = [1, 1]} : vector<2x128xf32> to vector<2x32xf32>
    %120 = arith.mulf %117, %94 : vector<2x32xf32>
    %121 = arith.mulf %116, %118 : vector<2x32xf32>
    %122 = arith.addf %120, %121 : vector<2x32xf32>
    %123 = math.tanh %122 : vector<2x32xf32>
    %124 = arith.mulf %119, %123 : vector<2x32xf32>
    %cst_44 = arith.constant 0.000000e+00 : f32
    %125 = vector.broadcast %cst_44 : f32 to vector<2x32xf32>
    %126 = arith.cmpf ogt, %124, %125 : vector<2x32xf32>
    %cst_45 = arith.constant 0.00999999977 : f32
    %127 = vector.broadcast %cst_45 : f32 to vector<2x32xf32>
    %128 = arith.mulf %127, %124 : vector<2x32xf32>
    %129 = arith.select %126, %124, %128 : vector<2x32xi1>, vector<2x32xf32>
    %c240 = arith.constant 240 : index
    %c0_46 = arith.constant 0 : index
    %130 = vector.load %arg3[%c240, %c0_46] : memref<776x128xf32, #tpu.memory_space<vmem>>, vector<32x30xf32>
    %cst_47 = arith.constant dense<0.000000e+00> : vector<2x30xf32>
    %131 = tpu.matmul %129, %130, %cst_47 {dimension_numbers = #tpu.dot_dimension_numbers<[1], [0], [0], [1], [0, 0, 1, 1], [], []>} : vector<2x32xf32>, vector<32x30xf32>, vector<2x30xf32> -> vector<2x30xf32>
    %132 = arith.addf %104, %131 : vector<2x30xf32>
    %cst_48 = arith.constant dense<0.000000e+00> : vector<2x128xf32>
    %133 = tpu.matmul %124, %39, %cst_48 {dimension_numbers = #tpu.dot_dimension_numbers<[1], [0], [0], [1], [0, 0, 1, 1], [], []>} : vector<2x32xf32>, vector<32x128xf32>, vector<2x128xf32> -> vector<2x128xf32>
    %134 = arith.addf %38, %133 : vector<2x128xf32>
    %cst_49 = arith.constant 5.000000e-01 : f32
    %135 = vector.broadcast %cst_49 : f32 to vector<2x128xf32>
    %136 = arith.mulf %135, %134 : vector<2x128xf32>
    %137 = arith.select %45, %134, %136 : vector<2x128xi1>, vector<2x128xf32>
    %138 = math.tanh %137 : vector<2x128xf32>
    %cst_50 = arith.constant 5.000000e-01 : f32
    %139 = vector.broadcast %cst_50 : f32 to vector<2x128xf32>
    %140 = arith.mulf %139, %138 : vector<2x128xf32>
    %cst_51 = arith.constant 5.000000e-01 : f32
    %141 = vector.broadcast %cst_51 : f32 to vector<2x128xf32>
    %142 = arith.addf %140, %141 : vector<2x128xf32>
    %143 = arith.select %45, %138, %142 : vector<2x128xi1>, vector<2x128xf32>
    %144 = vector.extract_strided_slice %143 {offsets = [0, 0], sizes = [2, 32], strides = [1, 1]} : vector<2x128xf32> to vector<2x32xf32>
    %145 = vector.extract_strided_slice %143 {offsets = [0, 32], sizes = [2, 32], strides = [1, 1]} : vector<2x128xf32> to vector<2x32xf32>
    %146 = vector.extract_strided_slice %143 {offsets = [0, 64], sizes = [2, 32], strides = [1, 1]} : vector<2x128xf32> to vector<2x32xf32>
    %147 = vector.extract_strided_slice %143 {offsets = [0, 96], sizes = [2, 32], strides = [1, 1]} : vector<2x128xf32> to vector<2x32xf32>
    %148 = arith.mulf %145, %122 : vector<2x32xf32>
    %149 = arith.mulf %144, %146 : vector<2x32xf32>
    %150 = arith.addf %148, %149 : vector<2x32xf32>
    %151 = math.tanh %150 : vector<2x32xf32>
    %152 = arith.mulf %147, %151 : vector<2x32xf32>
    %cst_52 = arith.constant 0.000000e+00 : f32
    %153 = vector.broadcast %cst_52 : f32 to vector<2x32xf32>
    %154 = arith.cmpf ogt, %152, %153 : vector<2x32xf32>
    %cst_53 = arith.constant 0.00999999977 : f32
    %155 = vector.broadcast %cst_53 : f32 to vector<2x32xf32>
    %156 = arith.mulf %155, %152 : vector<2x32xf32>
    %157 = arith.select %154, %152, %156 : vector<2x32xi1>, vector<2x32xf32>
    %c272 = arith.constant 272 : index
    %c0_54 = arith.constant 0 : index
    %158 = vector.load %arg3[%c272, %c0_54] : memref<776x128xf32, #tpu.memory_space<vmem>>, vector<32x30xf32>
    %cst_55 = arith.constant dense<0.000000e+00> : vector<2x30xf32>
    %159 = tpu.matmul %157, %158, %cst_55 {dimension_numbers = #tpu.dot_dimension_numbers<[1], [0], [0], [1], [0, 0, 1, 1], [], []>} : vector<2x32xf32>, vector<32x30xf32>, vector<2x30xf32> -> vector<2x30xf32>
    %160 = arith.addf %132, %159 : vector<2x30xf32>
    %cst_56 = arith.constant dense<0.000000e+00> : vector<2x128xf32>
    %161 = tpu.matmul %152, %39, %cst_56 {dimension_numbers = #tpu.dot_dimension_numbers<[1], [0], [0], [1], [0, 0, 1, 1], [], []>} : vector<2x32xf32>, vector<32x128xf32>, vector<2x128xf32> -> vector<2x128xf32>
    %162 = arith.addf %38, %161 : vector<2x128xf32>
    %cst_57 = arith.constant 5.000000e-01 : f32
    %163 = vector.broadcast %cst_57 : f32 to vector<2x128xf32>
    %164 = arith.mulf %163, %162 : vector<2x128xf32>
    %165 = arith.select %45, %162, %164 : vector<2x128xi1>, vector<2x128xf32>
    %166 = math.tanh %165 : vector<2x128xf32>
    %cst_58 = arith.constant 5.000000e-01 : f32
    %167 = vector.broadcast %cst_58 : f32 to vector<2x128xf32>
    %168 = arith.mulf %167, %166 : vector<2x128xf32>
    %cst_59 = arith.constant 5.000000e-01 : f32
    %169 = vector.broadcast %cst_59 : f32 to vector<2x128xf32>
    %170 = arith.addf %168, %169 : vector<2x128xf32>
    %171 = arith.select %45, %166, %170 : vector<2x128xi1>, vector<2x128xf32>
    %172 = vector.extract_strided_slice %171 {offsets = [0, 0], sizes = [2, 32], strides = [1, 1]} : vector<2x128xf32> to vector<2x32xf32>
    %173 = vector.extract_strided_slice %171 {offsets = [0, 32], sizes = [2, 32], strides = [1, 1]} : vector<2x128xf32> to vector<2x32xf32>
    %174 = vector.extract_strided_slice %171 {offsets = [0, 64], sizes = [2, 32], strides = [1, 1]} : vector<2x128xf32> to vector<2x32xf32>
    %175 = vector.extract_strided_slice %171 {offsets = [0, 96], sizes = [2, 32], strides = [1, 1]} : vector<2x128xf32> to vector<2x32xf32>
    %176 = arith.mulf %173, %150 : vector<2x32xf32>
    %177 = arith.mulf %172, %174 : vector<2x32xf32>
    %178 = arith.addf %176, %177 : vector<2x32xf32>
    %179 = math.tanh %178 : vector<2x32xf32>
    %180 = arith.mulf %175, %179 : vector<2x32xf32>
    %cst_60 = arith.constant 0.000000e+00 : f32
    %181 = vector.broadcast %cst_60 : f32 to vector<2x32xf32>
    %182 = arith.cmpf ogt, %180, %181 : vector<2x32xf32>
    %cst_61 = arith.constant 0.00999999977 : f32
    %183 = vector.broadcast %cst_61 : f32 to vector<2x32xf32>
    %184 = arith.mulf %183, %180 : vector<2x32xf32>
    %185 = arith.select %182, %180, %184 : vector<2x32xi1>, vector<2x32xf32>
    %c304 = arith.constant 304 : index
    %c0_62 = arith.constant 0 : index
    %186 = vector.load %arg3[%c304, %c0_62] : memref<776x128xf32, #tpu.memory_space<vmem>>, vector<32x30xf32>
    %cst_63 = arith.constant dense<0.000000e+00> : vector<2x30xf32>
    %187 = tpu.matmul %185, %186, %cst_63 {dimension_numbers = #tpu.dot_dimension_numbers<[1], [0], [0], [1], [0, 0, 1, 1], [], []>} : vector<2x32xf32>, vector<32x30xf32>, vector<2x30xf32> -> vector<2x30xf32>
    %188 = arith.addf %160, %187 : vector<2x30xf32>
    %cst_64 = arith.constant dense<0.000000e+00> : vector<2x128xf32>
    %189 = tpu.matmul %180, %39, %cst_64 {dimension_numbers = #tpu.dot_dimension_numbers<[1], [0], [0], [1], [0, 0, 1, 1], [], []>} : vector<2x32xf32>, vector<32x128xf32>, vector<2x128xf32> -> vector<2x128xf32>
    %190 = arith.addf %38, %189 : vector<2x128xf32>
    %cst_65 = arith.constant 5.000000e-01 : f32
    %191 = vector.broadcast %cst_65 : f32 to vector<2x128xf32>
    %192 = arith.mulf %191, %190 : vector<2x128xf32>
    %193 = arith.select %45, %190, %192 : vector<2x128xi1>, vector<2x128xf32>
    %194 = math.tanh %193 : vector<2x128xf32>
    %cst_66 = arith.constant 5.000000e-01 : f32
    %195 = vector.broadcast %cst_66 : f32 to vector<2x128xf32>
    %196 = arith.mulf %195, %194 : vector<2x128xf32>
    %cst_67 = arith.constant 5.000000e-01 : f32
    %197 = vector.broadcast %cst_67 : f32 to vector<2x128xf32>
    %198 = arith.addf %196, %197 : vector<2x128xf32>
    %199 = arith.select %45, %194, %198 : vector<2x128xi1>, vector<2x128xf32>
    %200 = vector.extract_strided_slice %199 {offsets = [0, 0], sizes = [2, 32], strides = [1, 1]} : vector<2x128xf32> to vector<2x32xf32>
    %201 = vector.extract_strided_slice %199 {offsets = [0, 32], sizes = [2, 32], strides = [1, 1]} : vector<2x128xf32> to vector<2x32xf32>
    %202 = vector.extract_strided_slice %199 {offsets = [0, 64], sizes = [2, 32], strides = [1, 1]} : vector<2x128xf32> to vector<2x32xf32>
    %203 = vector.extract_strided_slice %199 {offsets = [0, 96], sizes = [2, 32], strides = [1, 1]} : vector<2x128xf32> to vector<2x32xf32>
    %204 = arith.mulf %201, %178 : vector<2x32xf32>
    %205 = arith.mulf %200, %202 : vector<2x32xf32>
    %206 = arith.addf %204, %205 : vector<2x32xf32>
    %207 = math.tanh %206 : vector<2x32xf32>
    %208 = arith.mulf %203, %207 : vector<2x32xf32>
    %cst_68 = arith.constant 0.000000e+00 : f32
    %209 = vector.broadcast %cst_68 : f32 to vector<2x32xf32>
    %210 = arith.cmpf ogt, %208, %209 : vector<2x32xf32>
    %cst_69 = arith.constant 0.00999999977 : f32
    %211 = vector.broadcast %cst_69 : f32 to vector<2x32xf32>
    %212 = arith.mulf %211, %208 : vector<2x32xf32>
    %213 = arith.select %210, %208, %212 : vector<2x32xi1>, vector<2x32xf32>
    %c336 = arith.constant 336 : index
    %c0_70 = arith.constant 0 : index
    %214 = vector.load %arg3[%c336, %c0_70] : memref<776x128xf32, #tpu.memory_space<vmem>>, vector<32x30xf32>
    %cst_71 = arith.constant dense<0.000000e+00> : vector<2x30xf32>
    %215 = tpu.matmul %213, %214, %cst_71 {dimension_numbers = #tpu.dot_dimension_numbers<[1], [0], [0], [1], [0, 0, 1, 1], [], []>} : vector<2x32xf32>, vector<32x30xf32>, vector<2x30xf32> -> vector<2x30xf32>
    %216 = arith.addf %188, %215 : vector<2x30xf32>
    %cst_72 = arith.constant dense<0.000000e+00> : vector<2x128xf32>
    %217 = tpu.matmul %208, %39, %cst_72 {dimension_numbers = #tpu.dot_dimension_numbers<[1], [0], [0], [1], [0, 0, 1, 1], [], []>} : vector<2x32xf32>, vector<32x128xf32>, vector<2x128xf32> -> vector<2x128xf32>
    %218 = arith.addf %38, %217 : vector<2x128xf32>
    %cst_73 = arith.constant 5.000000e-01 : f32
    %219 = vector.broadcast %cst_73 : f32 to vector<2x128xf32>
    %220 = arith.mulf %219, %218 : vector<2x128xf32>
    %221 = arith.select %45, %218, %220 : vector<2x128xi1>, vector<2x128xf32>
    %222 = math.tanh %221 : vector<2x128xf32>
    %cst_74 = arith.constant 5.000000e-01 : f32
    %223 = vector.broadcast %cst_74 : f32 to vector<2x128xf32>
    %224 = arith.mulf %223, %222 : vector<2x128xf32>
    %cst_75 = arith.constant 5.000000e-01 : f32
    %225 = vector.broadcast %cst_75 : f32 to vector<2x128xf32>
    %226 = arith.addf %224, %225 : vector<2x128xf32>
    %227 = arith.select %45, %222, %226 : vector<2x128xi1>, vector<2x128xf32>
    %228 = vector.extract_strided_slice %227 {offsets = [0, 0], sizes = [2, 32], strides = [1, 1]} : vector<2x128xf32> to vector<2x32xf32>
    %229 = vector.extract_strided_slice %227 {offsets = [0, 32], sizes = [2, 32], strides = [1, 1]} : vector<2x128xf32> to vector<2x32xf32>
    %230 = vector.extract_strided_slice %227 {offsets = [0, 64], sizes = [2, 32], strides = [1, 1]} : vector<2x128xf32> to vector<2x32xf32>
    %231 = vector.extract_strided_slice %227 {offsets = [0, 96], sizes = [2, 32], strides = [1, 1]} : vector<2x128xf32> to vector<2x32xf32>
    %232 = arith.mulf %229, %206 : vector<2x32xf32>
    %233 = arith.mulf %228, %230 : vector<2x32xf32>
    %234 = arith.addf %232, %233 : vector<2x32xf32>
    %235 = math.tanh %234 : vector<2x32xf32>
    %236 = arith.mulf %231, %235 : vector<2x32xf32>
    %cst_76 = arith.constant 0.000000e+00 : f32
    %237 = vector.broadcast %cst_76 : f32 to vector<2x32xf32>
    %238 = arith.cmpf ogt, %236, %237 : vector<2x32xf32>
    %cst_77 = arith.constant 0.00999999977 : f32
    %239 = vector.broadcast %cst_77 : f32 to vector<2x32xf32>
    %240 = arith.mulf %239, %236 : vector<2x32xf32>
    %241 = arith.select %238, %236, %240 : vector<2x32xi1>, vector<2x32xf32>
    %c368 = arith.constant 368 : index
    %c0_78 = arith.constant 0 : index
    %242 = vector.load %arg3[%c368, %c0_78] : memref<776x128xf32, #tpu.memory_space<vmem>>, vector<32x30xf32>
    %cst_79 = arith.constant dense<0.000000e+00> : vector<2x30xf32>
    %243 = tpu.matmul %241, %242, %cst_79 {dimension_numbers = #tpu.dot_dimension_numbers<[1], [0], [0], [1], [0, 0, 1, 1], [], []>} : vector<2x32xf32>, vector<32x30xf32>, vector<2x30xf32> -> vector<2x30xf32>
    %244 = arith.addf %216, %243 : vector<2x30xf32>
    %cst_80 = arith.constant dense<0.000000e+00> : vector<2x128xf32>
    %245 = tpu.matmul %236, %39, %cst_80 {dimension_numbers = #tpu.dot_dimension_numbers<[1], [0], [0], [1], [0, 0, 1, 1], [], []>} : vector<2x32xf32>, vector<32x128xf32>, vector<2x128xf32> -> vector<2x128xf32>
    %246 = arith.addf %38, %245 : vector<2x128xf32>
    %cst_81 = arith.constant 5.000000e-01 : f32
    %247 = vector.broadcast %cst_81 : f32 to vector<2x128xf32>
    %248 = arith.mulf %247, %246 : vector<2x128xf32>
    %249 = arith.select %45, %246, %248 : vector<2x128xi1>, vector<2x128xf32>
    %250 = math.tanh %249 : vector<2x128xf32>
    %cst_82 = arith.constant 5.000000e-01 : f32
    %251 = vector.broadcast %cst_82 : f32 to vector<2x128xf32>
    %252 = arith.mulf %251, %250 : vector<2x128xf32>
    %cst_83 = arith.constant 5.000000e-01 : f32
    %253 = vector.broadcast %cst_83 : f32 to vector<2x128xf32>
    %254 = arith.addf %252, %253 : vector<2x128xf32>
    %255 = arith.select %45, %250, %254 : vector<2x128xi1>, vector<2x128xf32>
    %256 = vector.extract_strided_slice %255 {offsets = [0, 0], sizes = [2, 32], strides = [1, 1]} : vector<2x128xf32> to vector<2x32xf32>
    %257 = vector.extract_strided_slice %255 {offsets = [0, 32], sizes = [2, 32], strides = [1, 1]} : vector<2x128xf32> to vector<2x32xf32>
    %258 = vector.extract_strided_slice %255 {offsets = [0, 64], sizes = [2, 32], strides = [1, 1]} : vector<2x128xf32> to vector<2x32xf32>
    %259 = vector.extract_strided_slice %255 {offsets = [0, 96], sizes = [2, 32], strides = [1, 1]} : vector<2x128xf32> to vector<2x32xf32>
    %260 = arith.mulf %257, %234 : vector<2x32xf32>
    %261 = arith.mulf %256, %258 : vector<2x32xf32>
    %262 = arith.addf %260, %261 : vector<2x32xf32>
    %263 = math.tanh %262 : vector<2x32xf32>
    %264 = arith.mulf %259, %263 : vector<2x32xf32>
    %cst_84 = arith.constant 0.000000e+00 : f32
    %265 = vector.broadcast %cst_84 : f32 to vector<2x32xf32>
    %266 = arith.cmpf ogt, %264, %265 : vector<2x32xf32>
    %cst_85 = arith.constant 0.00999999977 : f32
    %267 = vector.broadcast %cst_85 : f32 to vector<2x32xf32>
    %268 = arith.mulf %267, %264 : vector<2x32xf32>
    %269 = arith.select %266, %264, %268 : vector<2x32xi1>, vector<2x32xf32>
    %c400 = arith.constant 400 : index
    %c0_86 = arith.constant 0 : index
    %270 = vector.load %arg3[%c400, %c0_86] : memref<776x128xf32, #tpu.memory_space<vmem>>, vector<32x30xf32>
    %cst_87 = arith.constant dense<0.000000e+00> : vector<2x30xf32>
    %271 = tpu.matmul %269, %270, %cst_87 {dimension_numbers = #tpu.dot_dimension_numbers<[1], [0], [0], [1], [0, 0, 1, 1], [], []>} : vector<2x32xf32>, vector<32x30xf32>, vector<2x30xf32> -> vector<2x30xf32>
    %272 = arith.addf %244, %271 : vector<2x30xf32>
    %cst_88 = arith.constant dense<0.000000e+00> : vector<2x128xf32>
    %273 = tpu.matmul %264, %39, %cst_88 {dimension_numbers = #tpu.dot_dimension_numbers<[1], [0], [0], [1], [0, 0, 1, 1], [], []>} : vector<2x32xf32>, vector<32x128xf32>, vector<2x128xf32> -> vector<2x128xf32>
    %274 = arith.addf %38, %273 : vector<2x128xf32>
    %cst_89 = arith.constant 5.000000e-01 : f32
    %275 = vector.broadcast %cst_89 : f32 to vector<2x128xf32>
    %276 = arith.mulf %275, %274 : vector<2x128xf32>
    %277 = arith.select %45, %274, %276 : vector<2x128xi1>, vector<2x128xf32>
    %278 = math.tanh %277 : vector<2x128xf32>
    %cst_90 = arith.constant 5.000000e-01 : f32
    %279 = vector.broadcast %cst_90 : f32 to vector<2x128xf32>
    %280 = arith.mulf %279, %278 : vector<2x128xf32>
    %cst_91 = arith.constant 5.000000e-01 : f32
    %281 = vector.broadcast %cst_91 : f32 to vector<2x128xf32>
    %282 = arith.addf %280, %281 : vector<2x128xf32>
    %283 = arith.select %45, %278, %282 : vector<2x128xi1>, vector<2x128xf32>
    %284 = vector.extract_strided_slice %283 {offsets = [0, 0], sizes = [2, 32], strides = [1, 1]} : vector<2x128xf32> to vector<2x32xf32>
    %285 = vector.extract_strided_slice %283 {offsets = [0, 32], sizes = [2, 32], strides = [1, 1]} : vector<2x128xf32> to vector<2x32xf32>
    %286 = vector.extract_strided_slice %283 {offsets = [0, 64], sizes = [2, 32], strides = [1, 1]} : vector<2x128xf32> to vector<2x32xf32>
    %287 = vector.extract_strided_slice %283 {offsets = [0, 96], sizes = [2, 32], strides = [1, 1]} : vector<2x128xf32> to vector<2x32xf32>
    %288 = arith.mulf %285, %262 : vector<2x32xf32>
    %289 = arith.mulf %284, %286 : vector<2x32xf32>
    %290 = arith.addf %288, %289 : vector<2x32xf32>
    %291 = math.tanh %290 : vector<2x32xf32>
    %292 = arith.mulf %287, %291 : vector<2x32xf32>
    %cst_92 = arith.constant 0.000000e+00 : f32
    %293 = vector.broadcast %cst_92 : f32 to vector<2x32xf32>
    %294 = arith.cmpf ogt, %292, %293 : vector<2x32xf32>
    %cst_93 = arith.constant 0.00999999977 : f32
    %295 = vector.broadcast %cst_93 : f32 to vector<2x32xf32>
    %296 = arith.mulf %295, %292 : vector<2x32xf32>
    %297 = arith.select %294, %292, %296 : vector<2x32xi1>, vector<2x32xf32>
    %c432 = arith.constant 432 : index
    %c0_94 = arith.constant 0 : index
    %298 = vector.load %arg3[%c432, %c0_94] : memref<776x128xf32, #tpu.memory_space<vmem>>, vector<32x30xf32>
    %cst_95 = arith.constant dense<0.000000e+00> : vector<2x30xf32>
    %299 = tpu.matmul %297, %298, %cst_95 {dimension_numbers = #tpu.dot_dimension_numbers<[1], [0], [0], [1], [0, 0, 1, 1], [], []>} : vector<2x32xf32>, vector<32x30xf32>, vector<2x30xf32> -> vector<2x30xf32>
    %300 = arith.addf %272, %299 : vector<2x30xf32>
    %cst_96 = arith.constant dense<0.000000e+00> : vector<2x128xf32>
    %301 = tpu.matmul %292, %39, %cst_96 {dimension_numbers = #tpu.dot_dimension_numbers<[1], [0], [0], [1], [0, 0, 1, 1], [], []>} : vector<2x32xf32>, vector<32x128xf32>, vector<2x128xf32> -> vector<2x128xf32>
    %302 = arith.addf %38, %301 : vector<2x128xf32>
    %cst_97 = arith.constant 5.000000e-01 : f32
    %303 = vector.broadcast %cst_97 : f32 to vector<2x128xf32>
    %304 = arith.mulf %303, %302 : vector<2x128xf32>
    %305 = arith.select %45, %302, %304 : vector<2x128xi1>, vector<2x128xf32>
    %306 = math.tanh %305 : vector<2x128xf32>
    %cst_98 = arith.constant 5.000000e-01 : f32
    %307 = vector.broadcast %cst_98 : f32 to vector<2x128xf32>
    %308 = arith.mulf %307, %306 : vector<2x128xf32>
    %cst_99 = arith.constant 5.000000e-01 : f32
    %309 = vector.broadcast %cst_99 : f32 to vector<2x128xf32>
    %310 = arith.addf %308, %309 : vector<2x128xf32>
    %311 = arith.select %45, %306, %310 : vector<2x128xi1>, vector<2x128xf32>
    %312 = vector.extract_strided_slice %311 {offsets = [0, 0], sizes = [2, 32], strides = [1, 1]} : vector<2x128xf32> to vector<2x32xf32>
    %313 = vector.extract_strided_slice %311 {offsets = [0, 32], sizes = [2, 32], strides = [1, 1]} : vector<2x128xf32> to vector<2x32xf32>
    %314 = vector.extract_strided_slice %311 {offsets = [0, 64], sizes = [2, 32], strides = [1, 1]} : vector<2x128xf32> to vector<2x32xf32>
    %315 = vector.extract_strided_slice %311 {offsets = [0, 96], sizes = [2, 32], strides = [1, 1]} : vector<2x128xf32> to vector<2x32xf32>
    %316 = arith.mulf %313, %290 : vector<2x32xf32>
    %317 = arith.mulf %312, %314 : vector<2x32xf32>
    %318 = arith.addf %316, %317 : vector<2x32xf32>
    %319 = math.tanh %318 : vector<2x32xf32>
    %320 = arith.mulf %315, %319 : vector<2x32xf32>
    %cst_100 = arith.constant 0.000000e+00 : f32
    %321 = vector.broadcast %cst_100 : f32 to vector<2x32xf32>
    %322 = arith.cmpf ogt, %320, %321 : vector<2x32xf32>
    %cst_101 = arith.constant 0.00999999977 : f32
    %323 = vector.broadcast %cst_101 : f32 to vector<2x32xf32>
    %324 = arith.mulf %323, %320 : vector<2x32xf32>
    %325 = arith.select %322, %320, %324 : vector<2x32xi1>, vector<2x32xf32>
    %c464 = arith.constant 464 : index
    %c0_102 = arith.constant 0 : index
    %326 = vector.load %arg3[%c464, %c0_102] : memref<776x128xf32, #tpu.memory_space<vmem>>, vector<32x30xf32>
    %cst_103 = arith.constant dense<0.000000e+00> : vector<2x30xf32>
    %327 = tpu.matmul %325, %326, %cst_103 {dimension_numbers = #tpu.dot_dimension_numbers<[1], [0], [0], [1], [0, 0, 1, 1], [], []>} : vector<2x32xf32>, vector<32x30xf32>, vector<2x30xf32> -> vector<2x30xf32>
    %328 = arith.addf %300, %327 : vector<2x30xf32>
    %cst_104 = arith.constant dense<0.000000e+00> : vector<2x128xf32>
    %329 = tpu.matmul %320, %39, %cst_104 {dimension_numbers = #tpu.dot_dimension_numbers<[1], [0], [0], [1], [0, 0, 1, 1], [], []>} : vector<2x32xf32>, vector<32x128xf32>, vector<2x128xf32> -> vector<2x128xf32>
    %330 = arith.addf %38, %329 : vector<2x128xf32>
    %cst_105 = arith.constant 5.000000e-01 : f32
    %331 = vector.broadcast %cst_105 : f32 to vector<2x128xf32>
    %332 = arith.mulf %331, %330 : vector<2x128xf32>
    %333 = arith.select %45, %330, %332 : vector<2x128xi1>, vector<2x128xf32>
    %334 = math.tanh %333 : vector<2x128xf32>
    %cst_106 = arith.constant 5.000000e-01 : f32
    %335 = vector.broadcast %cst_106 : f32 to vector<2x128xf32>
    %336 = arith.mulf %335, %334 : vector<2x128xf32>
    %cst_107 = arith.constant 5.000000e-01 : f32
    %337 = vector.broadcast %cst_107 : f32 to vector<2x128xf32>
    %338 = arith.addf %336, %337 : vector<2x128xf32>
    %339 = arith.select %45, %334, %338 : vector<2x128xi1>, vector<2x128xf32>
    %340 = vector.extract_strided_slice %339 {offsets = [0, 0], sizes = [2, 32], strides = [1, 1]} : vector<2x128xf32> to vector<2x32xf32>
    %341 = vector.extract_strided_slice %339 {offsets = [0, 32], sizes = [2, 32], strides = [1, 1]} : vector<2x128xf32> to vector<2x32xf32>
    %342 = vector.extract_strided_slice %339 {offsets = [0, 64], sizes = [2, 32], strides = [1, 1]} : vector<2x128xf32> to vector<2x32xf32>
    %343 = vector.extract_strided_slice %339 {offsets = [0, 96], sizes = [2, 32], strides = [1, 1]} : vector<2x128xf32> to vector<2x32xf32>
    %344 = arith.mulf %341, %318 : vector<2x32xf32>
    %345 = arith.mulf %340, %342 : vector<2x32xf32>
    %346 = arith.addf %344, %345 : vector<2x32xf32>
    %347 = math.tanh %346 : vector<2x32xf32>
    %348 = arith.mulf %343, %347 : vector<2x32xf32>
    %cst_108 = arith.constant 0.000000e+00 : f32
    %349 = vector.broadcast %cst_108 : f32 to vector<2x32xf32>
    %350 = arith.cmpf ogt, %348, %349 : vector<2x32xf32>
    %cst_109 = arith.constant 0.00999999977 : f32
    %351 = vector.broadcast %cst_109 : f32 to vector<2x32xf32>
    %352 = arith.mulf %351, %348 : vector<2x32xf32>
    %353 = arith.select %350, %348, %352 : vector<2x32xi1>, vector<2x32xf32>
    %c496 = arith.constant 496 : index
    %c0_110 = arith.constant 0 : index
    %354 = vector.load %arg3[%c496, %c0_110] : memref<776x128xf32, #tpu.memory_space<vmem>>, vector<32x30xf32>
    %cst_111 = arith.constant dense<0.000000e+00> : vector<2x30xf32>
    %355 = tpu.matmul %353, %354, %cst_111 {dimension_numbers = #tpu.dot_dimension_numbers<[1], [0], [0], [1], [0, 0, 1, 1], [], []>} : vector<2x32xf32>, vector<32x30xf32>, vector<2x30xf32> -> vector<2x30xf32>
    %356 = arith.addf %328, %355 : vector<2x30xf32>
    %cst_112 = arith.constant dense<0.000000e+00> : vector<2x128xf32>
    %357 = tpu.matmul %348, %39, %cst_112 {dimension_numbers = #tpu.dot_dimension_numbers<[1], [0], [0], [1], [0, 0, 1, 1], [], []>} : vector<2x32xf32>, vector<32x128xf32>, vector<2x128xf32> -> vector<2x128xf32>
    %358 = arith.addf %38, %357 : vector<2x128xf32>
    %cst_113 = arith.constant 5.000000e-01 : f32
    %359 = vector.broadcast %cst_113 : f32 to vector<2x128xf32>
    %360 = arith.mulf %359, %358 : vector<2x128xf32>
    %361 = arith.select %45, %358, %360 : vector<2x128xi1>, vector<2x128xf32>
    %362 = math.tanh %361 : vector<2x128xf32>
    %cst_114 = arith.constant 5.000000e-01 : f32
    %363 = vector.broadcast %cst_114 : f32 to vector<2x128xf32>
    %364 = arith.mulf %363, %362 : vector<2x128xf32>
    %cst_115 = arith.constant 5.000000e-01 : f32
    %365 = vector.broadcast %cst_115 : f32 to vector<2x128xf32>
    %366 = arith.addf %364, %365 : vector<2x128xf32>
    %367 = arith.select %45, %362, %366 : vector<2x128xi1>, vector<2x128xf32>
    %368 = vector.extract_strided_slice %367 {offsets = [0, 0], sizes = [2, 32], strides = [1, 1]} : vector<2x128xf32> to vector<2x32xf32>
    %369 = vector.extract_strided_slice %367 {offsets = [0, 32], sizes = [2, 32], strides = [1, 1]} : vector<2x128xf32> to vector<2x32xf32>
    %370 = vector.extract_strided_slice %367 {offsets = [0, 64], sizes = [2, 32], strides = [1, 1]} : vector<2x128xf32> to vector<2x32xf32>
    %371 = vector.extract_strided_slice %367 {offsets = [0, 96], sizes = [2, 32], strides = [1, 1]} : vector<2x128xf32> to vector<2x32xf32>
    %372 = arith.mulf %369, %346 : vector<2x32xf32>
    %373 = arith.mulf %368, %370 : vector<2x32xf32>
    %374 = arith.addf %372, %373 : vector<2x32xf32>
    %375 = math.tanh %374 : vector<2x32xf32>
    %376 = arith.mulf %371, %375 : vector<2x32xf32>
    %cst_116 = arith.constant 0.000000e+00 : f32
    %377 = vector.broadcast %cst_116 : f32 to vector<2x32xf32>
    %378 = arith.cmpf ogt, %376, %377 : vector<2x32xf32>
    %cst_117 = arith.constant 0.00999999977 : f32
    %379 = vector.broadcast %cst_117 : f32 to vector<2x32xf32>
    %380 = arith.mulf %379, %376 : vector<2x32xf32>
    %381 = arith.select %378, %376, %380 : vector<2x32xi1>, vector<2x32xf32>
    %c528 = arith.constant 528 : index
    %c0_118 = arith.constant 0 : index
    %382 = vector.load %arg3[%c528, %c0_118] : memref<776x128xf32, #tpu.memory_space<vmem>>, vector<32x30xf32>
    %cst_119 = arith.constant dense<0.000000e+00> : vector<2x30xf32>
    %383 = tpu.matmul %381, %382, %cst_119 {dimension_numbers = #tpu.dot_dimension_numbers<[1], [0], [0], [1], [0, 0, 1, 1], [], []>} : vector<2x32xf32>, vector<32x30xf32>, vector<2x30xf32> -> vector<2x30xf32>
    %384 = arith.addf %356, %383 : vector<2x30xf32>
    %cst_120 = arith.constant dense<0.000000e+00> : vector<2x128xf32>
    %385 = tpu.matmul %376, %39, %cst_120 {dimension_numbers = #tpu.dot_dimension_numbers<[1], [0], [0], [1], [0, 0, 1, 1], [], []>} : vector<2x32xf32>, vector<32x128xf32>, vector<2x128xf32> -> vector<2x128xf32>
    %386 = arith.addf %38, %385 : vector<2x128xf32>
    %cst_121 = arith.constant 5.000000e-01 : f32
    %387 = vector.broadcast %cst_121 : f32 to vector<2x128xf32>
    %388 = arith.mulf %387, %386 : vector<2x128xf32>
    %389 = arith.select %45, %386, %388 : vector<2x128xi1>, vector<2x128xf32>
    %390 = math.tanh %389 : vector<2x128xf32>
    %cst_122 = arith.constant 5.000000e-01 : f32
    %391 = vector.broadcast %cst_122 : f32 to vector<2x128xf32>
    %392 = arith.mulf %391, %390 : vector<2x128xf32>
    %cst_123 = arith.constant 5.000000e-01 : f32
    %393 = vector.broadcast %cst_123 : f32 to vector<2x128xf32>
    %394 = arith.addf %392, %393 : vector<2x128xf32>
    %395 = arith.select %45, %390, %394 : vector<2x128xi1>, vector<2x128xf32>
    %396 = vector.extract_strided_slice %395 {offsets = [0, 0], sizes = [2, 32], strides = [1, 1]} : vector<2x128xf32> to vector<2x32xf32>
    %397 = vector.extract_strided_slice %395 {offsets = [0, 32], sizes = [2, 32], strides = [1, 1]} : vector<2x128xf32> to vector<2x32xf32>
    %398 = vector.extract_strided_slice %395 {offsets = [0, 64], sizes = [2, 32], strides = [1, 1]} : vector<2x128xf32> to vector<2x32xf32>
    %399 = vector.extract_strided_slice %395 {offsets = [0, 96], sizes = [2, 32], strides = [1, 1]} : vector<2x128xf32> to vector<2x32xf32>
    %400 = arith.mulf %397, %374 : vector<2x32xf32>
    %401 = arith.mulf %396, %398 : vector<2x32xf32>
    %402 = arith.addf %400, %401 : vector<2x32xf32>
    %403 = math.tanh %402 : vector<2x32xf32>
    %404 = arith.mulf %399, %403 : vector<2x32xf32>
    %cst_124 = arith.constant 0.000000e+00 : f32
    %405 = vector.broadcast %cst_124 : f32 to vector<2x32xf32>
    %406 = arith.cmpf ogt, %404, %405 : vector<2x32xf32>
    %cst_125 = arith.constant 0.00999999977 : f32
    %407 = vector.broadcast %cst_125 : f32 to vector<2x32xf32>
    %408 = arith.mulf %407, %404 : vector<2x32xf32>
    %409 = arith.select %406, %404, %408 : vector<2x32xi1>, vector<2x32xf32>
    %c560 = arith.constant 560 : index
    %c0_126 = arith.constant 0 : index
    %410 = vector.load %arg3[%c560, %c0_126] : memref<776x128xf32, #tpu.memory_space<vmem>>, vector<32x30xf32>
    %cst_127 = arith.constant dense<0.000000e+00> : vector<2x30xf32>
    %411 = tpu.matmul %409, %410, %cst_127 {dimension_numbers = #tpu.dot_dimension_numbers<[1], [0], [0], [1], [0, 0, 1, 1], [], []>} : vector<2x32xf32>, vector<32x30xf32>, vector<2x30xf32> -> vector<2x30xf32>
    %412 = arith.addf %384, %411 : vector<2x30xf32>
    %cst_128 = arith.constant dense<0.000000e+00> : vector<2x128xf32>
    %413 = tpu.matmul %404, %39, %cst_128 {dimension_numbers = #tpu.dot_dimension_numbers<[1], [0], [0], [1], [0, 0, 1, 1], [], []>} : vector<2x32xf32>, vector<32x128xf32>, vector<2x128xf32> -> vector<2x128xf32>
    %414 = arith.addf %38, %413 : vector<2x128xf32>
    %cst_129 = arith.constant 5.000000e-01 : f32
    %415 = vector.broadcast %cst_129 : f32 to vector<2x128xf32>
    %416 = arith.mulf %415, %414 : vector<2x128xf32>
    %417 = arith.select %45, %414, %416 : vector<2x128xi1>, vector<2x128xf32>
    %418 = math.tanh %417 : vector<2x128xf32>
    %cst_130 = arith.constant 5.000000e-01 : f32
    %419 = vector.broadcast %cst_130 : f32 to vector<2x128xf32>
    %420 = arith.mulf %419, %418 : vector<2x128xf32>
    %cst_131 = arith.constant 5.000000e-01 : f32
    %421 = vector.broadcast %cst_131 : f32 to vector<2x128xf32>
    %422 = arith.addf %420, %421 : vector<2x128xf32>
    %423 = arith.select %45, %418, %422 : vector<2x128xi1>, vector<2x128xf32>
    %424 = vector.extract_strided_slice %423 {offsets = [0, 0], sizes = [2, 32], strides = [1, 1]} : vector<2x128xf32> to vector<2x32xf32>
    %425 = vector.extract_strided_slice %423 {offsets = [0, 32], sizes = [2, 32], strides = [1, 1]} : vector<2x128xf32> to vector<2x32xf32>
    %426 = vector.extract_strided_slice %423 {offsets = [0, 64], sizes = [2, 32], strides = [1, 1]} : vector<2x128xf32> to vector<2x32xf32>
    %427 = vector.extract_strided_slice %423 {offsets = [0, 96], sizes = [2, 32], strides = [1, 1]} : vector<2x128xf32> to vector<2x32xf32>
    %428 = arith.mulf %425, %402 : vector<2x32xf32>
    %429 = arith.mulf %424, %426 : vector<2x32xf32>
    %430 = arith.addf %428, %429 : vector<2x32xf32>
    %431 = math.tanh %430 : vector<2x32xf32>
    %432 = arith.mulf %427, %431 : vector<2x32xf32>
    %cst_132 = arith.constant 0.000000e+00 : f32
    %433 = vector.broadcast %cst_132 : f32 to vector<2x32xf32>
    %434 = arith.cmpf ogt, %432, %433 : vector<2x32xf32>
    %cst_133 = arith.constant 0.00999999977 : f32
    %435 = vector.broadcast %cst_133 : f32 to vector<2x32xf32>
    %436 = arith.mulf %435, %432 : vector<2x32xf32>
    %437 = arith.select %434, %432, %436 : vector<2x32xi1>, vector<2x32xf32>
    %c592 = arith.constant 592 : index
    %c0_134 = arith.constant 0 : index
    %438 = vector.load %arg3[%c592, %c0_134] : memref<776x128xf32, #tpu.memory_space<vmem>>, vector<32x30xf32>
    %cst_135 = arith.constant dense<0.000000e+00> : vector<2x30xf32>
    %439 = tpu.matmul %437, %438, %cst_135 {dimension_numbers = #tpu.dot_dimension_numbers<[1], [0], [0], [1], [0, 0, 1, 1], [], []>} : vector<2x32xf32>, vector<32x30xf32>, vector<2x30xf32> -> vector<2x30xf32>
    %440 = arith.addf %412, %439 : vector<2x30xf32>
    %cst_136 = arith.constant dense<0.000000e+00> : vector<2x128xf32>
    %441 = tpu.matmul %432, %39, %cst_136 {dimension_numbers = #tpu.dot_dimension_numbers<[1], [0], [0], [1], [0, 0, 1, 1], [], []>} : vector<2x32xf32>, vector<32x128xf32>, vector<2x128xf32> -> vector<2x128xf32>
    %442 = arith.addf %38, %441 : vector<2x128xf32>
    %cst_137 = arith.constant 5.000000e-01 : f32
    %443 = vector.broadcast %cst_137 : f32 to vector<2x128xf32>
    %444 = arith.mulf %443, %442 : vector<2x128xf32>
    %445 = arith.select %45, %442, %444 : vector<2x128xi1>, vector<2x128xf32>
    %446 = math.tanh %445 : vector<2x128xf32>
    %cst_138 = arith.constant 5.000000e-01 : f32
    %447 = vector.broadcast %cst_138 : f32 to vector<2x128xf32>
    %448 = arith.mulf %447, %446 : vector<2x128xf32>
    %cst_139 = arith.constant 5.000000e-01 : f32
    %449 = vector.broadcast %cst_139 : f32 to vector<2x128xf32>
    %450 = arith.addf %448, %449 : vector<2x128xf32>
    %451 = arith.select %45, %446, %450 : vector<2x128xi1>, vector<2x128xf32>
    %452 = vector.extract_strided_slice %451 {offsets = [0, 0], sizes = [2, 32], strides = [1, 1]} : vector<2x128xf32> to vector<2x32xf32>
    %453 = vector.extract_strided_slice %451 {offsets = [0, 32], sizes = [2, 32], strides = [1, 1]} : vector<2x128xf32> to vector<2x32xf32>
    %454 = vector.extract_strided_slice %451 {offsets = [0, 64], sizes = [2, 32], strides = [1, 1]} : vector<2x128xf32> to vector<2x32xf32>
    %455 = vector.extract_strided_slice %451 {offsets = [0, 96], sizes = [2, 32], strides = [1, 1]} : vector<2x128xf32> to vector<2x32xf32>
    %456 = arith.mulf %453, %430 : vector<2x32xf32>
    %457 = arith.mulf %452, %454 : vector<2x32xf32>
    %458 = arith.addf %456, %457 : vector<2x32xf32>
    %459 = math.tanh %458 : vector<2x32xf32>
    %460 = arith.mulf %455, %459 : vector<2x32xf32>
    %cst_140 = arith.constant 0.000000e+00 : f32
    %461 = vector.broadcast %cst_140 : f32 to vector<2x32xf32>
    %462 = arith.cmpf ogt, %460, %461 : vector<2x32xf32>
    %cst_141 = arith.constant 0.00999999977 : f32
    %463 = vector.broadcast %cst_141 : f32 to vector<2x32xf32>
    %464 = arith.mulf %463, %460 : vector<2x32xf32>
    %465 = arith.select %462, %460, %464 : vector<2x32xi1>, vector<2x32xf32>
    %c624 = arith.constant 624 : index
    %c0_142 = arith.constant 0 : index
    %466 = vector.load %arg3[%c624, %c0_142] : memref<776x128xf32, #tpu.memory_space<vmem>>, vector<32x30xf32>
    %cst_143 = arith.constant dense<0.000000e+00> : vector<2x30xf32>
    %467 = tpu.matmul %465, %466, %cst_143 {dimension_numbers = #tpu.dot_dimension_numbers<[1], [0], [0], [1], [0, 0, 1, 1], [], []>} : vector<2x32xf32>, vector<32x30xf32>, vector<2x30xf32> -> vector<2x30xf32>
    %468 = arith.addf %440, %467 : vector<2x30xf32>
    %469 = vector.extract_strided_slice %27 {offsets = [0, 0], sizes = [2, 30], strides = [1, 1]} : vector<2x33xf32> to vector<2x30xf32>
    %470 = arith.addf %469, %468 : vector<2x30xf32>
    %c656 = arith.constant 656 : index
    %c0_144 = arith.constant 0 : index
    %471 = vector.load %arg3[%c656, %c0_144] : memref<776x128xf32, #tpu.memory_space<vmem>>, vector<1x30xf32>
    %472 = vector.broadcast %471 : vector<1x30xf32> to vector<2x30xf32>
    %473 = arith.addf %470, %472 : vector<2x30xf32>
    %c664 = arith.constant 664 : index
    %c0_145 = arith.constant 0 : index
    %474 = vector.load %arg3[%c664, %c0_145] : memref<776x128xf32, #tpu.memory_space<vmem>>, vector<30x3xf32>
    %cst_146 = arith.constant dense<0.000000e+00> : vector<2x3xf32>
    %475 = tpu.matmul %473, %474, %cst_146 {dimension_numbers = #tpu.dot_dimension_numbers<[1], [0], [0], [1], [0, 0, 1, 1], [], []>} : vector<2x30xf32>, vector<30x3xf32>, vector<2x3xf32> -> vector<2x3xf32>
    %c696 = arith.constant 696 : index
    %c0_147 = arith.constant 0 : index
    %476 = vector.load %arg3[%c696, %c0_147] : memref<776x128xf32, #tpu.memory_space<vmem>>, vector<1x3xf32>
    %477 = vector.broadcast %476 : vector<1x3xf32> to vector<2x3xf32>
    %478 = arith.addf %475, %477 : vector<2x3xf32>
    %cst_148 = arith.constant dense<0xFF800000> : vector<2xf32>
    %479 = vector.multi_reduction <maximumf>, %478, %cst_148 [1] : vector<2x3xf32> to vector<2xf32>
    %480 = vector.shape_cast %479 : vector<2xf32> to vector<2x1xf32>
    %481 = vector.broadcast %480 : vector<2x1xf32> to vector<2x3xf32>
    %482 = arith.subf %478, %481 : vector<2x3xf32>
    %483 = math.exp %482 : vector<2x3xf32>
    %cst_149 = arith.constant dense<0.000000e+00> : vector<2xf32>
    %484 = vector.multi_reduction <add>, %483, %cst_149 [1] : vector<2x3xf32> to vector<2xf32>
    %485 = vector.shape_cast %484 : vector<2xf32> to vector<2x1xf32>
    %486 = tpu.reciprocal %485 {approx = true} : vector<2x1xf32> -> vector<2x1xf32>
    %487 = vector.broadcast %486 : vector<2x1xf32> to vector<2x3xf32>
    %488 = arith.mulf %483, %487 : vector<2x3xf32>
    %489 = vector.extract_strided_slice %27 {offsets = [0, 30], sizes = [2, 3], strides = [1, 1]} : vector<2x33xf32> to vector<2x3xf32>
    %c704 = arith.constant 704 : index
    %c0_150 = arith.constant 0 : index
    %490 = vector.load %arg3[%c704, %c0_150] : memref<776x128xf32, #tpu.memory_space<vmem>>, vector<3x3xf32>
    %cst_151 = arith.constant dense<0.000000e+00> : vector<2x3xf32>
    %491 = tpu.matmul %488, %490, %cst_151 {dimension_numbers = #tpu.dot_dimension_numbers<[1], [0], [0], [1], [0, 0, 1, 1], [], []>} : vector<2x3xf32>, vector<3x3xf32>, vector<2x3xf32> -> vector<2x3xf32>
    %492 = arith.addf %489, %491 : vector<2x3xf32>
    %cst_152 = arith.constant dense<0xFF800000> : vector<2xf32>
    %493 = vector.multi_reduction <maximumf>, %492, %cst_152 [1] : vector<2x3xf32> to vector<2xf32>
    %494 = vector.shape_cast %493 : vector<2xf32> to vector<2x1xf32>
    %495 = vector.broadcast %494 : vector<2x1xf32> to vector<2x3xf32>
    %496 = arith.subf %492, %495 : vector<2x3xf32>
    %497 = math.exp %496 : vector<2x3xf32>
    %cst_153 = arith.constant dense<0.000000e+00> : vector<2xf32>
    %498 = vector.multi_reduction <add>, %497, %cst_153 [1] : vector<2x3xf32> to vector<2xf32>
    %499 = vector.shape_cast %498 : vector<2xf32> to vector<2x1xf32>
    %500 = tpu.reciprocal %499 {approx = true} : vector<2x1xf32> -> vector<2x1xf32>
    %501 = vector.broadcast %500 : vector<2x1xf32> to vector<2x3xf32>
    %502 = arith.mulf %497, %501 : vector<2x3xf32>
    %cst_154 = arith.constant 0.000000e+00 : f32
    %503 = vector.broadcast %cst_154 : f32 to vector<2x95xf32>
    %504 = tpu.concatenate %473, %502, %503 in 1 : vector<2x30xf32>, vector<2x3xf32>, vector<2x95xf32> -> vector<2x128xf32>
    %c0_155 = arith.constant 0 : index
    %c0_156 = arith.constant 0 : index
    %505 = vector.load %arg4[%c0_155, %c0_156] : memref<2x128xf32, #tpu.memory_space<vmem>>, vector<2x128xf32>
    tpu.vector_store %arg4[%c0_155, %c0_156], %504 {strides = array<i32>} : memref<2x128xf32, #tpu.memory_space<vmem>>, vector<2x128xf32>,
    return
  }
  func.func @transform_0(%arg0: i32) -> (i32, i32) {
    %c0_i32 = arith.constant 0 : i32
    %c0_i32_0 = arith.constant 0 : i32
    return %arg0, %c0_i32 : i32, i32
  }
  func.func @transform_1(%arg0: i32) -> (i32, i32) {
    %c0_i32 = arith.constant 0 : i32
    %c0_i32_0 = arith.constant 0 : i32
    return %arg0, %c0_i32 : i32, i32
  }
  func.func @transform_2(%arg0: i32) -> (i32, i32) {
    %c0_i32 = arith.constant 0 : i32
    %c0_i32_0 = arith.constant 0 : i32
    %c0_i32_1 = arith.constant 0 : i32
    return %c0_i32, %c0_i32_0 : i32, i32
  }
  func.func @transform_3(%arg0: i32) -> (i32, i32) {
    %c0_i32 = arith.constant 0 : i32
    %c0_i32_0 = arith.constant 0 : i32
    return %arg0, %c0_i32 : i32, i32
  }
}

</mosaic_0001>

<bundles_post_ra>
// kernel: forward.1
= control target key start
LH: loop header
LB: loop body
LE: loop exit
PB: predicated region body
PF: predicated region fallthrough
CT: control target
= control target key end

     0   :  { %vm278_vm0 = vcmask 1043456   ;;  %vm85_vm1 = vcmask 293888   ;;  %vm699_vm11 = vcmask 523264   ;;  %vm664_vm15 = vcmask 64512   ;;  %s2304_s7 = smov 64   ;;  %s2305_s8 = smov 32   ;;  %s3384_s2 = inlined_call_operand.vmem [shape: f32[776,128], index: 2, kind: input, shape index: {}]   ;;  %s3385_s1 = inlined_call_operand.vmem [shape: f32[512,36], index: 1, kind: input, shape index: {}]   ;;  %s3386_s0 = inlined_call_operand.vmem [shape: f32[2,64], index: 0, kind: input, shape index: {}]   ;;  %s3387_s3 = inlined_call_operand.vmem [shape: f32[2,128], index: 3, kind: output, shape index: {}]  }
   0x1   :  { %v82_v0 = vld [vmem:[%s3384_s2 + $0x2e8] sm:$0xf]  ;;  %v81_v1 = vld [vmem:[%s3384_s2 + $0x2e0] sm:$0xff]  ;;  %v80_v2 = vld [vmem:[%s3384_s2 + $0x2d8] sm:$0xff]  ;;  %s2306_s16 = smov 30  }
   0x2   :  { %2098 = vmatpush.msk.msra.mxu0 %vm278_vm0, %v82_v0  ;;  %2205 = vmatpush.msk.msra.mxu3 %vm278_vm0, %v82_v0  ;;  %v79_v3 = vld [vmem:[%s3384_s2 + $0x2d0] sm:$0xff]  ;;  %v78_v4 = vld [vmem:[%s3384_s2 + $0x2c8] sm:$0xff]  ;;  %v14_v5 = vld [vmem:[%s3385_s1] sm:$0xff] }
   0x3   :  { %2203 = vmatpush.msk.msra.mxu1 %vm278_vm0, %v82_v0  ;;  %2204 = vmatpush.msk.msra.mxu2 %vm278_vm0, %v82_v0  ;;  %v15_v6 = vld [vmem:[%s3385_s1 + $0x8] sm:$0xff]  ;;  %v64_v7 = vld [vmem:[%s3385_s1 + $0x190] sm:$0xff]  ;;  %v65_v9 = vld [vmem:[%s3385_s1 + $0x198] sm:$0xff] }
   0x4   :  { %294 = vmatpush.msra.mxu0 %v81_v1  ;;  %2208 = vmatpush.msra.mxu3 %v81_v1  ;;  %v16_v8 = vld [vmem:[%s3385_s1 + $0x10] sm:$0xff]  ;;  %v43_v10 = vld [vmem:[%s3385_s1 + $0xe8] sm:$0xff]  ;;  %v17_v11 = vld [vmem:[%s3385_s1 + $0x18] sm:$0xff] }
   0x5   :  { %2206 = vmatpush.msra.mxu1 %v81_v1  ;;  %2207 = vmatpush.msra.mxu2 %v81_v1  ;;  %v66_v12 = vld [vmem:[%s3385_s1 + $0x1a0] sm:$0xff]  ;;  %v55_v13 = vld [vmem:[%s3385_s1 + $0x148] sm:$0xff]  ;;  %v44_v14 = vld [vmem:[%s3385_s1 + $0xf0] sm:$0xff] }
   0x6   :  { %295 = vmatpush.msra.mxu0 %v80_v2  ;;  %2211 = vmatpush.msra.mxu3 %v80_v2  ;;  %v18_v15 = vld [vmem:[%s3385_s1 + $0x20] sm:$0xff]  ;;  %v67_v16 = vld [vmem:[%s3385_s1 + $0x1a8] sm:$0xff]  ;;  %v56_v17 = vld [vmem:[%s3385_s1 + $0x150] sm:$0xff] }
   0x7   :  { %2209 = vmatpush.msra.mxu1 %v80_v2  ;;  %2210 = vmatpush.msra.mxu2 %v80_v2  ;;  %v45_v18 = vld [vmem:[%s3385_s1 + $0xf8] sm:$0xff]  ;;  %v19_v19 = vld [vmem:[%s3385_s1 + $0x28] sm:$0xff]  ;;  %v68_v20 = vld [vmem:[%s3385_s1 + $0x1b0] sm:$0xff] }
   0x8   :  { %296 = vmatpush.msra.mxu0 %v79_v3  ;;  %2214 = vmatpush.msra.mxu3 %v79_v3  ;;  %v57_v21 = vld [vmem:[%s3385_s1 + $0x158] sm:$0xff]  ;;  %v46_v22 = vld [vmem:[%s3385_s1 + $0x100] sm:$0xff]  ;;  %v20_v23 = vld [vmem:[%s3385_s1 + $0x30] sm:$0xff] }
   0x9   :  { %2212 = vmatpush.msra.mxu1 %v79_v3  ;;  %2213 = vmatpush.msra.mxu2 %v79_v3  ;;  %v69_v24 = vld [vmem:[%s3385_s1 + $0x1b8] sm:$0xff]  ;;  %v58_v25 = vld [vmem:[%s3385_s1 + $0x160] sm:$0xff]  ;;  %v47_v26 = vld [vmem:[%s3385_s1 + $0x108] sm:$0xff] }
   0xa   :  { %297 = vmatpush.msra.mxu0 %v78_v4  ;;  %2217 = vmatpush.msra.mxu3 %v78_v4  ;;  %v21_v27 = vld [vmem:[%s3385_s1 + $0x38] sm:$0xff]  ;;  %v70_v28 = vld [vmem:[%s3385_s1 + $0x1c0] sm:$0xff]  ;;  %v59_v29 = vld [vmem:[%s3385_s1 + $0x168] sm:$0xff] }
   0xb   :  { %2099 = vmatmul.msk.f32.vlgmr.msra.gmra.mxu0 %vm85_vm1, %v14_v5  ;;  %2215 = vmatpush.msra.mxu1 %v78_v4  ;;  %v48_v30 = vld [vmem:[%s3385_s1 + $0x110] sm:$0xff]  ;;  %v22_v31 = vld [vmem:[%s3385_s1 + $0x40] sm:$0xff]  ;;  %v71_v32 = vld [vmem:[%s3385_s1 + $0x1c8] sm:$0xff] }
   0xc   :  { %2216 = vmatpush.msra.mxu2 %v78_v4  ;;  %2149 = vmatmul.msk.f32.vlgmr.msra.gmra.mxu3 %vm85_vm1, %v64_v7  ;;  %v60_v33 = vld [vmem:[%s3385_s1 + $0x170] sm:$0xff]  ;;  %v49_v34 = vld [vmem:[%s3385_s1 + $0x118] sm:$0xff]  ;;  %v23_v35 = vld [vmem:[%s3385_s1 + $0x48] sm:$0xff] }
   0xd   :  { %2128 = vmatmul.msk.f32.vlgmr.msra.gmra.mxu1 %vm85_vm1, %v43_v10  ;;  %2140 = vmatmul.msk.f32.vlgmr.msra.gmra.mxu2 %vm85_vm1, %v55_v13  ;;  %v72_v36 = vld [vmem:[%s3385_s1 + $0x1d0] sm:$0xff]  ;;  %v61_v37 = vld [vmem:[%s3385_s1 + $0x178] sm:$0xff]  ;;  %v50_v38 = vld [vmem:[%s3385_s1 + $0x120] sm:$0xff] }
   0xe   :  { %v24_v39 = vld [vmem:[%s3385_s1 + $0x50] sm:$0xff]  ;;  %v73_v40 = vld [vmem:[%s3385_s1 + $0x1d8] sm:$0xff]  ;;  %v51_v41 = vld [vmem:[%s3385_s1 + $0x128] sm:$0xff] }
   0xf   :  { %v25_v42 = vld [vmem:[%s3385_s1 + $0x58] sm:$0xff]  ;;  %v74_v43 = vld [vmem:[%s3385_s1 + $0x1e0] sm:$0xff]  ;;  %v52_v45 = vld [vmem:[%s3385_s1 + $0x130] sm:$0xff] }
  0x10   :  { %v26_v44 = vld [vmem:[%s3385_s1 + $0x60] sm:$0xff]  ;;  %v75_v46 = vld [vmem:[%s3385_s1 + $0x1e8] sm:$0xff]  ;;  %v53_v48 = vld [vmem:[%s3385_s1 + $0x138] sm:$0xff] }
  0x11   :  { %v27_v47 = vld [vmem:[%s3385_s1 + $0x68] sm:$0xff]  ;;  %v76_v49 = vld [vmem:[%s3385_s1 + $0x1f0] sm:$0xff]  ;;  %v54_v51 = vld [vmem:[%s3385_s1 + $0x140] sm:$0xff] }
  0x12   :  { %v28_v50 = vld [vmem:[%s3385_s1 + $0x70] sm:$0xff]  ;;  %v77_v52 = vld [vmem:[%s3385_s1 + $0x1f8] sm:$0xff]  ;;  %v30_v55 = vld [vmem:[%s3385_s1 + $0x80] sm:$0xff] }
  0x13   :  { %2100 = vmatmul.msk.f32.gmra.mxu0 %vm85_vm1, %v15_v6  ;;  %v29_v53 = vld [vmem:[%s3385_s1 + $0x78] sm:$0xff]  ;;  %v31_v57 = vld [vmem:[%s3385_s1 + $0x88] sm:$0xff]  ;;  %v32_v60 = vld [vmem:[%s3385_s1 + $0x90] sm:$0xff] }
  0x14   :  { %2150 = vmatmul.msk.f32.gmra.mxu3 %vm85_vm1, %v65_v9  ;;  %v33_v63 = vld [vmem:[%s3385_s1 + $0x98] sm:$0xff]  ;;  %v2570_v2 = vld [vmem:[%s3384_s2 + $0x2f0] ss:$0 sm:$0xff]  ;;  %v34_v4 = vld [vmem:[%s3385_s1 + $0xa0] sm:$0xff] }
  0x15   :  { %2129 = vmatmul.msk.f32.gmra.mxu1 %vm85_vm1, %v44_v14  ;;  %2141 = vmatmul.msk.f32.gmra.mxu2 %vm85_vm1, %v56_v17  ;;  %v35_v14 = vld [vmem:[%s3385_s1 + $0xa8] sm:$0xff] }
  0x1b   :  { %2101 = vmatmul.msk.f32.gmra.mxu0 %vm85_vm1, %v16_v8 }
  0x1c   :  { %2151 = vmatmul.msk.f32.gmra.mxu3 %vm85_vm1, %v66_v12 }
  0x1d   :  { %2130 = vmatmul.msk.f32.gmra.mxu1 %vm85_vm1, %v45_v18  ;;  %2142 = vmatmul.msk.f32.gmra.mxu2 %vm85_vm1, %v57_v21 }
  0x23   :  { %2102 = vmatmul.msk.f32.gmra.mxu0 %vm85_vm1, %v17_v11 }
  0x24   :  { %2152 = vmatmul.msk.f32.gmra.mxu3 %vm85_vm1, %v67_v16 }
  0x25   :  { %2131 = vmatmul.msk.f32.gmra.mxu1 %vm85_vm1, %v46_v22  ;;  %2143 = vmatmul.msk.f32.gmra.mxu2 %vm85_vm1, %v58_v25  ;;  %v37_v25 = vld [vmem:[%s3385_s1 + $0xb8] sm:$0xff] }
  0x2b   :  { %2103 = vmatmul.msk.f32.gmra.mxu0 %vm85_vm1, %v18_v15 }
  0x2c   :  { %2153 = vmatmul.msk.f32.gmra.mxu3 %vm85_vm1, %v68_v20  ;;  %v36_v20 = vld [vmem:[%s3385_s1 + $0xb0] sm:$0xff] }
  0x2d   :  { %2132 = vmatmul.msk.f32.gmra.mxu1 %vm85_vm1, %v47_v26  ;;  %2144 = vmatmul.msk.f32.gmra.mxu2 %vm85_vm1, %v59_v29  ;;  %v38_v29 = vld [vmem:[%s3385_s1 + $0xc0] sm:$0xff] }
  0x33   :  { %2104 = vmatmul.msk.f32.gmra.mxu0 %vm85_vm1, %v19_v19 }
  0x34   :  { %2154 = vmatmul.msk.f32.gmra.mxu3 %vm85_vm1, %v69_v24 }
  0x35   :  { %2133 = vmatmul.msk.f32.gmra.mxu1 %vm85_vm1, %v48_v30  ;;  %2145 = vmatmul.msk.f32.gmra.mxu2 %vm85_vm1, %v60_v33 }
  0x3b   :  { %2105 = vmatmul.msk.f32.gmra.mxu0 %vm85_vm1, %v20_v23 }
  0x3c   :  { %2155 = vmatmul.msk.f32.gmra.mxu3 %vm85_vm1, %v70_v28 }
  0x3d   :  { %2134 = vmatmul.msk.f32.gmra.mxu1 %vm85_vm1, %v49_v34  ;;  %2146 = vmatmul.msk.f32.gmra.mxu2 %vm85_vm1, %v61_v37  ;;  %v39_v34 = vld [vmem:[%s3385_s1 + $0xc8] sm:$0xff] }
  0x43   :  { %2106 = vmatmul.msk.f32.gmra.mxu0 %vm85_vm1, %v21_v27 }
  0x44   :  { %2156 = vmatmul.msk.f32.gmra.mxu3 %vm85_vm1, %v71_v32 }
  0x45   :  { %2135 = vmatmul.msk.f32.gmra.mxu1 %vm85_vm1, %v50_v38 }
  0x4b   :  { %2107 = vmatmul.msk.f32.gmra.mxu0 %vm85_vm1, %v22_v31 }
  0x4c   :  { %2157 = vmatmul.msk.f32.gmra.mxu3 %vm85_vm1, %v72_v36  ;;  %v62_v36 = vld [vmem:[%s3385_s1 + $0x180] sm:$0xff] }
  0x4d   :  { %2136 = vmatmul.msk.f32.gmra.mxu1 %vm85_vm1, %v51_v41  ;;  %2147 = vmatmul.msk.f32.gmra.mxu2 %vm85_vm1, %v62_v36 }
  0x53   :  { %2108 = vmatmul.msk.f32.gmra.mxu0 %vm85_vm1, %v23_v35 }
  0x54   :  { %2158 = vmatmul.msk.f32.gmra.mxu3 %vm85_vm1, %v73_v40  ;;  %v40_v40 = vld [vmem:[%s3385_s1 + $0xd0] sm:$0xff] }
  0x55   :  { %2137 = vmatmul.msk.f32.gmra.mxu1 %vm85_vm1, %v52_v45 }
  0x5b   :  { %2109 = vmatmul.msk.f32.gmra.mxu0 %vm85_vm1, %v24_v39 }
  0x5c   :  { %2159 = vmatmul.msk.f32.gmra.mxu3 %vm85_vm1, %v74_v43 }
  0x5d   :  { %2138 = vmatmul.msk.f32.gmra.mxu1 %vm85_vm1, %v53_v48 }
  0x63   :  { %2110 = vmatmul.msk.f32.gmra.mxu0 %vm85_vm1, %v25_v42  ;;  %v63_v42 = vld [vmem:[%s3385_s1 + $0x188] sm:$0xff] }
  0x64   :  { %2160 = vmatmul.msk.f32.gmra.mxu3 %vm85_vm1, %v75_v46  ;;  %2148 = vmatmul.msk.f32.gmra.mxu2 %vm85_vm1, %v63_v42 }
  0x65   :  { %2139 = vmatmul.msk.f32.gmra.mxu1 %vm85_vm1, %v54_v51 }
  0x6b   :  { %2111 = vmatmul.msk.f32.gmra.mxu0 %vm85_vm1, %v26_v44 }
  0x6c   :  { %2161 = vmatmul.msk.f32.gmra.mxu3 %vm85_vm1, %v76_v49 }
  0x73   :  { %2112 = vmatmul.msk.f32.gmra.mxu0 %vm85_vm1, %v27_v47 }
  0x74   :  { %2162 = vmatmul.msk.f32.gmra.mxu3 %vm85_vm1, %v77_v52 }
  0x7b   :  { %2113 = vmatmul.msk.f32.gmra.mxu0 %vm85_vm1, %v28_v50 }
  0x83   :  { %2114 = vmatmul.msk.f32.gmra.mxu0 %vm85_vm1, %v29_v53  ;;  %v41_v53 = vld [vmem:[%s3385_s1 + $0xd8] sm:$0xff] }
  0x88   :  { %v2539_v54 = vpop.f32.mrf.mxu0 }
  0x8a   :  { %v386_v61 = vpop.f32.mrf.mxu1 }
  0x8b   :  { %2115 = vmatmul.msk.f32.gmra.mxu0 %vm85_vm1, %v30_v55  ;;  %v387_v9 = vadd.f32 %v2570_v2, %v386_v61 }
  0x8d   :  { %v520_v15 = vmax.f32 %v387_v9, 0.0 }
  0x8f   :  { %v2551_v58 = vpop.f32.mrf.mxu3 }
  0x90   :  { %v2545_v56 = vpop.f32.mrf.mxu0  ;;  %v2581_v7 = vpop.f32.mrf.mxu2 }
  0x91   :  { %v423_v61 = vadd.f32 %v2570_v2, %v2581_v7 }
  0x92   :  { %v389_v1 = vpop.f32.mrf.mxu1 }
  0x93   :  { %2116 = vmatmul.msk.f32.gmra.mxu0 %vm85_vm1, %v31_v57  ;;  %v390_v5 = vadd.f32 %v2570_v2, %v389_v1 }
  0x95   :  { %v521_v11 = vmax.f32 %v390_v5, 0.0 }
  0x97   :  { %v2564_v0 = vpop.f32.mrf.mxu3 }
  0x98   :  { %v2553_v59 = vpop.f32.mrf.mxu0  ;;  %v425_v16 = vpop.f32.mrf.mxu2 }
  0x99   :  { %v426_v57 = vadd.f32 %v2570_v2, %v425_v16 }
  0x9a   :  { %v392_v8 = vpop.f32.mrf.mxu1 }
  0x9b   :  { %2117 = vmatmul.msk.f32.gmra.mxu0 %vm85_vm1, %v32_v60  ;;  %v393_v10 = vadd.f32 %v2570_v2, %v392_v8  ;;  %v533_v1 = vmax.f32 %v426_v57, 0.0  ;;  %v532_v8 = vmax.f32 %v423_v61, 0.0 }
  0x9d   :  { %v522_v12 = vmax.f32 %v393_v10, 0.0  ;;  %v42_v10 = vld [vmem:[%s3385_s1 + $0xe0] sm:$0xff] }
  0x9f   :  { %v2578_v6 = vpop.f32.mrf.mxu3  ;;  %601 = vmatpush.msrb.mxu2 %v522_v12 }
  0xa0   :  { %v2559_v62 = vpop.f32.mrf.mxu0  ;;  %v428_v21 = vpop.f32.mrf.mxu2 }
  0xa1   :  { %602 = vmatpush.msrb.mxu2 %v521_v11  ;;  %v429_v51 = vadd.f32 %v2570_v2, %v428_v21 }
  0xa2   :  { %v2591_v17 = vpop.f32.mrf.mxu1 }
  0xa3   :  { %2118 = vmatmul.msk.f32.gmra.mxu0 %vm85_vm1, %v33_v63  ;;  %603 = vmatpush.msrb.mxu2 %v520_v15  ;;  %v534_v63 = vmax.f32 %v429_v51, 0.0 }
  0xa7   :  { %v2593_v18 = vpop.f32.mrf.mxu3 }
  0xa8   :  { %v2572_v3 = vpop.f32.mrf.mxu0  ;;  %v431_v26 = vpop.f32.mrf.mxu2 }
  0xa9   :  { %v432_v48 = vadd.f32 %v2570_v2, %v431_v26 }
  0xaa   :  { %v2601_v22 = vpop.f32.mrf.mxu1 }
  0xab   :  { %2119 = vmatmul.msk.f32.gmra.mxu0 %vm85_vm1, %v34_v4  ;;  %v535_v60 = vmax.f32 %v432_v48, 0.0 }
  0xaf   :  { %v2603_v23 = vpop.f32.mrf.mxu3 }
  0xb0   :  { %v2585_v13 = vpop.f32.mrf.mxu0  ;;  %v434_v31 = vpop.f32.mrf.mxu2 }
  0xb1   :  { %v435_v44 = vadd.f32 %v2570_v2, %v434_v31 }
  0xb2   :  { %v2611_v27 = vpop.f32.mrf.mxu1 }
  0xb3   :  { %2120 = vmatmul.msk.f32.gmra.mxu0 %vm85_vm1, %v35_v14  ;;  %v536_v55 = vmax.f32 %v435_v44, 0.0 }
  0xb7   :  { %v2618_v30 = vpop.f32.mrf.mxu3 }
  0xb8   :  { %v2595_v19 = vpop.f32.mrf.mxu0  ;;  %v437_v37 = vpop.f32.mrf.mxu2 }
  0xb9   :  { %v438_v41 = vadd.f32 %v2570_v2, %v437_v37 }
  0xba   :  { %v404_v32 = vpop.f32.mrf.mxu1 }
  0xbb   :  { %2121 = vmatmul.msk.f32.gmra.mxu0 %vm85_vm1, %v36_v20  ;;  %v537_v49 = vmax.f32 %v438_v41, 0.0  ;;  %v405_v37 = vadd.f32 %v2570_v2, %v404_v32  ;;  %v402_v41 = vadd.f32 %v2570_v2, %v2611_v27 }
  0xbf   :  { %v2626_v35 = vpop.f32.mrf.mxu3 }
  0xc0   :  { %v2605_v24 = vpop.f32.mrf.mxu0  ;;  %v440_v43 = vpop.f32.mrf.mxu2 }
  0xc1   :  { %v441_v45 = vadd.f32 %v2570_v2, %v440_v43 }
  0xc2   :  { %v407_v38 = vpop.f32.mrf.mxu1 }
  0xc3   :  { %2122 = vmatmul.msk.f32.gmra.mxu0 %vm85_vm1, %v37_v25  ;;  %v538_v50 = vmax.f32 %v441_v45, 0.0 }
  0xc5   :  { %621 = vmatpush.msrb.mxu3 %v538_v50  ;;  %v525_v50 = vmax.f32 %v402_v41, 0.0 }
  0xc7   :  { %v2646_v46 = vpop.f32.mrf.mxu3  ;;  %622 = vmatpush.msrb.mxu3 %v537_v49  ;;  %v396_v49 = vadd.f32 %v2570_v2, %v2591_v17 }
  0xc8   :  { %v2613_v28 = vpop.f32.mrf.mxu0 }
  0xc9   :  { %623 = vmatpush.msrb.mxu3 %v536_v55 }
  0xca   :  { %v410_v47 = vpop.f32.mrf.mxu1 }
  0xcb   :  { %2123 = vmatmul.msk.f32.gmra.mxu0 %vm85_vm1, %v38_v29  ;;  %624 = vmatpush.msrb.mxu3 %v535_v60  ;;  %v411_v25 = vadd.f32 %v2570_v2, %v410_v47  ;;  %v399_v47 = vadd.f32 %v2570_v2, %v2601_v22  ;;  %v523_v60 = vmax.f32 %v396_v49, 0.0 }
  0xcd   :  { %625 = vmatpush.msrb.mxu3 %v534_v63  ;;  %v524_v55 = vmax.f32 %v399_v47, 0.0 }
  0xcf   :  { %v2657_v4 = vpop.f32.mrf.mxu3  ;;  %626 = vmatpush.msrb.mxu3 %v533_v1 }
  0xd0   :  { %v2621_v33 = vpop.f32.mrf.mxu0 }
  0xd1   :  { %627 = vmatpush.msrb.mxu3 %v532_v8  ;;  %v327_v1 = vadd.f32 %v2570_v2, %v2621_v33 }
  0xd2   :  { %v413_v5 = vpop.f32.mrf.mxu1 }
  0xd3   :  { %2124 = vmatmul.msk.f32.gmra.mxu0 %vm85_vm1, %v39_v34  ;;  %v414_v20 = vadd.f32 %v2570_v2, %v413_v5  ;;  %v408_v34 = vadd.f32 %v2570_v2, %v407_v38  ;;  %v526_v38 = vmax.f32 %v405_v37, 0.0 }
  0xd5   :  { %v529_v36 = vmax.f32 %v414_v20, 0.0  ;;  %v527_v42 = vmax.f32 %v408_v34, 0.0 }
  0xd7   :  { %v2663_v12 = vpop.f32.mrf.mxu3 }
  0xd8   :  { %v2633_v39 = vpop.f32.mrf.mxu0 }
  0xd9   :  { %v330_v17 = vadd.f32 %v2570_v2, %v2633_v39 }
  0xda   :  { %v416_v11 = vpop.f32.mrf.mxu1 }
  0xdb   :  { %2125 = vmatmul.msk.f32.gmra.mxu0 %vm85_vm1, %v40_v40  ;;  %v417_v14 = vadd.f32 %v2570_v2, %v416_v11  ;;  %v528_v40 = vmax.f32 %v411_v25, 0.0  ;;  %v501_v8 = vmax.f32 %v330_v17, 0.0 }
  0xdd   :  { %v530_v26 = vmax.f32 %v417_v14, 0.0  ;;  %v315_v14 = vadd.f32 %v2570_v2, %v2585_v13 }
  0xdf   :  { %v2669_v31 = vpop.f32.mrf.mxu3  ;;  %v496_v20 = vmax.f32 %v315_v14, 0.0 }
  0xe0   :  { %v332_v52 = vpop.f32.mrf.mxu0 }
  0xe1   :  { %v333_v57 = vadd.f32 %v2570_v2, %v332_v52  ;;  %v324_v52 = vadd.f32 %v2570_v2, %v2613_v28  ;;  %v312_v28 = vadd.f32 %v2570_v2, %v2572_v3 }
  0xe2   :  { %v419_v15 = vpop.f32.mrf.mxu1 }
  0xe3   :  { %2126 = vmatmul.msk.f32.gmra.mxu0 %vm85_vm1, %v41_v53  ;;  %v420_v21 = vadd.f32 %v2570_v2, %v419_v15  ;;  %v502_v5 = vmax.f32 %v333_v57, 0.0  ;;  %v499_v33 = vmax.f32 %v324_v52, 0.0  ;;  %v495_v25 = vmax.f32 %v312_v28, 0.0 }
  0xe5   :  { %v531_v29 = vmax.f32 %v420_v21, 0.0 }
  0xe7   :  { %628 = vmatpush.msrb.mxu3 %v531_v29  ;;  %v482_v53 = vpop.f32.mrf.mxu3 }
  0xe8   :  { %v335_v9 = vpop.f32.mrf.mxu0 }
  0xe9   :  { %629 = vmatpush.msrb.mxu3 %v530_v26  ;;  %v336_v27 = vadd.f32 %v2570_v2, %v335_v9  ;;  %v321_v9 = vadd.f32 %v2570_v2, %v2605_v24  ;;  %v309_v24 = vadd.f32 %v2570_v2, %v2559_v62  ;;  %v303_v26 = vadd.f32 %v2570_v2, %v2545_v56 }
  0xea   :  { %v300_v62 = vadd.f32 %v2570_v2, %v2539_v54  ;;  %v477_v54 = vadd.f32 %v2570_v2, %v2663_v12 }
  0xeb   :  { %2127 = vmatmul.msk.f32.gmra.mxu0 %vm85_vm1, %v42_v10  ;;  %630 = vmatpush.msrb.mxu3 %v529_v36  ;;  %v503_v63 = vmax.f32 %v336_v27, 0.0  ;;  %v500_v10 = vmax.f32 %v327_v1, 0.0  ;;  %v498_v15 = vmax.f32 %v321_v9, 0.0  ;;  %v494_v3 = vmax.f32 %v309_v24, 0.0 }
  0xec   :  { %v492_v37 = vmax.f32 %v303_v26, 0.0  ;;  %v491_v56 = vmax.f32 %v300_v62, 0.0  ;;  %v462_v27 = vadd.f32 %v2570_v2, %v2603_v23  ;;  %v450_v23 = vadd.f32 %v2570_v2, %v2551_v58 }
  0xed   :  { %631 = vmatpush.msrb.mxu3 %v528_v40 }
  0xee   :  { %v541_v17 = vmax.f32 %v450_v23, 0.0 }
  0xef   :  { %632 = vmatpush.msrb.mxu3 %v527_v42  ;;  %v485_v39 = vpop.f32.mrf.mxu3  ;;  %v480_v42 = vadd.f32 %v2570_v2, %v2669_v31  ;;  %v468_v31 = vadd.f32 %v2570_v2, %v2626_v35  ;;  %v456_v35 = vadd.f32 %v2570_v2, %v2578_v6 }
  0xf0   :  { %v338_v7 = vpop.f32.mrf.mxu0  ;;  %v486_v36 = vadd.f32 %v2570_v2, %v485_v39 }
  0xf1   :  { %v339_v48 = vadd.f32 %v2570_v2, %v338_v7  ;;  %633 = vmatpush.msrb.mxu3 %v526_v38  ;;  %v318_v7 = vadd.f32 %v2570_v2, %v2595_v19  ;;  %v306_v19 = vadd.f32 %v2570_v2, %v2553_v59  ;;  %v483_v59 = vadd.f32 %v2570_v2, %v482_v53 }
  0xf2   :  { %v551_v47 = vmax.f32 %v480_v42, 0.0  ;;  %v471_v38 = vadd.f32 %v2570_v2, %v2646_v46 }
  0xf3   :  { %v504_v22 = vmax.f32 %v339_v48, 0.0  ;;  %634 = vmatpush.msrb.mxu3 %v525_v50  ;;  %v493_v34 = vmax.f32 %v306_v19, 0.0  ;;  %v550_v48 = vmax.f32 %v477_v54, 0.0  ;;  %v465_v50 = vadd.f32 %v2570_v2, %v2618_v30 }
  0xf4   :  { %v548_v12 = vmax.f32 %v471_v38, 0.0  ;;  %v453_v30 = vadd.f32 %v2570_v2, %v2564_v0  ;;  %v555_v0 = vlaneseq }
  0xf5   :  { %635 = vmatpush.msrb.mxu3 %v524_v55  ;;  %v546_v53 = vmax.f32 %v465_v50, 0.0  ;;  %v545_v55 = vmax.f32 %v462_v27, 0.0 }
  0xf6   :  { %v2750_v28 = vand.u32 127, %v555_v0 }
  0xf7   :  { %636 = vmatpush.msrb.mxu3 %v523_v60  ;;  %v488_v13 = vpop.f32.mrf.mxu3 }
  0xf8   :  { %v341_v16 = vpop.f32.mrf.mxu0  ;;  %v489_v29 = vadd.f32 %v2570_v2, %v488_v13  ;;  %v558_v19 = vadd.s32 256, %v2750_v28  ;;  %v693_v13 = vld [vmem:[%s3384_s2 + $0x20] sm:$0xff]  ;;  %v559_v26 = vadd.s32 384, %v2750_v28  ;;  %vm760_vm0 = vcmp.ge.s32.totalorder %v2750_v28, 64 }
  0xf9   :  { %v342_v44 = vadd.f32 %v2570_v2, %v341_v16  ;;  %v497_v16 = vmax.f32 %v318_v7, 0.0  ;;  %vm761_vm1 = vcmp.lt.s32.totalorder %v2750_v28, 96 }
  0xfa   :  { %v554_v40 = vmax.f32 %v489_v29, 0.0  ;;  %v692_v29 = vld [vmem:[%s3384_s2 + $0x18] sm:$0xff] }
  0xfb   :  { %v505_v51 = vmax.f32 %v342_v44, 0.0  ;;  %v552_v44 = vmax.f32 %v483_v59, 0.0 }
 0x100   :  { %v344_v43 = vpop.f32.mrf.mxu0 }
 0x101   :  { %v345_v45 = vadd.f32 %v2570_v2, %v344_v43  ;;  %v553_v43 = vmax.f32 %v486_v36, 0.0  ;;  %v2302_v36 = vmov 0.00390625  }
 0x103   :  { %v506_v32 = vmax.f32 %v345_v45, 0.0  ;;  %v474_v45 = vadd.f32 %v2570_v2, %v2657_v4  ;;  %v547_v4 = vmax.f32 %v468_v31, 0.0 }
 0x105   :  { %581 = vmatpush.msrb.mxu1 %v506_v32  ;;  %v549_v49 = vmax.f32 %v474_v45, 0.0  ;;  %v689_v45 = vld [vmem:[%s3384_s2] sm:$0xff] }
 0x107   :  { %582 = vmatpush.msrb.mxu1 %v505_v51  ;;  %v459_v51 = vadd.f32 %v2570_v2, %v2593_v18  ;;  %v542_v18 = vmax.f32 %v453_v30, 0.0  ;;  %v557_v30 = vadd.s32 128, %v2750_v28 }
 0x108   :  { %v2684_v61 = vpop.f32.mrf.mxu0 }
 0x109   :  { %583 = vmatpush.msrb.mxu1 %v504_v22  ;;  %v544_v57 = vmax.f32 %v459_v51, 0.0  ;;  %v543_v22 = vmax.f32 %v456_v35, 0.0 }
 0x10b   :  { %584 = vmatpush.msrb.mxu1 %v503_v63 }
 0x10d   :  { %585 = vmatpush.msrb.mxu1 %v502_v5  ;;  %v443_v5 = vpop.f32.mrf.mxu2 }
 0x10f   :  { %586 = vmatpush.msrb.mxu1 %v501_v8  ;;  %v561_v8 = vshrl.u32 %v555_v0, 7  ;;  %v2862_v0 = vld [vmem:[%s3384_s2 + $0x88] sm:$0xff] }
 0x110   :  { %v2694_v11 = vpop.f32.mrf.mxu0 }
 0x111   :  { %587 = vmatpush.msrb.mxu1 %v500_v10  ;;  %v444_v10 = vadd.f32 %v2570_v2, %v443_v5  ;;  %v567_v7 = vadd.s32 1, %v561_v8  ;;  %v2755_v24 = vmul.u32 256, %v561_v8  ;;  %v2852_v5 = vld [vmem:[%s3384_s2 + $0x90] sm:$0xff]  ;;  %v2303_v8 = vmov 0.0  }
 0x113   :  { %588 = vmatpush.msrb.mxu1 %v499_v33  ;;  %v539_v33 = vmax.f32 %v444_v10, 0.0  ;;  %vm563_vm2 = vcmp.ge.s32.totalorder %v2750_v28, %v2755_v24  ;;  %vm565_vm4 = vcmp.ge.s32.totalorder %v558_v19, %v2755_v24  ;;  %vm566_vm8 = vcmp.ge.s32.totalorder %v559_v26, %v2755_v24 }
 0x114   :  { %vm564_vm12 = vcmp.ge.s32.totalorder %v557_v30, %v2755_v24 }
 0x115   :  { %589 = vmatpush.msrb.mxu1 %v498_v15  ;;  %v446_v9 = vpop.f32.mrf.mxu2  ;;  %v696_v15 = vld [vmem:[%s3384_s2 + $0x38] sm:$0xff] }
 0x116   :  { %v447_v58 = vadd.f32 %v2570_v2, %v446_v9  ;;  %711 = vmatpush.msra.mxu3 %v696_v15  ;;  %v2225_v15 = vld [vmem:[%s3384_s2 + $0x40] ss:$0 sm:$0xff] }
 0x117   :  { %590 = vmatpush.msrb.mxu1 %v497_v16  ;;  %v695_v16 = vld [vmem:[%s3384_s2 + $0x30] sm:$0xff] }
 0x118   :  { %v2704_v21 = vpop.f32.mrf.mxu0  ;;  %v540_v14 = vmax.f32 %v447_v58, 0.0  ;;  %712 = vmatpush.msra.mxu3 %v695_v16 }
 0x119   :  { %591 = vmatpush.msrb.mxu1 %v496_v20  ;;  %v2757_v20 = vmul.u32 256, %v567_v7  ;;  %v354_v35 = vadd.f32 %v2570_v2, %v2704_v21 }
 0x11b   :  { %592 = vmatpush.msrb.mxu1 %v495_v25  ;;  %v694_v25 = vld [vmem:[%s3384_s2 + $0x28] sm:$0xff]  ;;  %vm569_vm3 = vcmp.lt.s32.totalorder %v2750_v28, %v2757_v20  ;;  %vm571_vm5 = vcmp.lt.s32.totalorder %v558_v19, %v2757_v20  ;;  %vm572_vm9 = vcmp.lt.s32.totalorder %v559_v26, %v2757_v20  ;;  %v509_v23 = vmax.f32 %v354_v35, 0.0 }
 0x11c   :  { %713 = vmatpush.msra.mxu3 %v694_v25  ;;  %vm573_vm6 = vmand %vm563_vm2, %vm569_vm3  ;;  %vm570_vm13 = vcmp.lt.s32.totalorder %v557_v30, %v2757_v20  ;;  %v2227_v19 = vld [vmem:[%s3384_s2 + $0xa8] ss:$0 sm:$0xff]  ;;  %vm763_vm3 = vcmask 261120  }
 0x11d   :  { %593 = vmatpush.msrb.mxu1 %v494_v3  ;;  %vm575_vm7 = vmand %vm565_vm4, %vm571_vm5 }
 0x11e   :  { %714 = vmatpush.msra.mxu3 %v693_v13  ;;  %vm576_vm10 = vmand %vm566_vm8, %vm572_vm9 }
 0x11f   :  { %594 = vmatpush.msrb.mxu1 %v493_v34  ;;  %2165 = vmatmul.msk.f32.vlgmr.msrb.gmra.mxu3 %vm575_vm7, %v2302_v36  ;;  %vm574_vm14 = vmand %vm564_vm12, %vm570_vm13 }
 0x120   :  { %v2715_v41 = vpop.f32.mrf.mxu0  ;;  %715 = vmatpush.msra.mxu3 %v692_v29  ;;  %vm2887_vm2 = vmand %vm760_vm0, %vm761_vm1  ;;  %v1880_v29 = vld [vmem:[%s3384_s2 + $0x260] sm:$0xff] }
 0x121   :  { %595 = vmatpush.msrb.mxu1 %v492_v37  ;;  %v691_v37 = vld [vmem:[%s3384_s2 + $0x10] sm:$0xff]  ;;  %v357_v51 = vadd.f32 %v2570_v2, %v2715_v41 }
 0x122   :  { %716 = vmatpush.msra.mxu3 %v691_v37 }
 0x123   :  { %596 = vmatpush.msrb.mxu1 %v491_v56  ;;  %v690_v56 = vld [vmem:[%s3384_s2 + $0x8] sm:$0xff] }
 0x124   :  { %2163 = vmatmul.msk.f32.vlgmr.msrb.gmra.mxu1 %vm573_vm6, %v2302_v36  ;;  %717 = vmatpush.msra.mxu3 %v690_v56 }
 0x125   :  { %641 = vmatpush.msra.mxu1 %v554_v40 }
 0x126   :  { %718 = vmatpush.msra.mxu3 %v689_v45 }
 0x127   :  { %642 = vmatpush.msra.mxu1 %v553_v43 }
 0x128   :  { %v2725_v32 = vpop.f32.mrf.mxu0 }
 0x129   :  { %643 = vmatpush.msra.mxu1 %v552_v44 }
 0x12b   :  { %644 = vmatpush.msra.mxu1 %v551_v47  ;;  %v688_v47 = vld [vmem:[%s3386_s0] sm:$0x3] }
 0x12c   :  { %2168 = vmatmul.msk.f32.vlgmr.msra.gmra.mxu3 %vm699_vm11, %v688_v47 }
 0x12d   :  { %645 = vmatpush.msra.mxu1 %v550_v48 }
 0x12f   :  { %646 = vmatpush.msra.mxu1 %v549_v49 }
 0x130   :  { %v2733_v46 = vpop.f32.mrf.mxu0 }
 0x131   :  { %647 = vmatpush.msra.mxu1 %v548_v12  ;;  %v363_v12 = vadd.f32 %v2570_v2, %v2733_v46  ;;  %v351_v46 = vadd.f32 %v2570_v2, %v2694_v11  ;;  %v661_v11 = vld [vmem:[%s3384_s2 + $0x2f8] sm:$0xff] }
 0x133   :  { %648 = vmatpush.msra.mxu1 %v547_v4  ;;  %v360_v4 = vadd.f32 %v2570_v2, %v2725_v32  ;;  %v348_v32 = vadd.f32 %v2570_v2, %v2684_v61  ;;  %v508_v41 = vmax.f32 %v351_v46, 0.0  ;;  %v729_v61 = vld [vmem:[%s3384_s2 + $0x78] sm:$0xff] }
 0x135   :  { %649 = vmatpush.msra.mxu1 %v546_v53  ;;  %v512_v53 = vmax.f32 %v363_v12, 0.0  ;;  %v507_v21 = vmax.f32 %v348_v32, 0.0 }
 0x137   :  { %650 = vmatpush.msra.mxu1 %v545_v55  ;;  %v511_v55 = vmax.f32 %v360_v4, 0.0 }
 0x138   :  { %v2743_v60 = vpop.f32.mrf.mxu0 }
 0x139   :  { %651 = vmatpush.msra.mxu1 %v544_v57  ;;  %v366_v31 = vadd.f32 %v2570_v2, %v2743_v60  ;;  %v510_v57 = vmax.f32 %v357_v51, 0.0  ;;  %v727_v60 = vld [vmem:[%s3384_s2 + $0x68] sm:$0xff] }
 0x13b   :  { %652 = vmatpush.msra.mxu1 %v543_v22  ;;  %v513_v27 = vmax.f32 %v366_v31, 0.0  ;;  %v728_v22 = vld [vmem:[%s3384_s2 + $0x70] sm:$0xff] }
 0x13d   :  { %653 = vmatpush.msra.mxu1 %v542_v18  ;;  %v726_v18 = vld [vmem:[%s3384_s2 + $0x60] sm:$0xff] }
 0x13f   :  { %654 = vmatpush.msra.mxu1 %v541_v17  ;;  %v725_v17 = vld [vmem:[%s3384_s2 + $0x58] sm:$0xff] }
 0x140   :  { %v368_v6 = vpop.f32.mrf.mxu0 }
 0x141   :  { %655 = vmatpush.msra.mxu1 %v540_v14  ;;  %v369_v38 = vadd.f32 %v2570_v2, %v368_v6  ;;  %v2838_v6 = vld [vmem:[%s3384_s2 + $0xa0] sm:$0xff] }
 0x142   :  { %779 = vmatpush.msrb.mxu3 %v2838_v6 }
 0x143   :  { %656 = vmatpush.msra.mxu1 %v539_v33  ;;  %v514_v50 = vmax.f32 %v369_v38, 0.0 }
 0x144   :  { %2166 = vmatmul.msk.f32.vlgmr.msra.gmra.mxu1 %vm576_vm10, %v2302_v36 }
 0x148   :  { %v371_v63 = vpop.f32.mrf.mxu0 }
 0x149   :  { %v372_v54 = vadd.f32 %v2570_v2, %v371_v63  ;;  %v2844_v63 = vld [vmem:[%s3384_s2 + $0x98] sm:$0xff] }
 0x14a   :  { %780 = vmatpush.msrb.mxu3 %v2844_v63 }
 0x14b   :  { %v515_v49 = vmax.f32 %v372_v54, 0.0 }
 0x14c   :  { %781 = vmatpush.msrb.mxu3 %v2852_v5 }
 0x14e   :  { %782 = vmatpush.msrb.mxu3 %v2862_v0 }
 0x14f   :  { %783 = vmatmul.f32.vlgmr.msrb.gmra.mxu3 %v2303_v8  ;;  %v817_v8 = vld [vmem:[%s3384_s2 + $0xc8] sm:$0xff] }
 0x150   :  { %v374_v1 = vpop.f32.mrf.mxu0  ;;  %916 = vmatpush.msrb.mxu1 %v817_v8 }
 0x151   :  { %v375_v42 = vadd.f32 %v2570_v2, %v374_v1  ;;  %v724_v1 = vld [vmem:[%s3384_s2 + $0x50] sm:$0xff] }
 0x153   :  { %v516_v48 = vmax.f32 %v375_v42, 0.0 }
 0x158   :  { %v377_v52 = vpop.f32.mrf.mxu0 }
 0x159   :  { %v378_v59 = vadd.f32 %v2570_v2, %v377_v52  ;;  %v723_v52 = vld [vmem:[%s3384_s2 + $0x48] sm:$0xff] }
 0x15b   :  { %v517_v44 = vmax.f32 %v378_v59, 0.0 }
 0x160   :  { %v380_v39 = vpop.f32.mrf.mxu0 }
 0x161   :  { %v381_v62 = vadd.f32 %v2570_v2, %v380_v39 }
 0x163   :  { %v518_v43 = vmax.f32 %v381_v62, 0.0 }
 0x168   :  { %v383_v3 = vpop.f32.mrf.mxu0 }
 0x169   :  { %v384_v34 = vadd.f32 %v2570_v2, %v383_v3  ;;  %v730_v2 = vld [vmem:[%s3384_s2 + $0x80] sm:$0xff] }
 0x16b   :  { %v519_v40 = vmax.f32 %v384_v34, 0.0 }
 0x16d   :  { %604 = vmatpush.msrb.mxu2 %v519_v40 }
 0x16f   :  { %605 = vmatpush.msrb.mxu2 %v518_v43 }
 0x171   :  { %606 = vmatpush.msrb.mxu2 %v517_v44 }
 0x173   :  { %607 = vmatpush.msrb.mxu2 %v516_v48 }
 0x175   :  { %608 = vmatpush.msrb.mxu2 %v515_v49 }
 0x177   :  { %609 = vmatpush.msrb.mxu2 %v514_v50 }
 0x179   :  { %610 = vmatpush.msrb.mxu2 %v513_v27 }
 0x17b   :  { %611 = vmatpush.msrb.mxu2 %v512_v53 }
 0x17d   :  { %612 = vmatpush.msrb.mxu2 %v511_v55 }
 0x17f   :  { %613 = vmatpush.msrb.mxu2 %v510_v57 }
 0x181   :  { %614 = vmatpush.msrb.mxu2 %v509_v23 }
 0x183   :  { %615 = vmatpush.msrb.mxu2 %v508_v41 }
 0x185   :  { %616 = vmatpush.msrb.mxu2 %v507_v21 }
 0x186   :  { %2164 = vmatmul.msk.f32.vlgmr.msrb.gmra.mxu2 %vm574_vm14, %v2302_v36 }
 0x187   :  { %683 = vmatpush.msra.mxu2 %v661_v11 }
 0x189   :  { %744 = vmatpush.msrb.mxu2 %v730_v2 }
 0x18b   :  { %745 = vmatpush.msrb.mxu2 %v729_v61 }
 0x18d   :  { %746 = vmatpush.msrb.mxu2 %v728_v22 }
 0x18f   :  { %747 = vmatpush.msrb.mxu2 %v727_v60 }
 0x191   :  { %748 = vmatpush.msrb.mxu2 %v726_v18 }
 0x193   :  { %749 = vmatpush.msrb.mxu2 %v725_v17 }
 0x195   :  { %750 = vmatpush.msrb.mxu2 %v724_v1 }
 0x197   :  { %751 = vmatpush.msrb.mxu2 %v723_v52 }
 0x1a1   :  { %v598_v9 = vpop.f32.mrf.mxu1 }
 0x1a2   :  { %v638_v58 = vpop.f32.mrf.mxu3 }
 0x1af   :  { %v720_v16 = vpop.f32.mrf.mxu3 }
 0x1b0   :  { %v721_v24 = vadd.f32 %v2225_v15, %v720_v16 }
 0x1c1   :  { %v658_v7 = vpop.f32.mrf.mxu1 }
 0x1d2   :  { %v784_v13 = vpop.f32.mrf.mxu3 }
 0x209   :  { %v618_v10 = vpop.f32.mrf.mxu2 }
 0x20a   :  { %v619_v39 = vadd.f32 %v618_v10, %v598_v9  ;;  %v816_v9 = vld [vmem:[%s3384_s2 + $0xc0] sm:$0xff]  ;;  %v815_v10 = vld [vmem:[%s3384_s2 + $0xb8] sm:$0xff] }
 0x20b   :  { %917 = vmatpush.msrb.mxu1 %v816_v9  ;;  %v1061_v9 = vld [vmem:[%s3384_s2 + $0x128] sm:$0xff] }
 0x20c   :  { %v639_v33 = vadd.f32 %v638_v58, %v619_v39  ;;  %v814_v58 = vld [vmem:[%s3384_s2 + $0xb0] sm:$0xff] }
 0x20d   :  { %918 = vmatpush.msrb.mxu1 %v815_v10  ;;  %v1060_v10 = vld [vmem:[%s3384_s2 + $0x120] sm:$0xff] }
 0x20e   :  { %v659_v14 = vadd.f32 %v658_v7, %v639_v33 }
 0x20f   :  { %919 = vmatpush.msrb.mxu1 %v814_v58  ;;  %v1059_v58 = vld [vmem:[%s3384_s2 + $0x118] sm:$0xff] }
 0x210   :  { %2167 = vmatmul.msk.f32.vlgmr.msra.gmra.mxu2 %vm664_vm15, %v659_v14 }
 0x211   :  { %835 = vmatpush.msra.mxu2 %v2838_v6  ;;  %1023 = vmatpush.msra.mxu1 %v2838_v6 }
 0x213   :  { %836 = vmatpush.msra.mxu2 %v2844_v63  ;;  %1024 = vmatpush.msra.mxu1 %v2844_v63 }
 0x215   :  { %837 = vmatpush.msra.mxu2 %v2852_v5  ;;  %1025 = vmatpush.msra.mxu1 %v2852_v5 }
 0x217   :  { %838 = vmatpush.msra.mxu2 %v2862_v0  ;;  %1026 = vmatpush.msra.mxu1 %v2862_v0 }
 0x218   :  { %2169 = vmatmul.msk.f32.vlgmr.msrb.gmra.mxu2 %vm699_vm11, %v721_v24 }
 0x219   :  { %941 = vmatpush.msrb.mxu2 %v2838_v6 }
 0x21b   :  { %942 = vmatpush.msrb.mxu2 %v2844_v63 }
 0x21d   :  { %943 = vmatpush.msrb.mxu2 %v2852_v5 }
 0x21f   :  { %944 = vmatpush.msrb.mxu2 %v2862_v0 }
 0x293   :  { %v2877_v20 = vpop.f32.mrf.mxu2 }
 0x29b   :  { %v753_v25 = vpop.f32.mrf.mxu2 }
 0x29c   :  { %v2884_v26 = vadd.f32 %v2227_v19, %v753_v25 }
 0x29e   :  { %v787_v3 = vadd.f32 %v784_v13, %v2884_v26 }
 0x2a0   :  { %v788_v62 = vmul.f32 0.5, %v787_v3 }
 0x2a2   :  { %v789_v34 = vsel %vm2887_vm2, %v787_v3, %v788_v62 }
 0x2a3   :  { %2230 = vtanh.f32 %v789_v34 }
 0x2a9   :  { %v2231_v36 = vpop.eup %2230 }
 0x2aa   :  { %v791_v37 = vmul.f32 0.5, %v2231_v36 }
 0x2ac   :  { %v792_v59 = vadd.f32 0.5, %v791_v37 }
 0x2ae   :  { %v793_v40 = vsel %vm2887_vm2, %v2231_v36, %v792_v59 }
 0x2af   :  { %796 = vrot.lane.b32.xlu0 %v793_v40, %s2304_s7  ;;  %v794_v42 = vmul.f32 0.0, %v793_v40 }
 0x321   :  { %v797_v28 = vpop.permute.xlu0 %796 }
 0x322   :  { %v799_v56 = vmul.f32 %v797_v28, %v793_v40 }
 0x324   :  { %801 = vrot.lane.b32.xlu0 %v799_v56, %s2305_s8 }
 0x396   :  { %v802_v43 = vpop.permute.xlu0 %801 }
 0x397   :  { %v804_v54 = vadd.f32 %v802_v43, %v794_v42 }
 0x399   :  { %2232 = vtanh.f32 %v804_v54 }
 0x39f   :  { %v2233_v44 = vpop.eup %2232 }
 0x3a0   :  { %807 = vrot.lane.b32.xlu1 %v2233_v44, %s2304_s7  ;;  %v872_v44 = vld [vmem:[%s3384_s2 + $0xe0] sm:$0xff] }
 0x412   :  { %v808_v45 = vpop.permute.xlu1 %807 }
 0x413   :  { %v810_v47 = vmul.f32 %v808_v45, %v793_v40  ;;  %v871_v45 = vld [vmem:[%s3384_s2 + $0xd8] sm:$0xff] }
 0x415   :  { %819 = vrot.lane.b32.xlu1 %v810_v47, %s2305_s8  ;;  %v812_v1 = vmul.f32 0.01, %v810_v47  ;;  %vm811_vm4 = vcmp.gt.f32.partialorder %v810_v47, 0.0 }
 0x417   :  { %v813_v52 = vsel %vm811_vm4, %v810_v47, %v812_v1  ;;  %v870_v47 = vld [vmem:[%s3384_s2 + $0xd0] sm:$0xff]  ;;  %vm2004_vm4 = vcmask 1045504  }
 0x487   :  { %v820_v38 = vpop.permute.xlu1 %819 }
 0x488   :  { %2170 = vmatmul.msk.f32.vlgmr.msra.gmra.mxu2 %vm763_vm3, %v820_v38 }
 0x489   :  { %1079 = vmatpush.msra.mxu2 %v1061_v9 }
 0x48b   :  { %1080 = vmatpush.msra.mxu2 %v1060_v10 }
 0x48d   :  { %1081 = vmatpush.msra.mxu2 %v1059_v58 }
 0x50b   :  { %v840_v48 = vpop.f32.mrf.mxu2 }
 0x50c   :  { %v843_v31 = vadd.f32 %v840_v48, %v2884_v26 }
 0x50e   :  { %v844_v49 = vmul.f32 0.5, %v843_v31 }
 0x510   :  { %v845_v12 = vsel %vm2887_vm2, %v843_v31, %v844_v49 }
 0x511   :  { %2234 = vtanh.f32 %v845_v12 }
 0x517   :  { %v2235_v50 = vpop.eup %2234 }
 0x518   :  { %v847_v4 = vmul.f32 0.5, %v2235_v50 }
 0x51a   :  { %v848_v27 = vadd.f32 0.5, %v847_v4  ;;  %v978_v4 = vld [vmem:[%s3384_s2 + $0x100] sm:$0xff] }
 0x51c   :  { %v849_v51 = vsel %vm2887_vm2, %v2235_v50, %v848_v27  ;;  %v979_v50 = vld [vmem:[%s3384_s2 + $0x108] sm:$0xff]  ;;  %v977_v27 = vld [vmem:[%s3384_s2 + $0xf8] sm:$0xff] }
 0x51d   :  { %852 = vrot.lane.b32.xlu2 %v849_v51, %s2304_s7  ;;  %v850_v55 = vmul.f32 %v849_v51, %v804_v54  ;;  %v873_v54 = vld [vmem:[%s3384_s2 + $0xe8] sm:$0xff] }
 0x51e   :  { %891 = vmatpush.msra.mxu3 %v873_v54 }
 0x520   :  { %892 = vmatpush.msra.mxu3 %v872_v44 }
 0x522   :  { %893 = vmatpush.msra.mxu3 %v871_v45  ;;  %v1143_v45 = vld [vmem:[%s3384_s2 + $0x148] sm:$0xff] }
 0x524   :  { %894 = vmatpush.msra.mxu3 %v870_v47  ;;  %v1142_v47 = vld [vmem:[%s3384_s2 + $0x140] sm:$0xff] }
 0x526   :  { %997 = vmatpush.msrb.mxu3 %v979_v50 }
 0x528   :  { %998 = vmatpush.msrb.mxu3 %v978_v4 }
 0x52a   :  { %999 = vmatpush.msrb.mxu3 %v977_v27 }
 0x577   :  { %v853_v53 = vpop.permute.xlu2 %852 }
 0x578   :  { %v855_v35 = vmul.f32 %v853_v53, %v849_v51 }
 0x57a   :  { %857 = vrot.lane.b32.xlu2 %v855_v35, %s2305_s8 }
 0x5d4   :  { %v858_v30 = vpop.permute.xlu2 %857 }
 0x5d5   :  { %v860_v46 = vadd.f32 %v858_v30, %v850_v55 }
 0x5d7   :  { %2236 = vtanh.f32 %v860_v46 }
 0x5dd   :  { %v2237_v57 = vpop.eup %2236 }
 0x5de   :  { %863 = vrot.lane.b32.xlu0 %v2237_v57, %s2304_s7 }
 0x650   :  { %v864_v32 = vpop.permute.xlu0 %863 }
 0x651   :  { %v866_v23 = vmul.f32 %v864_v32, %v849_v51  ;;  %v976_v51 = vld [vmem:[%s3384_s2 + $0xf0] sm:$0xff] }
 0x652   :  { %1000 = vmatpush.msrb.mxu3 %v976_v51 }
 0x653   :  { %925 = vrot.lane.b32.xlu1 %v866_v23, %s2305_s8  ;;  %v868_v42 = vmul.f32 0.01, %v866_v23  ;;  %vm867_vm5 = vcmp.gt.f32.partialorder %v866_v23, 0.0 }
 0x655   :  { %v869_v43 = vsel %vm867_vm5, %v866_v23, %v868_v42  ;;  %vm2028_vm5 = vcmask 17408  }
 0x6c5   :  { %v926_v41 = vpop.permute.xlu1 %925 }
 0x6c6   :  { %2173 = vmatmul.msk.f32.vlgmr.msrb.gmra.mxu2 %vm763_vm3, %v926_v41 }
 0x749   :  { %v946_v21 = vpop.f32.mrf.mxu2 }
 0x74a   :  { %v949_v11 = vadd.f32 %v946_v21, %v2884_v26 }
 0x74c   :  { %v950_v2 = vmul.f32 0.5, %v949_v11 }
 0x74e   :  { %v951_v61 = vsel %vm2887_vm2, %v949_v11, %v950_v2 }
 0x74f   :  { %2238 = vtanh.f32 %v951_v61 }
 0x755   :  { %v2239_v22 = vpop.eup %2238 }
 0x756   :  { %v953_v60 = vmul.f32 0.5, %v2239_v22 }
 0x758   :  { %v954_v18 = vadd.f32 0.5, %v953_v60 }
 0x75a   :  { %v955_v17 = vsel %vm2887_vm2, %v2239_v22, %v954_v18 }
 0x75b   :  { %958 = vrot.lane.b32.xlu2 %v955_v17, %s2304_s7  ;;  %v956_v14 = vmul.f32 %v955_v17, %v860_v46 }
 0x763   :  { %900 = vrot.lane.b32.xlu2 %v813_v52, %s2305_s8 }
 0x7b5   :  { %v959_v39 = vpop.permute.xlu2 %958 }
 0x7b6   :  { %v961_v7 = vmul.f32 %v959_v39, %v955_v17  ;;  %v1058_v39 = vld [vmem:[%s3384_s2 + $0x110] sm:$0xff] }
 0x7b7   :  { %1082 = vmatpush.msra.mxu2 %v1058_v39 }
 0x7b8   :  { %963 = vrot.lane.b32.xlu0 %v961_v7, %s2305_s8 }
 0x7b9   :  { %1187 = vmatpush.msrb.mxu2 %v2838_v6 }
 0x7bb   :  { %1188 = vmatpush.msrb.mxu2 %v2844_v63 }
 0x7bd   :  { %v901_v33 = vpop.permute.xlu2 %900  ;;  %1189 = vmatpush.msrb.mxu2 %v2852_v5 }
 0x7be   :  { %2172 = vmatmul.msk.f32.vlgmr.msrb.gmra.mxu1 %vm763_vm3, %v901_v33 }
 0x7bf   :  { %1190 = vmatpush.msrb.mxu2 %v2862_v0  ;;  %1161 = vmatpush.msrb.mxu1 %v1143_v45  ;;  %v1304_v45 = vld [vmem:[%s3384_s2 + $0x170] sm:$0xff] }
 0x7c1   :  { %1162 = vmatpush.msrb.mxu1 %v1142_v47 }
 0x82a   :  { %v964_v15 = vpop.permute.xlu0 %963 }
 0x82b   :  { %v966_v16 = vadd.f32 %v964_v15, %v956_v14 }
 0x82d   :  { %2240 = vtanh.f32 %v966_v16 }
 0x833   :  { %v2241_v24 = vpop.eup %2240 }
 0x834   :  { %969 = vrot.lane.b32.xlu1 %v2241_v24, %s2304_s7 }
 0x83b   :  { %v2938_v3 = vpop.f32.mrf.mxu1 }
 0x8a6   :  { %v970_v19 = vpop.permute.xlu1 %969 }
 0x8a7   :  { %v972_v25 = vmul.f32 %v970_v19, %v955_v17 }
 0x8a9   :  { %1007 = vrot.lane.b32.xlu0 %v972_v25, %s2305_s8  ;;  %v974_v31 = vmul.f32 0.01, %v972_v25  ;;  %vm973_vm6 = vcmp.gt.f32.partialorder %v972_v25, 0.0 }
 0x8ab   :  { %v975_v12 = vsel %vm973_vm6, %v972_v25, %v974_v31  ;;  %vm2045_vm6 = vcmask 1042432  }
 0x91b   :  { %v1008_v13 = vpop.permute.xlu0 %1007 }
 0x91c   :  { %2175 = vmatmul.msk.f32.vlgmr.msra.gmra.mxu1 %vm763_vm3, %v1008_v13 }
 0x999   :  { %v1028_v62 = vpop.f32.mrf.mxu1 }
 0x99a   :  { %v1031_v34 = vadd.f32 %v1028_v62, %v2884_v26 }
 0x99c   :  { %v1032_v36 = vmul.f32 0.5, %v1031_v34 }
 0x99e   :  { %v1033_v37 = vsel %vm2887_vm2, %v1031_v34, %v1032_v36 }
 0x99f   :  { %2242 = vtanh.f32 %v1033_v37 }
 0x9a5   :  { %v2243_v59 = vpop.eup %2242 }
 0x9a6   :  { %v1035_v40 = vmul.f32 0.5, %v2243_v59 }
 0x9a8   :  { %v1036_v28 = vadd.f32 0.5, %v1035_v40 }
 0x9aa   :  { %v1037_v56 = vsel %vm2887_vm2, %v2243_v59, %v1036_v28 }
 0x9ab   :  { %1040 = vrot.lane.b32.xlu1 %v1037_v56, %s2304_s7  ;;  %v1038_v53 = vmul.f32 %v1037_v56, %v966_v16 }
 0x9b3   :  { %875 = vrot.lane.b32.xlu1 %v869_v43, %s2305_s8 }
 0xa1d   :  { %v1041_v38 = vpop.permute.xlu1 %1040 }
 0xa1e   :  { %v1043_v48 = vmul.f32 %v1041_v38, %v1037_v56  ;;  %v1141_v38 = vld [vmem:[%s3384_s2 + $0x138] sm:$0xff] }
 0xa1f   :  { %1163 = vmatpush.msrb.mxu1 %v1141_v38 }
 0xa20   :  { %1045 = vrot.lane.b32.xlu2 %v1043_v48, %s2305_s8  ;;  %v1140_v48 = vld [vmem:[%s3384_s2 + $0x130] sm:$0xff] }
 0xa21   :  { %1164 = vmatpush.msrb.mxu1 %v1140_v48 }
 0xa23   :  { %1269 = vmatpush.msra.mxu1 %v2838_v6 }
 0xa25   :  { %v876_v49 = vpop.permute.xlu1 %875  ;;  %1270 = vmatpush.msra.mxu1 %v2844_v63 }
 0xa26   :  { %2171 = vmatmul.msk.f32.vlgmr.msra.gmra.mxu3 %vm763_vm3, %v876_v49 }
 0xa27   :  { %1105 = vmatpush.msra.mxu3 %v2838_v6  ;;  %1271 = vmatpush.msra.mxu1 %v2852_v5 }
 0xa28   :  { %981 = vrot.lane.b32.xlu2 %v975_v12, %s2305_s8 }
 0xa29   :  { %1106 = vmatpush.msra.mxu3 %v2844_v63  ;;  %1272 = vmatpush.msra.mxu1 %v2862_v0 }
 0xa2b   :  { %1107 = vmatpush.msra.mxu3 %v2852_v5 }
 0xa2d   :  { %1108 = vmatpush.msra.mxu3 %v2862_v0 }
 0xa7a   :  { %v1046_v35 = vpop.permute.xlu2 %1045 }
 0xa7b   :  { %v1048_v55 = vadd.f32 %v1046_v35, %v1038_v53 }
 0xa7d   :  { %2244 = vtanh.f32 %v1048_v55 }
 0xa82   :  { %v982_v30 = vpop.permute.xlu2 %981 }
 0xa83   :  { %v2245_v46 = vpop.eup %2244  ;;  %2174 = vmatmul.msk.f32.vlgmr.msrb.gmra.mxu3 %vm763_vm3, %v982_v30 }
 0xa84   :  { %1051 = vrot.lane.b32.xlu0 %v2245_v46, %s2304_s7 }
 0xaa9   :  { %v2982_v41 = vpop.f32.mrf.mxu3 }
 0xaf6   :  { %v1052_v57 = vpop.permute.xlu0 %1051 }
 0xaf7   :  { %v1054_v32 = vmul.f32 %v1052_v57, %v1037_v56 }
 0xaf9   :  { %1089 = vrot.lane.b32.xlu0 %v1054_v32, %s2305_s8  ;;  %v1056_v52 = vmul.f32 0.01, %v1054_v32  ;;  %vm1055_vm7 = vcmp.gt.f32.partialorder %v1054_v32, 0.0 }
 0xafb   :  { %v1057_v8 = vsel %vm1055_vm7, %v1054_v32, %v1056_v52  ;;  %v1223_v52 = vld [vmem:[%s3384_s2 + $0x158] sm:$0xff]  ;;  %vm2041_vm7 = vcmask 23552  }
 0xb06   :  { %v2984_v21 = vpop.f32.mrf.mxu3 }
 0xb6b   :  { %v1090_v23 = vpop.permute.xlu0 %1089 }
 0xb6c   :  { %2177 = vmatmul.msk.f32.vlgmr.msra.gmra.mxu3 %vm763_vm3, %v1090_v23 }
 0xbef   :  { %v1110_v11 = vpop.f32.mrf.mxu3 }
 0xbf0   :  { %v1113_v2 = vadd.f32 %v1110_v11, %v2884_v26 }
 0xbf2   :  { %v1114_v61 = vmul.f32 0.5, %v1113_v2 }
 0xbf4   :  { %v1115_v22 = vsel %vm2887_vm2, %v1113_v2, %v1114_v61 }
 0xbf5   :  { %2246 = vtanh.f32 %v1115_v22 }
 0xbfb   :  { %v2247_v60 = vpop.eup %2246 }
 0xbfc   :  { %v1117_v18 = vmul.f32 0.5, %v2247_v60 }
 0xbfe   :  { %v1118_v17 = vadd.f32 0.5, %v1117_v18 }
 0xc00   :  { %v1119_v1 = vsel %vm2887_vm2, %v2247_v60, %v1118_v17  ;;  %v1225_v17 = vld [vmem:[%s3384_s2 + $0x168] sm:$0xff] }
 0xc01   :  { %1122 = vrot.lane.b32.xlu1 %v1119_v1, %s2304_s7  ;;  %v1120_v15 = vmul.f32 %v1119_v1, %v1048_v55  ;;  %1243 = vmatpush.msrb.mxu3 %v1225_v17  ;;  %v1387_v17 = vld [vmem:[%s3384_s2 + $0x198] sm:$0xff] }
 0xc09   :  { %1063 = vrot.lane.b32.xlu1 %v1057_v8, %s2305_s8  ;;  %v1222_v8 = vld [vmem:[%s3384_s2 + $0x150] sm:$0xff] }
 0xc73   :  { %v1123_v7 = vpop.permute.xlu1 %1122 }
 0xc74   :  { %v1125_v33 = vmul.f32 %v1123_v7, %v1119_v1 }
 0xc76   :  { %1127 = vrot.lane.b32.xlu2 %v1125_v33, %s2305_s8 }
 0xc7b   :  { %v1064_v14 = vpop.permute.xlu1 %1063 }
 0xc7c   :  { %2176 = vmatmul.msk.f32.vlgmr.msra.gmra.mxu2 %vm763_vm3, %v1064_v14 }
 0xcd0   :  { %v1128_v16 = vpop.permute.xlu2 %1127 }
 0xcd1   :  { %v1130_v24 = vadd.f32 %v1128_v16, %v1120_v15 }
 0xcd3   :  { %2248 = vtanh.f32 %v1130_v24 }
 0xcd9   :  { %v2249_v19 = vpop.eup %2248 }
 0xcda   :  { %1133 = vrot.lane.b32.xlu0 %v2249_v19, %s2304_s7 }
 0xcff   :  { %v3014_v34 = vpop.f32.mrf.mxu2 }
 0xd4c   :  { %v1134_v25 = vpop.permute.xlu0 %1133 }
 0xd4d   :  { %v1136_v13 = vmul.f32 %v1134_v25, %v1119_v1  ;;  %v1224_v1 = vld [vmem:[%s3384_s2 + $0x160] sm:$0xff] }
 0xd4e   :  { %1244 = vmatpush.msrb.mxu3 %v1224_v1  ;;  %v1386_v1 = vld [vmem:[%s3384_s2 + $0x190] sm:$0xff] }
 0xd4f   :  { %1171 = vrot.lane.b32.xlu2 %v1136_v13, %s2305_s8  ;;  %v1138_v54 = vmul.f32 0.01, %v1136_v13  ;;  %vm1137_vm8 = vcmp.gt.f32.partialorder %v1136_v13, 0.0 }
 0xd50   :  { %1245 = vmatpush.msrb.mxu3 %v1223_v52 }
 0xd51   :  { %v1139_v44 = vsel %vm1137_vm8, %v1136_v13, %v1138_v54  ;;  %v1306_v54 = vld [vmem:[%s3384_s2 + $0x180] sm:$0xff]  ;;  %vm2074_vm8 = vcmask 263408  }
 0xd52   :  { %1246 = vmatpush.msrb.mxu3 %v1222_v8 }
 0xd54   :  { %1351 = vmatpush.msra.mxu3 %v2838_v6 }
 0xd56   :  { %1352 = vmatpush.msra.mxu3 %v2844_v63 }
 0xd58   :  { %1353 = vmatpush.msra.mxu3 %v2852_v5 }
 0xd5a   :  { %1354 = vmatpush.msra.mxu3 %v2862_v0 }
 0xda9   :  { %v1172_v62 = vpop.permute.xlu2 %1171 }
 0xdaa   :  { %2179 = vmatmul.msk.f32.vlgmr.msrb.gmra.mxu2 %vm763_vm3, %v1172_v62 }
 0xe2d   :  { %v1192_v36 = vpop.f32.mrf.mxu2 }
 0xe2e   :  { %v1195_v37 = vadd.f32 %v1192_v36, %v2884_v26 }
 0xe30   :  { %v1196_v59 = vmul.f32 0.5, %v1195_v37 }
 0xe32   :  { %v1197_v40 = vsel %vm2887_vm2, %v1195_v37, %v1196_v59 }
 0xe33   :  { %2250 = vtanh.f32 %v1197_v40 }
 0xe39   :  { %v2251_v28 = vpop.eup %2250 }
 0xe3a   :  { %v1199_v56 = vmul.f32 0.5, %v2251_v28 }
 0xe3c   :  { %v1200_v42 = vadd.f32 0.5, %v1199_v56 }
 0xe3e   :  { %v1201_v43 = vsel %vm2887_vm2, %v2251_v28, %v1200_v42 }
 0xe3f   :  { %1204 = vrot.lane.b32.xlu0 %v1201_v43, %s2304_s7  ;;  %v1202_v50 = vmul.f32 %v1201_v43, %v1130_v24 }
 0xe47   :  { %1145 = vrot.lane.b32.xlu0 %v1139_v44, %s2305_s8  ;;  %v1305_v44 = vld [vmem:[%s3384_s2 + $0x178] sm:$0xff] }
 0xeb1   :  { %v1205_v31 = vpop.permute.xlu0 %1204 }
 0xeb2   :  { %v1207_v49 = vmul.f32 %v1205_v31, %v1201_v43 }
 0xeb4   :  { %1209 = vrot.lane.b32.xlu1 %v1207_v49, %s2305_s8 }
 0xeb9   :  { %v1146_v12 = vpop.permute.xlu0 %1145 }
 0xeba   :  { %2178 = vmatmul.msk.f32.vlgmr.msrb.gmra.mxu1 %vm763_vm3, %v1146_v12 }
 0xf26   :  { %v1210_v4 = vpop.permute.xlu1 %1209 }
 0xf27   :  { %v1212_v27 = vadd.f32 %v1210_v4, %v1202_v50 }
 0xf29   :  { %2252 = vtanh.f32 %v1212_v27 }
 0xf2f   :  { %v2253_v51 = vpop.eup %2252 }
 0xf30   :  { %1215 = vrot.lane.b32.xlu2 %v2253_v51, %s2304_s7 }
 0xf37   :  { %v3044_v30 = vpop.f32.mrf.mxu1 }
 0xf8a   :  { %v1216_v53 = vpop.permute.xlu2 %1215 }
 0xf8b   :  { %v1218_v35 = vmul.f32 %v1216_v53, %v1201_v43  ;;  %v1307_v43 = vld [vmem:[%s3384_s2 + $0x188] sm:$0xff] }
 0xf8c   :  { %1325 = vmatpush.msra.mxu2 %v1307_v43  ;;  %v1470_v43 = vld [vmem:[%s3384_s2 + $0x1c0] sm:$0xff] }
 0xf8d   :  { %1253 = vrot.lane.b32.xlu1 %v1218_v35, %s2305_s8  ;;  %v1220_v60 = vmul.f32 0.01, %v1218_v35  ;;  %vm1219_vm9 = vcmp.gt.f32.partialorder %v1218_v35, 0.0 }
 0xf8e   :  { %1326 = vmatpush.msra.mxu2 %v1306_v54  ;;  %v1469_v54 = vld [vmem:[%s3384_s2 + $0x1b8] sm:$0xff] }
 0xf8f   :  { %v1221_v18 = vsel %vm1219_vm9, %v1218_v35, %v1220_v60  ;;  %v1389_v60 = vld [vmem:[%s3384_s2 + $0x1a8] sm:$0xff]  ;;  %vm2091_vm9 = vcmask 269312  }
 0xf90   :  { %1327 = vmatpush.msra.mxu2 %v1305_v44  ;;  %1407 = vmatpush.msrb.mxu1 %v1389_v60  ;;  %v1468_v44 = vld [vmem:[%s3384_s2 + $0x1b0] sm:$0xff]  ;;  %v1553_v60 = vld [vmem:[%s3384_s2 + $0x1e8] sm:$0xff] }
 0xf92   :  { %1328 = vmatpush.msra.mxu2 %v1304_v45 }
 0xf94   :  { %1433 = vmatpush.msrb.mxu2 %v2838_v6 }
 0xf96   :  { %1434 = vmatpush.msrb.mxu2 %v2844_v63 }
 0xf98   :  { %1435 = vmatpush.msrb.mxu2 %v2852_v5 }
 0xf9a   :  { %1436 = vmatpush.msrb.mxu2 %v2862_v0 }
 0xfff   :  { %v1254_v55 = vpop.permute.xlu1 %1253 }
0x1000   :  { %2181 = vmatmul.msk.f32.vlgmr.msra.gmra.mxu1 %vm763_vm3, %v1254_v55 }
0x107d   :  { %v1274_v46 = vpop.f32.mrf.mxu1 }
0x107e   :  { %v1277_v57 = vadd.f32 %v1274_v46, %v2884_v26 }
0x1080   :  { %v1278_v32 = vmul.f32 0.5, %v1277_v57 }
0x1082   :  { %v1279_v23 = vsel %vm2887_vm2, %v1277_v57, %v1278_v32 }
0x1083   :  { %2254 = vtanh.f32 %v1279_v23 }
0x1089   :  { %v2255_v11 = vpop.eup %2254 }
0x108a   :  { %v1281_v2 = vmul.f32 0.5, %v2255_v11 }
0x108c   :  { %v1282_v61 = vadd.f32 0.5, %v1281_v2 }
0x108e   :  { %v1283_v22 = vsel %vm2887_vm2, %v2255_v11, %v1282_v61 }
0x108f   :  { %1286 = vrot.lane.b32.xlu2 %v1283_v22, %s2304_s7  ;;  %v1284_v39 = vmul.f32 %v1283_v22, %v1212_v27 }
0x1097   :  { %1227 = vrot.lane.b32.xlu2 %v1221_v18, %s2305_s8  ;;  %v1388_v18 = vld [vmem:[%s3384_s2 + $0x1a0] sm:$0xff] }
0x1098   :  { %1408 = vmatpush.msrb.mxu1 %v1388_v18  ;;  %v1552_v18 = vld [vmem:[%s3384_s2 + $0x1e0] sm:$0xff] }
0x109a   :  { %1409 = vmatpush.msrb.mxu1 %v1387_v17  ;;  %v1551_v17 = vld [vmem:[%s3384_s2 + $0x1d8] sm:$0xff] }
0x109c   :  { %1410 = vmatpush.msrb.mxu1 %v1386_v1  ;;  %v1550_v1 = vld [vmem:[%s3384_s2 + $0x1d0] sm:$0xff] }
0x109e   :  { %1515 = vmatpush.msra.mxu1 %v2838_v6 }
0x10a0   :  { %1516 = vmatpush.msra.mxu1 %v2844_v63 }
0x10a2   :  { %1517 = vmatpush.msra.mxu1 %v2852_v5 }
0x10a4   :  { %1518 = vmatpush.msra.mxu1 %v2862_v0 }
0x10e9   :  { %v1287_v9 = vpop.permute.xlu2 %1286 }
0x10ea   :  { %v1289_v10 = vmul.f32 %v1287_v9, %v1283_v22 }
0x10ec   :  { %1291 = vrot.lane.b32.xlu0 %v1289_v10, %s2305_s8 }
0x10f1   :  { %v1228_v58 = vpop.permute.xlu2 %1227 }
0x10f2   :  { %2180 = vmatmul.msk.f32.vlgmr.msrb.gmra.mxu3 %vm763_vm3, %v1228_v58 }
0x115e   :  { %v1292_v7 = vpop.permute.xlu0 %1291 }
0x115f   :  { %v1294_v33 = vadd.f32 %v1292_v7, %v1284_v39 }
0x1161   :  { %2256 = vtanh.f32 %v1294_v33 }
0x1167   :  { %v2257_v14 = vpop.eup %2256 }
0x1168   :  { %1297 = vrot.lane.b32.xlu1 %v2257_v14, %s2304_s7 }
0x1175   :  { %v3074_v19 = vpop.f32.mrf.mxu3 }
0x11da   :  { %v1298_v15 = vpop.permute.xlu1 %1297 }
0x11db   :  { %v1300_v16 = vmul.f32 %v1298_v15, %v1283_v22 }
0x11dd   :  { %1335 = vrot.lane.b32.xlu0 %v1300_v16, %s2305_s8  ;;  %v1302_v56 = vmul.f32 0.01, %v1300_v16  ;;  %vm1301_vm10 = vcmp.gt.f32.partialorder %v1300_v16, 0.0 }
0x11df   :  { %v1303_v42 = vsel %vm1301_vm10, %v1300_v16, %v1302_v56 }
0x124f   :  { %v1336_v24 = vpop.permute.xlu0 %1335 }
0x1250   :  { %2183 = vmatmul.msk.f32.vlgmr.msra.gmra.mxu3 %vm763_vm3, %v1336_v24 }
0x12d3   :  { %v1356_v25 = vpop.f32.mrf.mxu3 }
0x12d4   :  { %v1359_v13 = vadd.f32 %v1356_v25, %v2884_v26 }
0x12d6   :  { %v1360_v62 = vmul.f32 0.5, %v1359_v13 }
0x12d8   :  { %v1361_v36 = vsel %vm2887_vm2, %v1359_v13, %v1360_v62 }
0x12d9   :  { %2258 = vtanh.f32 %v1361_v36 }
0x12df   :  { %v2259_v37 = vpop.eup %2258 }
0x12e0   :  { %v1363_v59 = vmul.f32 0.5, %v2259_v37 }
0x12e2   :  { %v1364_v40 = vadd.f32 0.5, %v1363_v59 }
0x12e4   :  { %v1365_v28 = vsel %vm2887_vm2, %v2259_v37, %v1364_v40 }
0x12e5   :  { %1368 = vrot.lane.b32.xlu1 %v1365_v28, %s2304_s7  ;;  %v1366_v31 = vmul.f32 %v1365_v28, %v1294_v33 }
0x12ed   :  { %1309 = vrot.lane.b32.xlu1 %v1303_v42, %s2305_s8  ;;  %v1471_v42 = vld [vmem:[%s3384_s2 + $0x1c8] sm:$0xff] }
0x12ee   :  { %1489 = vmatpush.msrb.mxu3 %v1471_v42  ;;  %v1633_v42 = vld [vmem:[%s3384_s2 + $0x1f8] sm:$0xff] }
0x12f0   :  { %1490 = vmatpush.msrb.mxu3 %v1470_v43  ;;  %v1632_v43 = vld [vmem:[%s3384_s2 + $0x1f0] sm:$0xff] }
0x12f2   :  { %1491 = vmatpush.msrb.mxu3 %v1469_v54  ;;  %v3218_v54 = vld [vmem:[%s3384_s2 + $0xa0] sm:$0xff] }
0x12f4   :  { %1492 = vmatpush.msrb.mxu3 %v1468_v44  ;;  %v3224_v44 = vld [vmem:[%s3384_s2 + $0x98] sm:$0xff] }
0x12f6   :  { %1597 = vmatpush.msra.mxu3 %v2838_v6 }
0x12f8   :  { %1598 = vmatpush.msra.mxu3 %v2844_v63 }
0x12fa   :  { %1599 = vmatpush.msra.mxu3 %v2852_v5 }
0x12fc   :  { %1600 = vmatpush.msra.mxu3 %v2862_v0 }
0x1357   :  { %v1369_v47 = vpop.permute.xlu1 %1368 }
0x1358   :  { %v1371_v38 = vmul.f32 %v1369_v47, %v1365_v28 }
0x135a   :  { %1373 = vrot.lane.b32.xlu2 %v1371_v38, %s2305_s8 }
0x135f   :  { %v1310_v48 = vpop.permute.xlu1 %1309 }
0x1360   :  { %2182 = vmatmul.msk.f32.vlgmr.msra.gmra.mxu2 %vm763_vm3, %v1310_v48 }
0x1361   :  { %1571 = vmatpush.msra.mxu2 %v1553_v60 }
0x1363   :  { %1572 = vmatpush.msra.mxu2 %v1552_v18  ;;  %v1717_v18 = vld [vmem:[%s3384_s2 + $0x228] sm:$0xff] }
0x1365   :  { %1573 = vmatpush.msra.mxu2 %v1551_v17  ;;  %v1716_v17 = vld [vmem:[%s3384_s2 + $0x220] sm:$0xff] }
0x1367   :  { %1574 = vmatpush.msra.mxu2 %v1550_v1  ;;  %v1715_v1 = vld [vmem:[%s3384_s2 + $0x218] sm:$0xff] }
0x13b4   :  { %v1374_v49 = vpop.permute.xlu2 %1373 }
0x13b5   :  { %v1376_v12 = vadd.f32 %v1374_v49, %v1366_v31 }
0x13b7   :  { %2260 = vtanh.f32 %v1376_v12 }
0x13bd   :  { %v2261_v50 = vpop.eup %2260 }
0x13be   :  { %1379 = vrot.lane.b32.xlu0 %v2261_v50, %s2304_s7 }
0x13e3   :  { %v3104_v53 = vpop.f32.mrf.mxu2 }
0x1430   :  { %v1380_v4 = vpop.permute.xlu0 %1379 }
0x1431   :  { %v1382_v27 = vmul.f32 %v1380_v4, %v1365_v28 }
0x1433   :  { %1417 = vrot.lane.b32.xlu2 %v1382_v27, %s2305_s8  ;;  %v1384_v61 = vmul.f32 0.01, %v1382_v27  ;;  %vm1383_vm11 = vcmp.gt.f32.partialorder %v1382_v27, 0.0 }
0x1435   :  { %v1385_v22 = vsel %vm1383_vm11, %v1382_v27, %v1384_v61 }
0x148d   :  { %v1418_v51 = vpop.permute.xlu2 %1417 }
0x148e   :  { %2185 = vmatmul.msk.f32.vlgmr.msrb.gmra.mxu2 %vm763_vm3, %v1418_v51 }
0x148f   :  { %1679 = vmatpush.msrb.mxu2 %v2838_v6 }
0x1491   :  { %1680 = vmatpush.msrb.mxu2 %v2844_v63 }
0x1493   :  { %1681 = vmatpush.msrb.mxu2 %v2852_v5 }
0x1495   :  { %1682 = vmatpush.msrb.mxu2 %v2862_v0 }
0x1511   :  { %v1438_v35 = vpop.f32.mrf.mxu2 }
0x1512   :  { %v1441_v55 = vadd.f32 %v1438_v35, %v2884_v26 }
0x1514   :  { %v1442_v46 = vmul.f32 0.5, %v1441_v55 }
0x1516   :  { %v1443_v57 = vsel %vm2887_vm2, %v1441_v55, %v1442_v46 }
0x1517   :  { %2262 = vtanh.f32 %v1443_v57 }
0x151d   :  { %v2263_v32 = vpop.eup %2262 }
0x151e   :  { %v1445_v23 = vmul.f32 0.5, %v2263_v32 }
0x1520   :  { %v1446_v11 = vadd.f32 0.5, %v1445_v23 }
0x1522   :  { %v1447_v2 = vsel %vm2887_vm2, %v2263_v32, %v1446_v11 }
0x1523   :  { %1450 = vrot.lane.b32.xlu0 %v1447_v2, %s2304_s7  ;;  %v1448_v10 = vmul.f32 %v1447_v2, %v1376_v12 }
0x152b   :  { %1391 = vrot.lane.b32.xlu0 %v1385_v22, %s2305_s8 }
0x1595   :  { %v1451_v52 = vpop.permute.xlu0 %1450 }
0x1596   :  { %v1453_v8 = vmul.f32 %v1451_v52, %v1447_v2 }
0x1598   :  { %1455 = vrot.lane.b32.xlu1 %v1453_v8, %s2305_s8 }
0x159d   :  { %v1392_v9 = vpop.permute.xlu0 %1391 }
0x159e   :  { %2184 = vmatmul.msk.f32.vlgmr.msrb.gmra.mxu1 %vm763_vm3, %v1392_v9 }
0x160a   :  { %v1456_v58 = vpop.permute.xlu1 %1455 }
0x160b   :  { %v1458_v39 = vadd.f32 %v1456_v58, %v1448_v10 }
0x160d   :  { %2264 = vtanh.f32 %v1458_v39 }
0x1613   :  { %v2265_v7 = vpop.eup %2264 }
0x1614   :  { %1461 = vrot.lane.b32.xlu2 %v2265_v7, %s2304_s7 }
0x161b   :  { %v3134_v16 = vpop.f32.mrf.mxu1 }
0x166e   :  { %v1462_v33 = vpop.permute.xlu2 %1461 }
0x166f   :  { %v1464_v14 = vmul.f32 %v1462_v33, %v1447_v2 }
0x1671   :  { %1499 = vrot.lane.b32.xlu1 %v1464_v14, %s2305_s8  ;;  %v1466_v28 = vmul.f32 0.01, %v1464_v14  ;;  %vm1465_vm12 = vcmp.gt.f32.partialorder %v1464_v14, 0.0 }
0x1673   :  { %v1467_v56 = vsel %vm1465_vm12, %v1464_v14, %v1466_v28  ;;  %v1635_v28 = vld [vmem:[%s3384_s2 + $0x208] sm:$0xff] }
0x1674   :  { %1653 = vmatpush.msrb.mxu1 %v1635_v28 }
0x16e3   :  { %v1500_v15 = vpop.permute.xlu1 %1499 }
0x16e4   :  { %2187 = vmatmul.msk.f32.vlgmr.msra.gmra.mxu1 %vm763_vm3, %v1500_v15 }
0x1761   :  { %v1520_v24 = vpop.f32.mrf.mxu1 }
0x1762   :  { %v1523_v25 = vadd.f32 %v1520_v24, %v2884_v26 }
0x1764   :  { %v1524_v13 = vmul.f32 0.5, %v1523_v25 }
0x1766   :  { %v1525_v62 = vsel %vm2887_vm2, %v1523_v25, %v1524_v13 }
0x1767   :  { %2266 = vtanh.f32 %v1525_v62 }
0x176d   :  { %v2267_v36 = vpop.eup %2266 }
0x176e   :  { %v1527_v37 = vmul.f32 0.5, %v2267_v36 }
0x1770   :  { %v1528_v59 = vadd.f32 0.5, %v1527_v37 }
0x1772   :  { %v1529_v40 = vsel %vm2887_vm2, %v2267_v36, %v1528_v59 }
0x1773   :  { %1532 = vrot.lane.b32.xlu2 %v1529_v40, %s2304_s7  ;;  %v1530_v48 = vmul.f32 %v1529_v40, %v1458_v39 }
0x177b   :  { %1473 = vrot.lane.b32.xlu2 %v1467_v56, %s2305_s8  ;;  %v1634_v56 = vld [vmem:[%s3384_s2 + $0x200] sm:$0xff] }
0x177c   :  { %1654 = vmatpush.msrb.mxu1 %v1634_v56 }
0x177e   :  { %1655 = vmatpush.msrb.mxu1 %v1633_v42 }
0x1780   :  { %1656 = vmatpush.msrb.mxu1 %v1632_v43  ;;  %v1799_v43 = vld [vmem:[%s3384_s2 + $0x248] sm:$0xff] }
0x1782   :  { %1761 = vmatpush.msra.mxu1 %v3218_v54 }
0x1784   :  { %1762 = vmatpush.msra.mxu1 %v3224_v44 }
0x17cd   :  { %v1533_v45 = vpop.permute.xlu2 %1532 }
0x17ce   :  { %v1535_v47 = vmul.f32 %v1533_v45, %v1529_v40  ;;  %v3230_v45 = vld [vmem:[%s3384_s2 + $0x90] sm:$0xff] }
0x17cf   :  { %1763 = vmatpush.msra.mxu1 %v3230_v45 }
0x17d0   :  { %1537 = vrot.lane.b32.xlu0 %v1535_v47, %s2305_s8 }
0x17d1   :  { %1764 = vmatpush.msra.mxu1 %v2862_v0 }
0x17d5   :  { %v1474_v38 = vpop.permute.xlu2 %1473 }
0x17d6   :  { %2186 = vmatmul.msk.f32.vlgmr.msrb.gmra.mxu3 %vm763_vm3, %v1474_v38 }
0x17d7   :  { %1735 = vmatpush.msrb.mxu3 %v1717_v18 }
0x17d9   :  { %1736 = vmatpush.msrb.mxu3 %v1716_v17 }
0x17db   :  { %1737 = vmatpush.msrb.mxu3 %v1715_v1  ;;  %v1881_v1 = vld [vmem:[%s3384_s2 + $0x268] sm:$0xff] }
0x1842   :  { %v1538_v31 = vpop.permute.xlu0 %1537 }
0x1843   :  { %v1540_v49 = vadd.f32 %v1538_v31, %v1530_v48 }
0x1845   :  { %2268 = vtanh.f32 %v1540_v49 }
0x184b   :  { %v2269_v12 = vpop.eup %2268 }
0x184c   :  { %1543 = vrot.lane.b32.xlu1 %v2269_v12, %s2304_s7 }
0x1859   :  { %v3164_v51 = vpop.f32.mrf.mxu3 }
0x18be   :  { %v1544_v50 = vpop.permute.xlu1 %1543 }
0x18bf   :  { %v1546_v4 = vmul.f32 %v1544_v50, %v1529_v40 }
0x18c1   :  { %1581 = vrot.lane.b32.xlu0 %v1546_v4, %s2305_s8  ;;  %v1548_v61 = vmul.f32 0.01, %v1546_v4  ;;  %vm1547_vm13 = vcmp.gt.f32.partialorder %v1546_v4, 0.0 }
0x18c3   :  { %v1549_v22 = vsel %vm1547_vm13, %v1546_v4, %v1548_v61 }
0x1933   :  { %v1582_v27 = vpop.permute.xlu0 %1581 }
0x1934   :  { %2189 = vmatmul.msk.f32.vlgmr.msra.gmra.mxu3 %vm763_vm3, %v1582_v27 }
0x19b7   :  { %v1602_v35 = vpop.f32.mrf.mxu3 }
0x19b8   :  { %v1605_v55 = vadd.f32 %v1602_v35, %v2884_v26 }
0x19ba   :  { %v1606_v46 = vmul.f32 0.5, %v1605_v55 }
0x19bc   :  { %v1607_v57 = vsel %vm2887_vm2, %v1605_v55, %v1606_v46 }
0x19bd   :  { %2270 = vtanh.f32 %v1607_v57 }
0x19c3   :  { %v2271_v32 = vpop.eup %2270 }
0x19c4   :  { %v1609_v23 = vmul.f32 0.5, %v2271_v32 }
0x19c6   :  { %v1610_v11 = vadd.f32 0.5, %v1609_v23 }
0x19c8   :  { %v1611_v2 = vsel %vm2887_vm2, %v2271_v32, %v1610_v11 }
0x19c9   :  { %1614 = vrot.lane.b32.xlu1 %v1611_v2, %s2304_s7  ;;  %v1612_v10 = vmul.f32 %v1611_v2, %v1540_v49 }
0x19d1   :  { %1555 = vrot.lane.b32.xlu1 %v1549_v22, %s2305_s8 }
0x1a3b   :  { %v1615_v52 = vpop.permute.xlu1 %1614 }
0x1a3c   :  { %v1617_v8 = vmul.f32 %v1615_v52, %v1611_v2  ;;  %v1714_v52 = vld [vmem:[%s3384_s2 + $0x210] sm:$0xff] }
0x1a3d   :  { %1738 = vmatpush.msrb.mxu3 %v1714_v52  ;;  %v1879_v52 = vld [vmem:[%s3384_s2 + $0x258] sm:$0xff] }
0x1a3e   :  { %1619 = vrot.lane.b32.xlu2 %v1617_v8, %s2305_s8  ;;  %v2301_v8 = vld [vmem:[%s3384_s2 + $0x88] sm:$0xff] }
0x1a3f   :  { %1843 = vmatpush.msra.mxu3 %v3218_v54 }
0x1a41   :  { %1844 = vmatpush.msra.mxu3 %v3224_v44 }
0x1a43   :  { %v1556_v9 = vpop.permute.xlu1 %1555  ;;  %1845 = vmatpush.msra.mxu3 %v3230_v45 }
0x1a44   :  { %2188 = vmatmul.msk.f32.vlgmr.msra.gmra.mxu2 %vm763_vm3, %v1556_v9 }
0x1a45   :  { %1846 = vmatpush.msra.mxu3 %v2301_v8  ;;  %1817 = vmatpush.msra.mxu2 %v1799_v43 }
0x1a98   :  { %v1620_v58 = vpop.permute.xlu2 %1619 }
0x1a99   :  { %v1622_v39 = vadd.f32 %v1620_v58, %v1612_v10 }
0x1a9b   :  { %2272 = vtanh.f32 %v1622_v39 }
0x1aa1   :  { %v2273_v7 = vpop.eup %2272 }
0x1aa2   :  { %1625 = vrot.lane.b32.xlu0 %v2273_v7, %s2304_s7 }
0x1ac7   :  { %v3194_v33 = vpop.f32.mrf.mxu2 }
0x1b14   :  { %v1626_v6 = vpop.permute.xlu0 %1625 }
0x1b15   :  { %v1628_v63 = vmul.f32 %v1626_v6, %v1611_v2 }
0x1b17   :  { %1663 = vrot.lane.b32.xlu2 %v1628_v63, %s2305_s8  ;;  %v1630_v59 = vmul.f32 0.01, %v1628_v63  ;;  %vm1629_vm14 = vcmp.gt.f32.partialorder %v1628_v63, 0.0 }
0x1b19   :  { %v1631_v40 = vsel %vm1629_vm14, %v1628_v63, %v1630_v59 }
0x1b71   :  { %v1664_v5 = vpop.permute.xlu2 %1663 }
0x1b72   :  { %2191 = vmatmul.msk.f32.vlgmr.msrb.gmra.mxu2 %vm763_vm3, %v1664_v5 }
0x1bf5   :  { %v1684_v14 = vpop.f32.mrf.mxu2 }
0x1bf6   :  { %v1687_v15 = vadd.f32 %v1684_v14, %v2884_v26 }
0x1bf8   :  { %v1688_v24 = vmul.f32 0.5, %v1687_v15 }
0x1bfa   :  { %v1689_v25 = vsel %vm2887_vm2, %v1687_v15, %v1688_v24 }
0x1bfb   :  { %2274 = vtanh.f32 %v1689_v25 }
0x1c01   :  { %v2275_v13 = vpop.eup %2274 }
0x1c02   :  { %v1691_v62 = vmul.f32 0.5, %v2275_v13 }
0x1c04   :  { %v1692_v36 = vadd.f32 0.5, %v1691_v62 }
0x1c06   :  { %v1693_v37 = vsel %vm2887_vm2, %v2275_v13, %v1692_v36 }
0x1c07   :  { %1696 = vrot.lane.b32.xlu0 %v1693_v37, %s2304_s7  ;;  %v1694_v31 = vmul.f32 %v1693_v37, %v1622_v39 }
0x1c0f   :  { %1637 = vrot.lane.b32.xlu0 %v1631_v40, %s2305_s8 }
0x1c79   :  { %v1697_v47 = vpop.permute.xlu0 %1696 }
0x1c7a   :  { %v1699_v38 = vmul.f32 %v1697_v47, %v1693_v37  ;;  %v1798_v47 = vld [vmem:[%s3384_s2 + $0x240] sm:$0xff] }
0x1c7b   :  { %1818 = vmatpush.msra.mxu2 %v1798_v47 }
0x1c7c   :  { %1701 = vrot.lane.b32.xlu1 %v1699_v38, %s2305_s8  ;;  %v1797_v38 = vld [vmem:[%s3384_s2 + $0x238] sm:$0xff] }
0x1c7d   :  { %1819 = vmatpush.msra.mxu2 %v1797_v38 }
0x1c81   :  { %v1638_v48 = vpop.permute.xlu0 %1637 }
0x1c82   :  { %2190 = vmatmul.msk.f32.vlgmr.msrb.gmra.mxu1 %vm763_vm3, %v1638_v48  ;;  %v1796_v48 = vld [vmem:[%s3384_s2 + $0x230] sm:$0xff] }
0x1c83   :  { %1820 = vmatpush.msra.mxu2 %v1796_v48  ;;  %1899 = vmatpush.msrb.mxu1 %v1881_v1 }
0x1c85   :  { %1925 = vmatpush.msrb.mxu2 %v3218_v54  ;;  %1900 = vmatpush.msrb.mxu1 %v1880_v29 }
0x1c87   :  { %1926 = vmatpush.msrb.mxu2 %v3224_v44  ;;  %1901 = vmatpush.msrb.mxu1 %v1879_v52 }
0x1c89   :  { %1927 = vmatpush.msrb.mxu2 %v3230_v45 }
0x1c8b   :  { %1928 = vmatpush.msrb.mxu2 %v2301_v8  ;;  %v1878_v8 = vld [vmem:[%s3384_s2 + $0x250] sm:$0xff] }
0x1c8c   :  { %1902 = vmatpush.msrb.mxu1 %v1878_v8 }
0x1cee   :  { %v1702_v49 = vpop.permute.xlu1 %1701 }
0x1cef   :  { %v1704_v12 = vadd.f32 %v1702_v49, %v1694_v31 }
0x1cf1   :  { %2276 = vtanh.f32 %v1704_v12 }
0x1cf7   :  { %v2277_v50 = vpop.eup %2276 }
0x1cf8   :  { %1707 = vrot.lane.b32.xlu2 %v2277_v50, %s2304_s7 }
0x1cff   :  { %v3239_v0 = vpop.f32.mrf.mxu1 }
0x1d52   :  { %v1708_v4 = vpop.permute.xlu2 %1707 }
0x1d53   :  { %v1710_v27 = vmul.f32 %v1708_v4, %v1693_v37 }
0x1d55   :  { %1745 = vrot.lane.b32.xlu1 %v1710_v27, %s2305_s8  ;;  %v1712_v22 = vmul.f32 0.01, %v1710_v27  ;;  %vm1711_vm15 = vcmp.gt.f32.partialorder %v1710_v27, 0.0 }
0x1d57   :  { %v1713_v60 = vsel %vm1711_vm15, %v1710_v27, %v1712_v22 }
0x1dc7   :  { %v1746_v35 = vpop.permute.xlu1 %1745 }
0x1dc8   :  { %2193 = vmatmul.msk.f32.vlgmr.msra.gmra.mxu1 %vm763_vm3, %v1746_v35 }
0x1e45   :  { %v1766_v55 = vpop.f32.mrf.mxu1 }
0x1e46   :  { %v1769_v46 = vadd.f32 %v1766_v55, %v2884_v26 }
0x1e48   :  { %v1770_v57 = vmul.f32 0.5, %v1769_v46 }
0x1e4a   :  { %v1771_v32 = vsel %vm2887_vm2, %v1769_v46, %v1770_v57 }
0x1e4b   :  { %2278 = vtanh.f32 %v1771_v32 }
0x1e51   :  { %v2279_v23 = vpop.eup %2278 }
0x1e52   :  { %v1773_v11 = vmul.f32 0.5, %v2279_v23 }
0x1e54   :  { %v1774_v2 = vadd.f32 0.5, %v1773_v11 }
0x1e56   :  { %v1775_v61 = vsel %vm2887_vm2, %v2279_v23, %v1774_v2 }
0x1e57   :  { %1778 = vrot.lane.b32.xlu2 %v1775_v61, %s2304_s7  ;;  %v1776_v39 = vmul.f32 %v1775_v61, %v1704_v12 }
0x1e5f   :  { %1719 = vrot.lane.b32.xlu2 %v1713_v60, %s2305_s8 }
0x1eb1   :  { %v1779_v9 = vpop.permute.xlu2 %1778 }
0x1eb2   :  { %v1781_v10 = vmul.f32 %v1779_v9, %v1775_v61 }
0x1eb4   :  { %1783 = vrot.lane.b32.xlu0 %v1781_v10, %s2305_s8 }
0x1eb9   :  { %v1720_v58 = vpop.permute.xlu2 %1719 }
0x1eba   :  { %2192 = vmatmul.msk.f32.vlgmr.msrb.gmra.mxu3 %vm763_vm3, %v1720_v58 }
0x1f26   :  { %v1784_v7 = vpop.permute.xlu0 %1783 }
0x1f27   :  { %v1786_v6 = vadd.f32 %v1784_v7, %v1776_v39 }
0x1f29   :  { %2280 = vtanh.f32 %v1786_v6 }
0x1f2f   :  { %v2281_v63 = vpop.eup %2280 }
0x1f30   :  { %1789 = vrot.lane.b32.xlu1 %v2281_v63, %s2304_s7 }
0x1f3d   :  { %v3271_v24 = vpop.f32.mrf.mxu3 }
0x1fa2   :  { %v1790_v5 = vpop.permute.xlu1 %1789 }
0x1fa3   :  { %v1792_v14 = vmul.f32 %v1790_v5, %v1775_v61 }
0x1fa5   :  { %1827 = vrot.lane.b32.xlu0 %v1792_v14, %s2305_s8  ;;  %v1794_v56 = vmul.f32 0.01, %v1792_v14  ;;  %vm1793_vm0 = vcmp.gt.f32.partialorder %v1792_v14, 0.0 }
0x1fa7   :  { %v1795_v42 = vsel %vm1793_vm0, %v1792_v14, %v1794_v56  ;;  %v1963_v14 = vld [vmem:[%s3384_s2 + $0x288] sm:$0xff]  ;;  %v922_v56 = vadd.f32 %v2938_v3, %v2982_v41 }
0x1fa8   :  { %1981 = vmatpush.msrb.mxu3 %v1963_v14 }
0x2017   :  { %v1828_v15 = vpop.permute.xlu0 %1827 }
0x2018   :  { %2195 = vmatmul.msk.f32.vlgmr.msra.gmra.mxu3 %vm763_vm3, %v1828_v15  ;;  %v1962_v15 = vld [vmem:[%s3384_s2 + $0x280] sm:$0xff] }
0x2019   :  { %1982 = vmatpush.msrb.mxu3 %v1962_v15 }
0x209b   :  { %v1848_v25 = vpop.f32.mrf.mxu3 }
0x209c   :  { %v1851_v13 = vadd.f32 %v1848_v25, %v2884_v26 }
0x209e   :  { %v1852_v62 = vmul.f32 0.5, %v1851_v13 }
0x20a0   :  { %v1853_v36 = vsel %vm2887_vm2, %v1851_v13, %v1852_v62  ;;  %v1961_v13 = vld [vmem:[%s3384_s2 + $0x278] sm:$0xff]  ;;  %v1960_v62 = vld [vmem:[%s3384_s2 + $0x270] sm:$0xff] }
0x20a1   :  { %2282 = vtanh.f32 %v1853_v36  ;;  %1983 = vmatpush.msrb.mxu3 %v1961_v13 }
0x20a3   :  { %1984 = vmatpush.msrb.mxu3 %v1960_v62 }
0x20a7   :  { %v2283_v37 = vpop.eup %2282 }
0x20a8   :  { %v1855_v59 = vmul.f32 0.5, %v2283_v37 }
0x20aa   :  { %v1856_v40 = vadd.f32 0.5, %v1855_v59  ;;  %v1996_v59 = vld [vmem:[%s3384_s2 + $0x2a8] sm:$0xff] }
0x20ac   :  { %v1857_v28 = vsel %vm2887_vm2, %v2283_v37, %v1856_v40  ;;  %v1997_v37 = vld [vmem:[%s3384_s2 + $0x2b0] sm:$0x3f]  ;;  %v1995_v40 = vld [vmem:[%s3384_s2 + $0x2a0] sm:$0xff] }
0x20ad   :  { %1860 = vrot.lane.b32.xlu1 %v1857_v28, %s2304_s7  ;;  %v1858_v50 = vmul.f32 %v1857_v28, %v1786_v6  ;;  %2199 = vmatpush.msk.msra.mxu1 %vm2004_vm4, %v1997_v37 }
0x20af   :  { %2021 = vmatpush.msra.mxu1 %v1996_v59 }
0x20b1   :  { %2022 = vmatpush.msra.mxu1 %v1995_v40 }
0x20b5   :  { %1801 = vrot.lane.b32.xlu1 %v1795_v42, %s2305_s8  ;;  %v1005_v42 = vadd.f32 %v2984_v21, %v922_v56  ;;  %v2226_v21 = vld [vmem:[%s3384_s2 + $0x300] ss:$0 sm:$0xff] }
0x20b7   :  { %v1087_v43 = vadd.f32 %v3014_v34, %v1005_v42 }
0x20b9   :  { %v1169_v47 = vadd.f32 %v3044_v30, %v1087_v43 }
0x20bb   :  { %v1251_v38 = vadd.f32 %v3074_v19, %v1169_v47 }
0x20bd   :  { %v1333_v48 = vadd.f32 %v3104_v53, %v1251_v38  ;;  %v686_v53 = vadd.f32 %v2226_v21, %v2877_v20 }
0x211f   :  { %v1861_v31 = vpop.permute.xlu1 %1860 }
0x2120   :  { %v1863_v49 = vmul.f32 %v1861_v31, %v1857_v28  ;;  %v1415_v31 = vadd.f32 %v3134_v16, %v1333_v48 }
0x2122   :  { %1865 = vrot.lane.b32.xlu2 %v1863_v49, %s2305_s8  ;;  %v1497_v49 = vadd.f32 %v3164_v51, %v1415_v31  ;;  %v2228_v51 = vld [vmem:[%s3384_s2 + $0x290] ss:$0 sm:$0xff] }
0x2127   :  { %v1802_v12 = vpop.permute.xlu1 %1801 }
0x2128   :  { %2194 = vmatmul.msk.f32.vlgmr.msra.gmra.mxu2 %vm763_vm3, %v1802_v12  ;;  %v1579_v12 = vadd.f32 %v3194_v33, %v1497_v49 }
0x217c   :  { %v1866_v4 = vpop.permute.xlu2 %1865 }
0x217d   :  { %v1868_v27 = vadd.f32 %v1866_v4, %v1858_v50  ;;  %v1661_v50 = vadd.f32 %v3239_v0, %v1579_v12 }
0x217f   :  { %2284 = vtanh.f32 %v1868_v27  ;;  %v1743_v3 = vadd.f32 %v3271_v24, %v1661_v50  ;;  %v2229_v24 = vld [vmem:[%s3384_s2 + $0x2b8] ss:$0 sm:$0xff] }
0x2185   :  { %v2285_v35 = vpop.eup %2284 }
0x2186   :  { %1871 = vrot.lane.b32.xlu0 %v2285_v35, %s2304_s7 }
0x21ab   :  { %v3300_v45 = vpop.f32.mrf.mxu2 }
0x21ac   :  { %v1825_v34 = vadd.f32 %v3300_v45, %v1743_v3 }
0x21f8   :  { %v1872_v54 = vpop.permute.xlu0 %1871 }
0x21f9   :  { %v1874_v55 = vmul.f32 %v1872_v54, %v1857_v28  ;;  %v1994_v28 = vld [vmem:[%s3384_s2 + $0x298] sm:$0xff] }
0x21fa   :  { %2023 = vmatpush.msra.mxu1 %v1994_v28 }
0x21fb   :  { %1909 = vrot.lane.b32.xlu2 %v1874_v55, %s2305_s8  ;;  %v1876_v17 = vmul.f32 0.01, %v1874_v55  ;;  %vm1875_vm1 = vcmp.gt.f32.partialorder %v1874_v55, 0.0 }
0x2255   :  { %v1910_v44 = vpop.permute.xlu2 %1909 }
0x2256   :  { %2197 = vmatmul.msk.f32.vlgmr.msrb.gmra.mxu2 %vm763_vm3, %v1910_v44 }
0x22d9   :  { %v1930_v46 = vpop.f32.mrf.mxu2 }
0x22da   :  { %v1933_v57 = vadd.f32 %v1930_v46, %v2884_v26  ;;  %v1877_v26 = vsel %vm1875_vm1, %v1874_v55, %v1876_v17  ;;  %v2040_v46 = vld [vmem:[%s3384_s2 + $0x2c0] sm:$0x7]  ;;  %s2307_s2 = smov 98  }
0x22db   :  { %2201 = vmatpush.msk.msra.mxu2 %vm2045_vm6, %v2040_v46 }
0x22dc   :  { %v1934_v32 = vmul.f32 0.5, %v1933_v57 }
0x22de   :  { %v1935_v23 = vsel %vm2887_vm2, %v1933_v57, %v1934_v32 }
0x22df   :  { %2286 = vtanh.f32 %v1935_v23 }
0x22e5   :  { %v2287_v11 = vpop.eup %2286 }
0x22e6   :  { %v1937_v2 = vmul.f32 0.5, %v2287_v11 }
0x22e8   :  { %v1938_v61 = vadd.f32 0.5, %v1937_v2 }
0x22ea   :  { %v1939_v22 = vsel %vm2887_vm2, %v2287_v11, %v1938_v61 }
0x22eb   :  { %1942 = vrot.lane.b32.xlu0 %v1939_v22, %s2304_s7  ;;  %v1940_v9 = vmul.f32 %v1939_v22, %v1868_v27 }
0x235d   :  { %v1943_v60 = vpop.permute.xlu0 %1942 }
0x235e   :  { %v1945_v18 = vmul.f32 %v1943_v60, %v1939_v22 }
0x2360   :  { %1947 = vrot.lane.b32.xlu1 %v1945_v18, %s2305_s8 }
0x2368   :  { %1883 = vrot.lane.b32.xlu1 %v1877_v26, %s2305_s8 }
0x23d2   :  { %v1948_v10 = vpop.permute.xlu1 %1947 }
0x23d3   :  { %v1950_v58 = vadd.f32 %v1948_v10, %v1940_v9 }
0x23d5   :  { %2288 = vtanh.f32 %v1950_v58 }
0x23da   :  { %v1884_v39 = vpop.permute.xlu1 %1883 }
0x23db   :  { %v2289_v7 = vpop.eup %2288  ;;  %2196 = vmatmul.msk.f32.vlgmr.msrb.gmra.mxu1 %vm763_vm3, %v1884_v39 }
0x23dc   :  { %1953 = vrot.lane.b32.xlu2 %v2289_v7, %s2304_s7 }
0x2436   :  { %v1954_v6 = vpop.permute.xlu2 %1953 }
0x2437   :  { %v1956_v63 = vmul.f32 %v1954_v6, %v1939_v22 }
0x2439   :  { %v1958_v5 = vmul.f32 0.01, %v1956_v63  ;;  %vm1957_vm2 = vcmp.gt.f32.partialorder %v1956_v63, 0.0 }
0x243b   :  { %v1959_v25 = vsel %vm1957_vm2, %v1956_v63, %v1958_v5 }
0x243c   :  { %1965 = vrot.lane.b32.xlu0 %v1959_v25, %s2305_s8 }
0x2458   :  { %v1904_v41 = vpop.f32.mrf.mxu1 }
0x2459   :  { %v1907_v30 = vadd.f32 %v1904_v41, %v1825_v34 }
0x24ae   :  { %v1966_v36 = vpop.permute.xlu0 %1965 }
0x24af   :  { %2198 = vmatmul.msk.f32.vlgmr.msrb.gmra.mxu3 %vm763_vm3, %v1966_v36  ;;  %vm2000_vm3 = vcmask 244736  }
0x2532   :  { %v1986_v19 = vpop.f32.mrf.mxu3 }
0x2533   :  { %v1989_v16 = vadd.f32 %v1986_v19, %v1907_v30 }
0x2535   :  { %v1990_v33 = vadd.f32 %v1989_v16, %v686_v53 }
0x2537   :  { %v1993_v0 = vadd.f32 %v2228_v51, %v1990_v33 }
0x2539   :  { %2200 = vmatmul.msk.f32.vlgmr.msra.gmra.mxu1 %vm2000_vm3, %v1993_v0 }
0x25b6   :  { %v2025_v4 = vpop.f32.mrf.mxu1 }
0x25b7   :  { %v2026_v27 = vadd.f32 %v2229_v24, %v2025_v4 }
0x25b9   :  { %v2029_v35 = vsel %vm2028_vm5, %v2026_v27, -inf }
0x25ba   :  { %2030 = vmax.xlane.f32.xlu2 %v2029_v35 }
0x262d   :  { %v2031_v20 = vpop.xlane.xlu2 %2030 }
0x262e   :  { %v2032_v54 = vsub.f32 %v2026_v27, %v2031_v20 }
0x2630   :  { %v2033_v55 = vmul.f32 1.442695, %v2032_v54 }
0x2632   :  { %2290 = vpow2.f32 %v2033_v55 }
0x2638   :  { %v2291_v44 = vpop.eup %2290 }
0x2639   :  { %v2035_v45 = vsel %vm2028_vm5, %v2291_v44, 0.0 }
0x263a   :  { %2036 = vadd.xlane.f32.xlu0 %v2035_v45 }
0x26ad   :  { %v2037_v57 = vpop.xlane.xlu0 %2036 }
0x26ae   :  { %2292 = vrcp.f32 %v2037_v57 }
0x26b4   :  { %v2293_v32 = vpop.eup %2292 }
0x26b5   :  { %v2039_v23 = vmul.f32 %v2293_v32, %v2291_v44 }
0x26b7   :  { %2202 = vmatmul.msk.f32.vlgmr.msra.gmra.mxu2 %vm2041_vm7, %v2039_v23 }
0x273a   :  { %v2066_v11 = vpop.f32.mrf.mxu2 }
0x273b   :  { %2070 = vrot.lane.b32.xlu1 %v2066_v11, %s2306_s16 }
0x27ad   :  { %v2071_v2 = vpop.permute.xlu1 %2070 }
0x27ae   :  { %v2073_v61 = vadd.f32 %v2071_v2, %v686_v53 }
0x27b0   :  { %v2075_v22 = vsel %vm2074_vm8, %v2073_v61, -inf }
0x27b1   :  { %2076 = vmax.xlane.f32.xlu1 %v2075_v22 }
0x2824   :  { %v2077_v60 = vpop.xlane.xlu1 %2076 }
0x2825   :  { %v2078_v18 = vsub.f32 %v2073_v61, %v2077_v60 }
0x2827   :  { %v2079_v17 = vmul.f32 1.442695, %v2078_v18 }
0x2829   :  { %2294 = vpow2.f32 %v2079_v17 }
0x282f   :  { %v2295_v26 = vpop.eup %2294 }
0x2830   :  { %2082 = vrot.lane.b32.xlu2 %v2295_v26, %s2307_s2 }
0x288a   :  { %v2083_v1 = vpop.permute.xlu2 %2082 }
0x288b   :  { %v2085_v29 = vsel %vm2028_vm5, %v2083_v1, 0.0 }
0x288c   :  { %2086 = vadd.xlane.f32.xlu0 %v2085_v29 }
0x28ff   :  { %v2087_v52 = vpop.xlane.xlu0 %2086 }
0x2900   :  { %2296 = vrcp.f32 %v2087_v52 }
0x2906   :  { %v2297_v8 = vpop.eup %2296 }
0x2907   :  { %v2089_v9 = vmul.f32 %v2297_v8, %v2295_v26 }
0x2909   :  { %v2090_v10 = vsel %vm2000_vm3, %v1993_v0, %v2089_v9 }
0x290a   :  { %v2092_v58 = vsel %vm2091_vm9, %v2090_v10, 0.0 }
0x290b   :  { %2093 = vst [vmem:[%s3387_s3] sm:$0x3] %v2092_v58 }

</bundles_post_ra>
